<compile_context>
chip_gen: v6e
topology: v6e:2x2x1
jax: 0.10.0
libtpu: 0.0.40
codegen_flags: <defaults>
</compile_context>

<pallas_src>
import jax
import jax.numpy as jnp
from jax import lax
from jax.experimental import pallas as pl
from jax.experimental.pallas import tpu as pltpu

K_SIZE = 4
STRIDE = 2
PAD = 1
BN_EPS = 1e-5
LANE = 128      # Cout is zero-padded to this => lane-dense (unmasked) stores
TM_MAX = 512    # rows (N*Ho*Wo) per M tile


def _round_up(x, m):
    return ((x + m - 1) // m) * m


def _tile_m(m):
    """Pick an M-tile (multiple of 8, capped) and the padded row count."""
    tm = min(TM_MAX, _round_up(m, 8))
    return tm, _round_up(m, tm)


# ----------------------------------------------------------------------------
# Pallas kernels
# ----------------------------------------------------------------------------
def _mm_stats_kernel(p_ref, w_ref, y_ref, sum_ref, sq_ref):
    """y = patches @ w (bf16 -> f32 acc); accumulate per-channel sum/sumsq."""
    @pl.when((pl.program_id(0) == 0) & (pl.program_id(1) == 0))
    def _init():
        sum_ref[...] = jnp.zeros_like(sum_ref)
        sq_ref[...] = jnp.zeros_like(sq_ref)

    y = jnp.dot(p_ref[0], w_ref[0], preferred_element_type=jnp.float32)
    y_ref[0] = y
    sum_ref[...] += jnp.sum(y, axis=0, keepdims=True)
    sq_ref[...] += jnp.sum(y * y, axis=0, keepdims=True)


def _scale_shift_relu_kernel(y_ref, sc_ref, sh_ref, o_ref):
    """BatchNorm (folded scale/shift) + ReLU, fully parallel over M tiles."""
    o_ref[...] = jnp.maximum(
        y_ref[...] * sc_ref[...] + sh_ref[...], 0.0).astype(o_ref.dtype)


def _mm_bias_tanh_kernel(p_ref, w_ref, b_ref, o_ref):
    """Last decoder layer: matmul + bias + tanh (no BN)."""
    y = jnp.dot(p_ref[0], w_ref[0], preferred_element_type=jnp.float32)
    o_ref[0] = jnp.tanh(y + b_ref[...])


# ----------------------------------------------------------------------------
# pallas_call wrappers
# ----------------------------------------------------------------------------
def _matmul_stats(patches, w, tm):
    # patches: (P, M_pad, K) bf16, w: (P, K, LANE) bf16, M_pad % tm == 0.
    p, m_pad, k = patches.shape
    npad = w.shape[-1]
    grid = (p, m_pad // tm)
    return pl.pallas_call(
        _mm_stats_kernel,
        out_shape=(
            jax.ShapeDtypeStruct((p, m_pad, npad), jnp.float32),
            jax.ShapeDtypeStruct((1, npad), jnp.float32),
            jax.ShapeDtypeStruct((1, npad), jnp.float32),
        ),
        grid=grid,
        in_specs=[
            pl.BlockSpec((1, tm, k), lambda ph, i: (ph, i, 0)),
            pl.BlockSpec((1, k, npad), lambda ph, i: (ph, 0, 0)),
        ],
        out_specs=(
            pl.BlockSpec((1, tm, npad), lambda ph, i: (ph, i, 0)),
            pl.BlockSpec((1, npad), lambda ph, i: (0, 0)),
            pl.BlockSpec((1, npad), lambda ph, i: (0, 0)),
        ),
        compiler_params=pltpu.CompilerParams(
            dimension_semantics=("arbitrary", "arbitrary")),
        cost_estimate=pl.CostEstimate(
            flops=2 * p * m_pad * k * npad,
            transcendentals=0,
            bytes_accessed=patches.size * 2 + w.size * 2
            + p * m_pad * npad * 4 + 2 * npad * 4),
    )(patches, w)


def _apply_bn_relu(y2d, scale, shift, tm):
    # y2d: (rows, LANE) f32, rows % tm == 0; scale/shift: (1, LANE) f32.
    rows, npad = y2d.shape
    return pl.pallas_call(
        _scale_shift_relu_kernel,
        out_shape=jax.ShapeDtypeStruct((rows, npad), jnp.bfloat16),
        grid=(rows // tm,),
        in_specs=[
            pl.BlockSpec((tm, npad), lambda i: (i, 0)),
            pl.BlockSpec((1, npad), lambda i: (0, 0)),
            pl.BlockSpec((1, npad), lambda i: (0, 0)),
        ],
        out_specs=pl.BlockSpec((tm, npad), lambda i: (i, 0)),
        compiler_params=pltpu.CompilerParams(
            dimension_semantics=("parallel",)),
        cost_estimate=pl.CostEstimate(
            flops=2 * rows * npad, transcendentals=0,
            bytes_accessed=rows * npad * 6 + 2 * npad * 4),
    )(y2d, scale, shift)


def _matmul_bias_tanh(patches, w, b, tm):
    p, m_pad, k = patches.shape
    npad = w.shape[-1]
    grid = (p, m_pad // tm)
    return pl.pallas_call(
        _mm_bias_tanh_kernel,
        out_shape=jax.ShapeDtypeStruct((p, m_pad, npad), jnp.float32),
        grid=grid,
        in_specs=[
            pl.BlockSpec((1, tm, k), lambda ph, i: (ph, i, 0)),
            pl.BlockSpec((1, k, npad), lambda ph, i: (ph, 0, 0)),
            pl.BlockSpec((1, npad), lambda ph, i: (0, 0)),
        ],
        out_specs=pl.BlockSpec((1, tm, npad), lambda ph, i: (ph, i, 0)),
        compiler_params=pltpu.CompilerParams(
            dimension_semantics=("parallel", "parallel")),
        cost_estimate=pl.CostEstimate(
            flops=2 * p * m_pad * k * npad,
            transcendentals=p * m_pad * npad,
            bytes_accessed=patches.size * 2 + w.size * 2
            + p * m_pad * npad * 4 + npad * 4),
    )(patches, w, b)


# ----------------------------------------------------------------------------
# Wrapper glue: im2col / sub-pixel patches, BN folding, phase interleave
# ----------------------------------------------------------------------------
def _extract_patches_stride2(xp):
    # xp: (N, H+2, W+2, C) padded input -> (N*Ho*Wo, 16*C), Ho, Wo
    n, hp, wp, c = xp.shape
    ho = (hp - K_SIZE) // STRIDE + 1
    wo = (wp - K_SIZE) // STRIDE + 1
    cols = []
    for di in range(K_SIZE):
        for dj in range(K_SIZE):
            cols.append(xp[:, di:di + STRIDE * (ho - 1) + 1:STRIDE,
                           dj:dj + STRIDE * (wo - 1) + 1:STRIDE, :])
    patches = jnp.stack(cols, axis=3)               # (N, Ho, Wo, 16, C)
    return patches.reshape(n * ho * wo, K_SIZE * K_SIZE * c), ho, wo


def _extract_patches_subpixel(x):
    # ConvTranspose2d(k=4,s=2,p=1) sub-pixel phases:
    #   out[2i+r, 2j+s] = sum_{a,b in {0,1}} xpad1[i+r+a, j+s+b] * wf[r+2a, s+2b]
    # -> per-phase (r,s) patches of shape (N*H*W, 4*C), phase index = 2r+s.
    n, h, w, c = x.shape
    xp = jnp.pad(x, ((0, 0), (1, 1), (1, 1), (0, 0)))
    phases = []
    for r in range(2):
        for s in range(2):
            cols = []
            for a in range(2):
                for b in range(2):
                    cols.append(xp[:, r + a:r + a + h, s + b:s + b + w, :])
            pw = jnp.stack(cols, axis=3)            # (N, H, W, 4, C)
            phases.append(pw.reshape(n * h * w, 4 * c))
    return jnp.stack(phases, axis=0)                # (4, N*H*W, 4*C)


def _pad_rows(patches, m_pad):
    p, m, _ = patches.shape
    if m_pad == m:
        return patches
    return jnp.pad(patches, ((0, 0), (0, m_pad - m), (0, 0)))


def _bn_scale_shift(s1, s2, count, gamma, beta):
    # Exact training-mode BN statistics (biased variance) over `count` rows;
    # zero-padded rows contribute nothing to s1/s2 so the stats are exact.
    mean = s1 / count
    var = jnp.maximum(s2 / count - mean * mean, 0.0)
    scale = gamma * lax.rsqrt(var + BN_EPS)
    shift = beta - mean * scale
    return scale, shift


def _interleave_phases(y, n, h, w, cout):
    # y: (4, n*h*w, cout), phase = 2r+s -> (n, 2h, 2w, cout)
    y = y.reshape(2, 2, n, h, w, cout)
    y = jnp.transpose(y, (2, 3, 0, 4, 1, 5))
    return y.reshape(n, 2 * h, 2 * w, cout)


def _conv_bn_relu(x, layer):
    # Conv2d(k=4, s=2, p=1) + BatchNorm2d(train) + ReLU.  x: (N,H,W,C) bf16.
    n, h, w, _ = x.shape
    xp = jnp.pad(x, ((0, 0), (PAD, PAD), (PAD, PAD), (0, 0)))
    patches, ho, wo = _extract_patches_stride2(xp)
    m = patches.shape[0]
    tm, m_pad = _tile_m(m)
    patches = _pad_rows(patches[None], m_pad)        # (1, M_pad, 16*C)
    y, s1, s2 = _matmul_stats(patches, layer["w"], tm)
    scale, shift = _bn_scale_shift(s1, s2, m, layer["gamma"], layer["beta"])
    act = _apply_bn_relu(y.reshape(m_pad, LANE), scale, shift, tm)
    act = act[:m, :layer["cout"]]
    return act.reshape(n, ho, wo, layer["cout"])


def _deconv_bn_relu(x, layer):
    # ConvTranspose2d(k=4, s=2, p=1) + BatchNorm2d(train) + ReLU (sub-pixel).
    n, h, w, _ = x.shape
    patches = _extract_patches_subpixel(x)           # (4, M, 4*C)
    m = n * h * w
    tm, m_pad = _tile_m(m)
    patches = _pad_rows(patches, m_pad)
    y, s1, s2 = _matmul_stats(patches, layer["w"], tm)
    scale, shift = _bn_scale_shift(s1, s2, 4 * m, layer["gamma"], layer["beta"])
    act = _apply_bn_relu(y.reshape(4 * m_pad, LANE), scale, shift, tm)
    act = act.reshape(4, m_pad, LANE)[:, :m, :layer["cout"]]
    return _interleave_phases(act, n, h, w, layer["cout"])


def _deconv_tanh(x, layer):
    # Last decoder layer: ConvTranspose2d + bias + Tanh (no BN).
    n, h, w, _ = x.shape
    patches = _extract_patches_subpixel(x)
    m = n * h * w
    tm, m_pad = _tile_m(m)
    patches = _pad_rows(patches, m_pad)
    y = _matmul_bias_tanh(patches, layer["w"], layer["b"], tm)
    y = y[:, :m, :layer["cout"]]
    return _interleave_phases(y, n, h, w, layer["cout"])


def autoencoder_forward(x_nchw, params):
    x = jnp.transpose(x_nchw, (0, 2, 3, 1)).astype(jnp.bfloat16)  # NCHW->NHWC
    for layer in params["enc"]:
        x = _conv_bn_relu(x, layer)
    for layer in params["dec"][:-1]:
        x = _deconv_bn_relu(x, layer)
    x = _deconv_tanh(x, params["dec"][-1])
    return jnp.transpose(x, (0, 3, 1, 2)).astype(jnp.float32)     # NHWC->NCHW


# ----------------------------------------------------------------------------
# Parameter setup (kernel-layout params + raw torch-layout params for the ref)
# ----------------------------------------------------------------------------
def init_params(key):
    enc_io = [(3, 16), (16, 32), (32, 64), (64, 128)]
    dec_io = [(128, 64), (64, 32), (32, 16), (16, 3)]
    params = {"enc": [], "dec": []}
    raw = {"enc": [], "dec": []}

    for cin, cout in enc_io:
        key, kw_, kb, kg, kbe = jax.random.split(key, 5)
        w = 0.05 * jax.random.normal(kw_, (cout, cin, K_SIZE, K_SIZE), jnp.float32)
        b = 0.05 * jax.random.normal(kb, (cout,), jnp.float32)
        gamma = 1.0 + 0.1 * jax.random.normal(kg, (cout,), jnp.float32)
        beta = 0.1 * jax.random.normal(kbe, (cout,), jnp.float32)
        # (Cout,Cin,kh,kw) -> (kh,kw,Cin,Cout) -> (16*Cin, Cout), pad Cout->128.
        w_mat = jnp.transpose(w, (2, 3, 1, 0)).reshape(K_SIZE * K_SIZE * cin, cout)
        w_mat = jnp.pad(w_mat, ((0, 0), (0, LANE - cout)))
        params["enc"].append(dict(
            w=w_mat[None].astype(jnp.bfloat16),              # (1, 16*Cin, 128)
            gamma=jnp.pad(gamma, (0, LANE - cout)).reshape(1, LANE),
            beta=jnp.pad(beta, (0, LANE - cout)).reshape(1, LANE),
            cout=cout))
        # Conv bias is a no-op under training-mode BN -> dropped in kernel path.
        raw["enc"].append(dict(w=w, b=b, gamma=gamma, beta=beta))

    for idx, (cin, cout) in enumerate(dec_io):
        key, kw_, kb, kg, kbe = jax.random.split(key, 5)
        wt = 0.05 * jax.random.normal(kw_, (cin, cout, K_SIZE, K_SIZE), jnp.float32)
        b = 0.05 * jax.random.normal(kb, (cout,), jnp.float32)
        gamma = 1.0 + 0.1 * jax.random.normal(kg, (cout,), jnp.float32)
        beta = 0.1 * jax.random.normal(kbe, (cout,), jnp.float32)
        # Equivalent forward-conv kernel: wf[kh,kw,Cin,Cout] = flip(wt) transposed.
        wf = jnp.transpose(wt[:, :, ::-1, ::-1], (2, 3, 0, 1))
        w_ph = []
        for r in range(2):
            for s in range(2):
                sub = wf[r::2, s::2]                          # (2,2,Cin,Cout)=[a,b,ci,co]
                w_ph.append(sub.reshape(4 * cin, cout))
        w_phase = jnp.stack(w_ph, axis=0)                     # (4, 4*Cin, Cout)
        w_phase = jnp.pad(w_phase, ((0, 0), (0, 0), (0, LANE - cout)))
        entry = dict(w=w_phase.astype(jnp.bfloat16), cout=cout)
        if idx < len(dec_io) - 1:
            entry["gamma"] = jnp.pad(gamma, (0, LANE - cout)).reshape(1, LANE)
            entry["beta"] = jnp.pad(beta, (0, LANE - cout)).reshape(1, LANE)
        else:
            entry["b"] = jnp.pad(b, (0, LANE - cout)).reshape(1, LANE)
        params["dec"].append(entry)
        raw["dec"].append(dict(w=wt, b=b, gamma=gamma, beta=beta))

    return params, raw


# ----------------------------------------------------------------------------
# Pure-JAX reference (XLA convs, f32 HIGHEST) used only to validate the kernels.
# ----------------------------------------------------------------------------
def reference_forward(x_nchw, raw):
    def bn_relu(y, gamma, beta):
        mean = jnp.mean(y, axis=(0, 2, 3), keepdims=True)
        var = jnp.mean((y - mean) ** 2, axis=(0, 2, 3), keepdims=True)
        y = (y - mean) * lax.rsqrt(var + BN_EPS)
        y = y * gamma[None, :, None, None] + beta[None, :, None, None]
        return jnp.maximum(y, 0.0)

    dn = ("NCHW", "OIHW", "NCHW")
    x = x_nchw.astype(jnp.float32)
    for layer in raw["enc"]:
        y = lax.conv_general_dilated(x, layer["w"], (STRIDE, STRIDE),
                                     ((PAD, PAD), (PAD, PAD)),
                                     dimension_numbers=dn,
                                     precision=lax.Precision.HIGHEST)
        y = y + layer["b"][None, :, None, None]
        x = bn_relu(y, layer["gamma"], layer["beta"])
    for i, layer in enumerate(raw["dec"]):
        w_oihw = jnp.transpose(layer["w"][:, :, ::-1, ::-1], (1, 0, 2, 3))
        y = lax.conv_general_dilated(x, w_oihw, (1, 1), ((2, 2), (2, 2)),
                                     lhs_dilation=(2, 2),
                                     dimension_numbers=dn,
                                     precision=lax.Precision.HIGHEST)
        y = y + layer["b"][None, :, None, None]
        if i < len(raw["dec"]) - 1:
            x = bn_relu(y, layer["gamma"], layer["beta"])
        else:
            x = jnp.tanh(y)
    return x


if __name__ == "__main__":
    key = jax.random.PRNGKey(0)
    key, kx = jax.random.split(key)
    # Small but non-degenerate: every BN sees >= 8 output positions.
    x = jax.random.normal(kx, (2, 3, 32, 32), jnp.float32)  # NCHW like PyTorch
    params, raw = init_params(key)

    fwd = jax.jit(lambda inp: autoencoder_forward(inp, params))
    out = jax.block_until_ready(fwd(x))
    assert out.shape == (2, 3, 32, 32), out.shape

    ref = jax.block_until_ready(reference_forward(x, raw))
    max_err = float(jnp.max(jnp.abs(out - ref)))
    # bf16 matmuls / bf16 activations vs f32-HIGHEST reference through 8 layers.
    assert max_err < 8e-2, max_err

    print("KERNEL_OK")
</pallas_src>

<mosaic_0001>
module attributes {stable_mosaic.version = 11 : i64} {
  func.func @_mm_stats_kernel(%arg0: i32, %arg1: i32, %arg2: memref<1x512x48xbf16, #tpu.memory_space<vmem>>, %arg3: memref<1x48x128xbf16, #tpu.memory_space<vmem>>, %arg4: memref<1x512x128xf32, #tpu.memory_space<vmem>>, %arg5: memref<1x128xf32, #tpu.memory_space<vmem>>, %arg6: memref<1x128xf32, #tpu.memory_space<vmem>>) attributes {dimension_semantics = [#tpu.dimension_semantics<arbitrary>, #tpu.dimension_semantics<arbitrary>], iteration_bounds = array<i64: 1, 1>, scalar_prefetch = 0 : i64, scratch_operands = 0 : i64, tpu.core_type = #tpu.core_type<tc>, window_params = [{transform_indices = @transform_0, window_bounds = array<i64: 1, 512, 48>}, {transform_indices = @transform_1, window_bounds = array<i64: 1, 48, 128>}, {transform_indices = @transform_2, window_bounds = array<i64: 1, 512, 128>}, {pipeline_mode = #tpu.pipeline_mode<synchronous>, transform_indices = @transform_3, window_bounds = array<i64: 1, 128>}, {pipeline_mode = #tpu.pipeline_mode<synchronous>, transform_indices = @transform_4, window_bounds = array<i64: 1, 128>}]} {
    %c0_i32 = arith.constant 0 : i32
    %0 = arith.cmpi eq, %arg0, %c0_i32 : i32
    %c0_i32_0 = arith.constant 0 : i32
    %1 = arith.cmpi eq, %arg1, %c0_i32_0 : i32
    %2 = arith.andi %0, %1 : i1
    %3 = arith.extui %2 : i1 to i32
    %c0_i32_1 = arith.constant 0 : i32
    %4 = arith.cmpi ne, %3, %c0_i32_1 : i32
    scf.if %4 {
      %cst_20 = arith.constant 0.000000e+00 : f32
      %24 = vector.broadcast %cst_20 : f32 to vector<1x128xf32>
      %c0_21 = arith.constant 0 : index
      %c0_22 = arith.constant 0 : index
      %25 = vector.load %arg5[%c0_21, %c0_22] : memref<1x128xf32, #tpu.memory_space<vmem>>, vector<1x128xf32>
      tpu.vector_store %arg5[%c0_21, %c0_22], %24 {strides = array<i32>} : memref<1x128xf32, #tpu.memory_space<vmem>>, vector<1x128xf32>,
      %cst_23 = arith.constant 0.000000e+00 : f32
      %26 = vector.broadcast %cst_23 : f32 to vector<1x128xf32>
      %c0_24 = arith.constant 0 : index
      %c0_25 = arith.constant 0 : index
      %27 = vector.load %arg6[%c0_24, %c0_25] : memref<1x128xf32, #tpu.memory_space<vmem>>, vector<1x128xf32>
      tpu.vector_store %arg6[%c0_24, %c0_25], %26 {strides = array<i32>} : memref<1x128xf32, #tpu.memory_space<vmem>>, vector<1x128xf32>,
    } else {
    }
    %c0 = arith.constant 0 : index
    %c0_2 = arith.constant 0 : index
    %c0_3 = arith.constant 0 : index
    %5 = vector.load %arg2[%c0, %c0_2, %c0_3] : memref<1x512x48xbf16, #tpu.memory_space<vmem>>, vector<1x512x48xbf16>
    %6 = vector.shape_cast %5 : vector<1x512x48xbf16> to vector<512x48xbf16>
    %c0_4 = arith.constant 0 : index
    %c0_5 = arith.constant 0 : index
    %c0_6 = arith.constant 0 : index
    %7 = vector.load %arg3[%c0_4, %c0_5, %c0_6] : memref<1x48x128xbf16, #tpu.memory_space<vmem>>, vector<1x48x128xbf16>
    %8 = vector.shape_cast %7 : vector<1x48x128xbf16> to vector<48x128xbf16>
    %cst = arith.constant dense<0.000000e+00> : vector<512x128xf32>
    %9 = tpu.matmul %6, %8, %cst {dimension_numbers = #tpu.dot_dimension_numbers<[1], [0], [0], [1], [0, 0, 1, 1], [], []>} : vector<512x48xbf16>, vector<48x128xbf16>, vector<512x128xf32> -> vector<512x128xf32>
    %c0_7 = arith.constant 0 : index
    %c0_8 = arith.constant 0 : index
    %c0_9 = arith.constant 0 : index
    %10 = vector.load %arg4[%c0_7, %c0_8, %c0_9] : memref<1x512x128xf32, #tpu.memory_space<vmem>>, vector<1x512x128xf32>
    %11 = vector.shape_cast %10 : vector<1x512x128xf32> to vector<512x128xf32>
    %12 = vector.shape_cast %9 : vector<512x128xf32> to vector<1x512x128xf32>
    tpu.vector_store %arg4[%c0_7, %c0_8, %c0_9], %12 {strides = array<i32>} : memref<1x512x128xf32, #tpu.memory_space<vmem>>, vector<1x512x128xf32>,
    %c0_10 = arith.constant 0 : index
    %c0_11 = arith.constant 0 : index
    %13 = vector.load %arg5[%c0_10, %c0_11] : memref<1x128xf32, #tpu.memory_space<vmem>>, vector<1x128xf32>
    %cst_12 = arith.constant dense<0.000000e+00> : vector<128xf32>
    %14 = vector.multi_reduction <add>, %9, %cst_12 [0] : vector<512x128xf32> to vector<128xf32>
    %15 = vector.shape_cast %14 : vector<128xf32> to vector<1x128xf32>
    %16 = arith.addf %13, %15 : vector<1x128xf32>
    %c0_13 = arith.constant 0 : index
    %c0_14 = arith.constant 0 : index
    %17 = vector.load %arg5[%c0_13, %c0_14] : memref<1x128xf32, #tpu.memory_space<vmem>>, vector<1x128xf32>
    tpu.vector_store %arg5[%c0_13, %c0_14], %16 {strides = array<i32>} : memref<1x128xf32, #tpu.memory_space<vmem>>, vector<1x128xf32>,
    %c0_15 = arith.constant 0 : index
    %c0_16 = arith.constant 0 : index
    %18 = vector.load %arg6[%c0_15, %c0_16] : memref<1x128xf32, #tpu.memory_space<vmem>>, vector<1x128xf32>
    %19 = arith.mulf %9, %9 : vector<512x128xf32>
    %cst_17 = arith.constant dense<0.000000e+00> : vector<128xf32>
    %20 = vector.multi_reduction <add>, %19, %cst_17 [0] : vector<512x128xf32> to vector<128xf32>
    %21 = vector.shape_cast %20 : vector<128xf32> to vector<1x128xf32>
    %22 = arith.addf %18, %21 : vector<1x128xf32>
    %c0_18 = arith.constant 0 : index
    %c0_19 = arith.constant 0 : index
    %23 = vector.load %arg6[%c0_18, %c0_19] : memref<1x128xf32, #tpu.memory_space<vmem>>, vector<1x128xf32>
    tpu.vector_store %arg6[%c0_18, %c0_19], %22 {strides = array<i32>} : memref<1x128xf32, #tpu.memory_space<vmem>>, vector<1x128xf32>,
    return
  }
  func.func @transform_0(%arg0: i32, %arg1: i32) -> (i32, i32, i32) {
    %c0_i32 = arith.constant 0 : i32
    %c0_i32_0 = arith.constant 0 : i32
    return %arg0, %arg1, %c0_i32 : i32, i32, i32
  }
  func.func @transform_1(%arg0: i32, %arg1: i32) -> (i32, i32, i32) {
    %c0_i32 = arith.constant 0 : i32
    %c0_i32_0 = arith.constant 0 : i32
    %c0_i32_1 = arith.constant 0 : i32
    return %arg0, %c0_i32, %c0_i32_0 : i32, i32, i32
  }
  func.func @transform_2(%arg0: i32, %arg1: i32) -> (i32, i32, i32) {
    %c0_i32 = arith.constant 0 : i32
    %c0_i32_0 = arith.constant 0 : i32
    return %arg0, %arg1, %c0_i32 : i32, i32, i32
  }
  func.func @transform_3(%arg0: i32, %arg1: i32) -> (i32, i32) {
    %c0_i32 = arith.constant 0 : i32
    %c0_i32_0 = arith.constant 0 : i32
    %c0_i32_1 = arith.constant 0 : i32
    return %c0_i32, %c0_i32_0 : i32, i32
  }
  func.func @transform_4(%arg0: i32, %arg1: i32) -> (i32, i32) {
    %c0_i32 = arith.constant 0 : i32
    %c0_i32_0 = arith.constant 0 : i32
    %c0_i32_1 = arith.constant 0 : i32
    return %c0_i32, %c0_i32_0 : i32, i32
  }
}

module attributes {stable_mosaic.version = 11 : i64} {
  func.func @_scale_shift_relu_kernel(%arg0: i32, %arg1: memref<512x128xf32, #tpu.memory_space<vmem>>, %arg2: memref<1x128xf32, #tpu.memory_space<vmem>>, %arg3: memref<1x128xf32, #tpu.memory_space<vmem>>, %arg4: memref<512x128xbf16, #tpu.memory_space<vmem>>) attributes {dimension_semantics = [#tpu.dimension_semantics<parallel>], iteration_bounds = array<i64: 1>, scalar_prefetch = 0 : i64, scratch_operands = 0 : i64, tpu.core_type = #tpu.core_type<tc>, window_params = [{transform_indices = @transform_0, window_bounds = array<i64: 512, 128>}, {pipeline_mode = #tpu.pipeline_mode<synchronous>, transform_indices = @transform_1, window_bounds = array<i64: 1, 128>}, {pipeline_mode = #tpu.pipeline_mode<synchronous>, transform_indices = @transform_2, window_bounds = array<i64: 1, 128>}, {transform_indices = @transform_3, window_bounds = array<i64: 512, 128>}]} {
    %c0 = arith.constant 0 : index
    %c0_0 = arith.constant 0 : index
    %0 = vector.load %arg1[%c0, %c0_0] : memref<512x128xf32, #tpu.memory_space<vmem>>, vector<512x128xf32>
    %c0_1 = arith.constant 0 : index
    %c0_2 = arith.constant 0 : index
    %1 = vector.load %arg2[%c0_1, %c0_2] : memref<1x128xf32, #tpu.memory_space<vmem>>, vector<1x128xf32>
    %2 = vector.broadcast %1 : vector<1x128xf32> to vector<512x128xf32>
    %3 = arith.mulf %0, %2 : vector<512x128xf32>
    %c0_3 = arith.constant 0 : index
    %c0_4 = arith.constant 0 : index
    %4 = vector.load %arg3[%c0_3, %c0_4] : memref<1x128xf32, #tpu.memory_space<vmem>>, vector<1x128xf32>
    %5 = vector.broadcast %4 : vector<1x128xf32> to vector<512x128xf32>
    %6 = arith.addf %3, %5 : vector<512x128xf32>
    %cst = arith.constant 0.000000e+00 : f32
    %7 = vector.broadcast %cst : f32 to vector<512x128xf32>
    %8 = arith.maximumf %6, %7 : vector<512x128xf32>
    %9 = arith.truncf %8 : vector<512x128xf32> to vector<512x128xbf16>
    %c0_5 = arith.constant 0 : index
    %c0_6 = arith.constant 0 : index
    %10 = vector.load %arg4[%c0_5, %c0_6] : memref<512x128xbf16, #tpu.memory_space<vmem>>, vector<512x128xbf16>
    tpu.vector_store %arg4[%c0_5, %c0_6], %9 {strides = array<i32>} : memref<512x128xbf16, #tpu.memory_space<vmem>>, vector<512x128xbf16>,
    return
  }
  func.func @transform_0(%arg0: i32) -> (i32, i32) {
    %c0_i32 = arith.constant 0 : i32
    %c0_i32_0 = arith.constant 0 : i32
    return %arg0, %c0_i32 : i32, i32
  }
  func.func @transform_1(%arg0: i32) -> (i32, i32) {
    %c0_i32 = arith.constant 0 : i32
    %c0_i32_0 = arith.constant 0 : i32
    %c0_i32_1 = arith.constant 0 : i32
    return %c0_i32, %c0_i32_0 : i32, i32
  }
  func.func @transform_2(%arg0: i32) -> (i32, i32) {
    %c0_i32 = arith.constant 0 : i32
    %c0_i32_0 = arith.constant 0 : i32
    %c0_i32_1 = arith.constant 0 : i32
    return %c0_i32, %c0_i32_0 : i32, i32
  }
  func.func @transform_3(%arg0: i32) -> (i32, i32) {
    %c0_i32 = arith.constant 0 : i32
    %c0_i32_0 = arith.constant 0 : i32
    return %arg0, %c0_i32 : i32, i32
  }
}

module attributes {stable_mosaic.version = 11 : i64} {
  func.func @_mm_stats_kernel(%arg0: i32, %arg1: i32, %arg2: memref<1x128x256xbf16, #tpu.memory_space<vmem>>, %arg3: memref<1x256x128xbf16, #tpu.memory_space<vmem>>, %arg4: memref<1x128x128xf32, #tpu.memory_space<vmem>>, %arg5: memref<1x128xf32, #tpu.memory_space<vmem>>, %arg6: memref<1x128xf32, #tpu.memory_space<vmem>>) attributes {dimension_semantics = [#tpu.dimension_semantics<arbitrary>, #tpu.dimension_semantics<arbitrary>], iteration_bounds = array<i64: 1, 1>, scalar_prefetch = 0 : i64, scratch_operands = 0 : i64, tpu.core_type = #tpu.core_type<tc>, window_params = [{transform_indices = @transform_0, window_bounds = array<i64: 1, 128, 256>}, {transform_indices = @transform_1, window_bounds = array<i64: 1, 256, 128>}, {transform_indices = @transform_2, window_bounds = array<i64: 1, 128, 128>}, {pipeline_mode = #tpu.pipeline_mode<synchronous>, transform_indices = @transform_3, window_bounds = array<i64: 1, 128>}, {pipeline_mode = #tpu.pipeline_mode<synchronous>, transform_indices = @transform_4, window_bounds = array<i64: 1, 128>}]} {
    %c0_i32 = arith.constant 0 : i32
    %0 = arith.cmpi eq, %arg0, %c0_i32 : i32
    %c0_i32_0 = arith.constant 0 : i32
    %1 = arith.cmpi eq, %arg1, %c0_i32_0 : i32
    %2 = arith.andi %0, %1 : i1
    %3 = arith.extui %2 : i1 to i32
    %c0_i32_1 = arith.constant 0 : i32
    %4 = arith.cmpi ne, %3, %c0_i32_1 : i32
    scf.if %4 {
      %cst_20 = arith.constant 0.000000e+00 : f32
      %24 = vector.broadcast %cst_20 : f32 to vector<1x128xf32>
      %c0_21 = arith.constant 0 : index
      %c0_22 = arith.constant 0 : index
      %25 = vector.load %arg5[%c0_21, %c0_22] : memref<1x128xf32, #tpu.memory_space<vmem>>, vector<1x128xf32>
      tpu.vector_store %arg5[%c0_21, %c0_22], %24 {strides = array<i32>} : memref<1x128xf32, #tpu.memory_space<vmem>>, vector<1x128xf32>,
      %cst_23 = arith.constant 0.000000e+00 : f32
      %26 = vector.broadcast %cst_23 : f32 to vector<1x128xf32>
      %c0_24 = arith.constant 0 : index
      %c0_25 = arith.constant 0 : index
      %27 = vector.load %arg6[%c0_24, %c0_25] : memref<1x128xf32, #tpu.memory_space<vmem>>, vector<1x128xf32>
      tpu.vector_store %arg6[%c0_24, %c0_25], %26 {strides = array<i32>} : memref<1x128xf32, #tpu.memory_space<vmem>>, vector<1x128xf32>,
    } else {
    }
    %c0 = arith.constant 0 : index
    %c0_2 = arith.constant 0 : index
    %c0_3 = arith.constant 0 : index
    %5 = vector.load %arg2[%c0, %c0_2, %c0_3] : memref<1x128x256xbf16, #tpu.memory_space<vmem>>, vector<1x128x256xbf16>
    %6 = vector.shape_cast %5 : vector<1x128x256xbf16> to vector<128x256xbf16>
    %c0_4 = arith.constant 0 : index
    %c0_5 = arith.constant 0 : index
    %c0_6 = arith.constant 0 : index
    %7 = vector.load %arg3[%c0_4, %c0_5, %c0_6] : memref<1x256x128xbf16, #tpu.memory_space<vmem>>, vector<1x256x128xbf16>
    %8 = vector.shape_cast %7 : vector<1x256x128xbf16> to vector<256x128xbf16>
    %cst = arith.constant dense<0.000000e+00> : vector<128x128xf32>
    %9 = tpu.matmul %6, %8, %cst {dimension_numbers = #tpu.dot_dimension_numbers<[1], [0], [0], [1], [0, 0, 1, 1], [], []>} : vector<128x256xbf16>, vector<256x128xbf16>, vector<128x128xf32> -> vector<128x128xf32>
    %c0_7 = arith.constant 0 : index
    %c0_8 = arith.constant 0 : index
    %c0_9 = arith.constant 0 : index
    %10 = vector.load %arg4[%c0_7, %c0_8, %c0_9] : memref<1x128x128xf32, #tpu.memory_space<vmem>>, vector<1x128x128xf32>
    %11 = vector.shape_cast %10 : vector<1x128x128xf32> to vector<128x128xf32>
    %12 = vector.shape_cast %9 : vector<128x128xf32> to vector<1x128x128xf32>
    tpu.vector_store %arg4[%c0_7, %c0_8, %c0_9], %12 {strides = array<i32>} : memref<1x128x128xf32, #tpu.memory_space<vmem>>, vector<1x128x128xf32>,
    %c0_10 = arith.constant 0 : index
    %c0_11 = arith.constant 0 : index
    %13 = vector.load %arg5[%c0_10, %c0_11] : memref<1x128xf32, #tpu.memory_space<vmem>>, vector<1x128xf32>
    %cst_12 = arith.constant dense<0.000000e+00> : vector<128xf32>
    %14 = vector.multi_reduction <add>, %9, %cst_12 [0] : vector<128x128xf32> to vector<128xf32>
    %15 = vector.shape_cast %14 : vector<128xf32> to vector<1x128xf32>
    %16 = arith.addf %13, %15 : vector<1x128xf32>
    %c0_13 = arith.constant 0 : index
    %c0_14 = arith.constant 0 : index
    %17 = vector.load %arg5[%c0_13, %c0_14] : memref<1x128xf32, #tpu.memory_space<vmem>>, vector<1x128xf32>
    tpu.vector_store %arg5[%c0_13, %c0_14], %16 {strides = array<i32>} : memref<1x128xf32, #tpu.memory_space<vmem>>, vector<1x128xf32>,
    %c0_15 = arith.constant 0 : index
    %c0_16 = arith.constant 0 : index
    %18 = vector.load %arg6[%c0_15, %c0_16] : memref<1x128xf32, #tpu.memory_space<vmem>>, vector<1x128xf32>
    %19 = arith.mulf %9, %9 : vector<128x128xf32>
    %cst_17 = arith.constant dense<0.000000e+00> : vector<128xf32>
    %20 = vector.multi_reduction <add>, %19, %cst_17 [0] : vector<128x128xf32> to vector<128xf32>
    %21 = vector.shape_cast %20 : vector<128xf32> to vector<1x128xf32>
    %22 = arith.addf %18, %21 : vector<1x128xf32>
    %c0_18 = arith.constant 0 : index
    %c0_19 = arith.constant 0 : index
    %23 = vector.load %arg6[%c0_18, %c0_19] : memref<1x128xf32, #tpu.memory_space<vmem>>, vector<1x128xf32>
    tpu.vector_store %arg6[%c0_18, %c0_19], %22 {strides = array<i32>} : memref<1x128xf32, #tpu.memory_space<vmem>>, vector<1x128xf32>,
    return
  }
  func.func @transform_0(%arg0: i32, %arg1: i32) -> (i32, i32, i32) {
    %c0_i32 = arith.constant 0 : i32
    %c0_i32_0 = arith.constant 0 : i32
    return %arg0, %arg1, %c0_i32 : i32, i32, i32
  }
  func.func @transform_1(%arg0: i32, %arg1: i32) -> (i32, i32, i32) {
    %c0_i32 = arith.constant 0 : i32
    %c0_i32_0 = arith.constant 0 : i32
    %c0_i32_1 = arith.constant 0 : i32
    return %arg0, %c0_i32, %c0_i32_0 : i32, i32, i32
  }
  func.func @transform_2(%arg0: i32, %arg1: i32) -> (i32, i32, i32) {
    %c0_i32 = arith.constant 0 : i32
    %c0_i32_0 = arith.constant 0 : i32
    return %arg0, %arg1, %c0_i32 : i32, i32, i32
  }
  func.func @transform_3(%arg0: i32, %arg1: i32) -> (i32, i32) {
    %c0_i32 = arith.constant 0 : i32
    %c0_i32_0 = arith.constant 0 : i32
    %c0_i32_1 = arith.constant 0 : i32
    return %c0_i32, %c0_i32_0 : i32, i32
  }
  func.func @transform_4(%arg0: i32, %arg1: i32) -> (i32, i32) {
    %c0_i32 = arith.constant 0 : i32
    %c0_i32_0 = arith.constant 0 : i32
    %c0_i32_1 = arith.constant 0 : i32
    return %c0_i32, %c0_i32_0 : i32, i32
  }
}

module attributes {stable_mosaic.version = 11 : i64} {
  func.func @_scale_shift_relu_kernel(%arg0: i32, %arg1: memref<128x128xf32, #tpu.memory_space<vmem>>, %arg2: memref<1x128xf32, #tpu.memory_space<vmem>>, %arg3: memref<1x128xf32, #tpu.memory_space<vmem>>, %arg4: memref<128x128xbf16, #tpu.memory_space<vmem>>) attributes {dimension_semantics = [#tpu.dimension_semantics<parallel>], iteration_bounds = array<i64: 1>, scalar_prefetch = 0 : i64, scratch_operands = 0 : i64, tpu.core_type = #tpu.core_type<tc>, window_params = [{transform_indices = @transform_0, window_bounds = array<i64: 128, 128>}, {pipeline_mode = #tpu.pipeline_mode<synchronous>, transform_indices = @transform_1, window_bounds = array<i64: 1, 128>}, {pipeline_mode = #tpu.pipeline_mode<synchronous>, transform_indices = @transform_2, window_bounds = array<i64: 1, 128>}, {transform_indices = @transform_3, window_bounds = array<i64: 128, 128>}]} {
    %c0 = arith.constant 0 : index
    %c0_0 = arith.constant 0 : index
    %0 = vector.load %arg1[%c0, %c0_0] : memref<128x128xf32, #tpu.memory_space<vmem>>, vector<128x128xf32>
    %c0_1 = arith.constant 0 : index
    %c0_2 = arith.constant 0 : index
    %1 = vector.load %arg2[%c0_1, %c0_2] : memref<1x128xf32, #tpu.memory_space<vmem>>, vector<1x128xf32>
    %2 = vector.broadcast %1 : vector<1x128xf32> to vector<128x128xf32>
    %3 = arith.mulf %0, %2 : vector<128x128xf32>
    %c0_3 = arith.constant 0 : index
    %c0_4 = arith.constant 0 : index
    %4 = vector.load %arg3[%c0_3, %c0_4] : memref<1x128xf32, #tpu.memory_space<vmem>>, vector<1x128xf32>
    %5 = vector.broadcast %4 : vector<1x128xf32> to vector<128x128xf32>
    %6 = arith.addf %3, %5 : vector<128x128xf32>
    %cst = arith.constant 0.000000e+00 : f32
    %7 = vector.broadcast %cst : f32 to vector<128x128xf32>
    %8 = arith.maximumf %6, %7 : vector<128x128xf32>
    %9 = arith.truncf %8 : vector<128x128xf32> to vector<128x128xbf16>
    %c0_5 = arith.constant 0 : index
    %c0_6 = arith.constant 0 : index
    %10 = vector.load %arg4[%c0_5, %c0_6] : memref<128x128xbf16, #tpu.memory_space<vmem>>, vector<128x128xbf16>
    tpu.vector_store %arg4[%c0_5, %c0_6], %9 {strides = array<i32>} : memref<128x128xbf16, #tpu.memory_space<vmem>>, vector<128x128xbf16>,
    return
  }
  func.func @transform_0(%arg0: i32) -> (i32, i32) {
    %c0_i32 = arith.constant 0 : i32
    %c0_i32_0 = arith.constant 0 : i32
    return %arg0, %c0_i32 : i32, i32
  }
  func.func @transform_1(%arg0: i32) -> (i32, i32) {
    %c0_i32 = arith.constant 0 : i32
    %c0_i32_0 = arith.constant 0 : i32
    %c0_i32_1 = arith.constant 0 : i32
    return %c0_i32, %c0_i32_0 : i32, i32
  }
  func.func @transform_2(%arg0: i32) -> (i32, i32) {
    %c0_i32 = arith.constant 0 : i32
    %c0_i32_0 = arith.constant 0 : i32
    %c0_i32_1 = arith.constant 0 : i32
    return %c0_i32, %c0_i32_0 : i32, i32
  }
  func.func @transform_3(%arg0: i32) -> (i32, i32) {
    %c0_i32 = arith.constant 0 : i32
    %c0_i32_0 = arith.constant 0 : i32
    return %arg0, %c0_i32 : i32, i32
  }
}

module attributes {stable_mosaic.version = 11 : i64} {
  func.func @_mm_stats_kernel(%arg0: i32, %arg1: i32, %arg2: memref<1x32x512xbf16, #tpu.memory_space<vmem>>, %arg3: memref<1x512x128xbf16, #tpu.memory_space<vmem>>, %arg4: memref<1x32x128xf32, #tpu.memory_space<vmem>>, %arg5: memref<1x128xf32, #tpu.memory_space<vmem>>, %arg6: memref<1x128xf32, #tpu.memory_space<vmem>>) attributes {dimension_semantics = [#tpu.dimension_semantics<arbitrary>, #tpu.dimension_semantics<arbitrary>], iteration_bounds = array<i64: 1, 1>, scalar_prefetch = 0 : i64, scratch_operands = 0 : i64, tpu.core_type = #tpu.core_type<tc>, window_params = [{transform_indices = @transform_0, window_bounds = array<i64: 1, 32, 512>}, {transform_indices = @transform_1, window_bounds = array<i64: 1, 512, 128>}, {transform_indices = @transform_2, window_bounds = array<i64: 1, 32, 128>}, {pipeline_mode = #tpu.pipeline_mode<synchronous>, transform_indices = @transform_3, window_bounds = array<i64: 1, 128>}, {pipeline_mode = #tpu.pipeline_mode<synchronous>, transform_indices = @transform_4, window_bounds = array<i64: 1, 128>}]} {
    %c0_i32 = arith.constant 0 : i32
    %0 = arith.cmpi eq, %arg0, %c0_i32 : i32
    %c0_i32_0 = arith.constant 0 : i32
    %1 = arith.cmpi eq, %arg1, %c0_i32_0 : i32
    %2 = arith.andi %0, %1 : i1
    %3 = arith.extui %2 : i1 to i32
    %c0_i32_1 = arith.constant 0 : i32
    %4 = arith.cmpi ne, %3, %c0_i32_1 : i32
    scf.if %4 {
      %cst_20 = arith.constant 0.000000e+00 : f32
      %24 = vector.broadcast %cst_20 : f32 to vector<1x128xf32>
      %c0_21 = arith.constant 0 : index
      %c0_22 = arith.constant 0 : index
      %25 = vector.load %arg5[%c0_21, %c0_22] : memref<1x128xf32, #tpu.memory_space<vmem>>, vector<1x128xf32>
      tpu.vector_store %arg5[%c0_21, %c0_22], %24 {strides = array<i32>} : memref<1x128xf32, #tpu.memory_space<vmem>>, vector<1x128xf32>,
      %cst_23 = arith.constant 0.000000e+00 : f32
      %26 = vector.broadcast %cst_23 : f32 to vector<1x128xf32>
      %c0_24 = arith.constant 0 : index
      %c0_25 = arith.constant 0 : index
      %27 = vector.load %arg6[%c0_24, %c0_25] : memref<1x128xf32, #tpu.memory_space<vmem>>, vector<1x128xf32>
      tpu.vector_store %arg6[%c0_24, %c0_25], %26 {strides = array<i32>} : memref<1x128xf32, #tpu.memory_space<vmem>>, vector<1x128xf32>,
    } else {
    }
    %c0 = arith.constant 0 : index
    %c0_2 = arith.constant 0 : index
    %c0_3 = arith.constant 0 : index
    %5 = vector.load %arg2[%c0, %c0_2, %c0_3] : memref<1x32x512xbf16, #tpu.memory_space<vmem>>, vector<1x32x512xbf16>
    %6 = vector.shape_cast %5 : vector<1x32x512xbf16> to vector<32x512xbf16>
    %c0_4 = arith.constant 0 : index
    %c0_5 = arith.constant 0 : index
    %c0_6 = arith.constant 0 : index
    %7 = vector.load %arg3[%c0_4, %c0_5, %c0_6] : memref<1x512x128xbf16, #tpu.memory_space<vmem>>, vector<1x512x128xbf16>
    %8 = vector.shape_cast %7 : vector<1x512x128xbf16> to vector<512x128xbf16>
    %cst = arith.constant dense<0.000000e+00> : vector<32x128xf32>
    %9 = tpu.matmul %6, %8, %cst {dimension_numbers = #tpu.dot_dimension_numbers<[1], [0], [0], [1], [0, 0, 1, 1], [], []>} : vector<32x512xbf16>, vector<512x128xbf16>, vector<32x128xf32> -> vector<32x128xf32>
    %c0_7 = arith.constant 0 : index
    %c0_8 = arith.constant 0 : index
    %c0_9 = arith.constant 0 : index
    %10 = vector.load %arg4[%c0_7, %c0_8, %c0_9] : memref<1x32x128xf32, #tpu.memory_space<vmem>>, vector<1x32x128xf32>
    %11 = vector.shape_cast %10 : vector<1x32x128xf32> to vector<32x128xf32>
    %12 = vector.shape_cast %9 : vector<32x128xf32> to vector<1x32x128xf32>
    tpu.vector_store %arg4[%c0_7, %c0_8, %c0_9], %12 {strides = array<i32>} : memref<1x32x128xf32, #tpu.memory_space<vmem>>, vector<1x32x128xf32>,
    %c0_10 = arith.constant 0 : index
    %c0_11 = arith.constant 0 : index
    %13 = vector.load %arg5[%c0_10, %c0_11] : memref<1x128xf32, #tpu.memory_space<vmem>>, vector<1x128xf32>
    %cst_12 = arith.constant dense<0.000000e+00> : vector<128xf32>
    %14 = vector.multi_reduction <add>, %9, %cst_12 [0] : vector<32x128xf32> to vector<128xf32>
    %15 = vector.shape_cast %14 : vector<128xf32> to vector<1x128xf32>
    %16 = arith.addf %13, %15 : vector<1x128xf32>
    %c0_13 = arith.constant 0 : index
    %c0_14 = arith.constant 0 : index
    %17 = vector.load %arg5[%c0_13, %c0_14] : memref<1x128xf32, #tpu.memory_space<vmem>>, vector<1x128xf32>
    tpu.vector_store %arg5[%c0_13, %c0_14], %16 {strides = array<i32>} : memref<1x128xf32, #tpu.memory_space<vmem>>, vector<1x128xf32>,
    %c0_15 = arith.constant 0 : index
    %c0_16 = arith.constant 0 : index
    %18 = vector.load %arg6[%c0_15, %c0_16] : memref<1x128xf32, #tpu.memory_space<vmem>>, vector<1x128xf32>
    %19 = arith.mulf %9, %9 : vector<32x128xf32>
    %cst_17 = arith.constant dense<0.000000e+00> : vector<128xf32>
    %20 = vector.multi_reduction <add>, %19, %cst_17 [0] : vector<32x128xf32> to vector<128xf32>
    %21 = vector.shape_cast %20 : vector<128xf32> to vector<1x128xf32>
    %22 = arith.addf %18, %21 : vector<1x128xf32>
    %c0_18 = arith.constant 0 : index
    %c0_19 = arith.constant 0 : index
    %23 = vector.load %arg6[%c0_18, %c0_19] : memref<1x128xf32, #tpu.memory_space<vmem>>, vector<1x128xf32>
    tpu.vector_store %arg6[%c0_18, %c0_19], %22 {strides = array<i32>} : memref<1x128xf32, #tpu.memory_space<vmem>>, vector<1x128xf32>,
    return
  }
  func.func @transform_0(%arg0: i32, %arg1: i32) -> (i32, i32, i32) {
    %c0_i32 = arith.constant 0 : i32
    %c0_i32_0 = arith.constant 0 : i32
    return %arg0, %arg1, %c0_i32 : i32, i32, i32
  }
  func.func @transform_1(%arg0: i32, %arg1: i32) -> (i32, i32, i32) {
    %c0_i32 = arith.constant 0 : i32
    %c0_i32_0 = arith.constant 0 : i32
    %c0_i32_1 = arith.constant 0 : i32
    return %arg0, %c0_i32, %c0_i32_0 : i32, i32, i32
  }
  func.func @transform_2(%arg0: i32, %arg1: i32) -> (i32, i32, i32) {
    %c0_i32 = arith.constant 0 : i32
    %c0_i32_0 = arith.constant 0 : i32
    return %arg0, %arg1, %c0_i32 : i32, i32, i32
  }
  func.func @transform_3(%arg0: i32, %arg1: i32) -> (i32, i32) {
    %c0_i32 = arith.constant 0 : i32
    %c0_i32_0 = arith.constant 0 : i32
    %c0_i32_1 = arith.constant 0 : i32
    return %c0_i32, %c0_i32_0 : i32, i32
  }
  func.func @transform_4(%arg0: i32, %arg1: i32) -> (i32, i32) {
    %c0_i32 = arith.constant 0 : i32
    %c0_i32_0 = arith.constant 0 : i32
    %c0_i32_1 = arith.constant 0 : i32
    return %c0_i32, %c0_i32_0 : i32, i32
  }
}

module attributes {stable_mosaic.version = 11 : i64} {
  func.func @_scale_shift_relu_kernel(%arg0: i32, %arg1: memref<32x128xf32, #tpu.memory_space<vmem>>, %arg2: memref<1x128xf32, #tpu.memory_space<vmem>>, %arg3: memref<1x128xf32, #tpu.memory_space<vmem>>, %arg4: memref<32x128xbf16, #tpu.memory_space<vmem>>) attributes {dimension_semantics = [#tpu.dimension_semantics<parallel>], iteration_bounds = array<i64: 1>, scalar_prefetch = 0 : i64, scratch_operands = 0 : i64, tpu.core_type = #tpu.core_type<tc>, window_params = [{transform_indices = @transform_0, window_bounds = array<i64: 32, 128>}, {pipeline_mode = #tpu.pipeline_mode<synchronous>, transform_indices = @transform_1, window_bounds = array<i64: 1, 128>}, {pipeline_mode = #tpu.pipeline_mode<synchronous>, transform_indices = @transform_2, window_bounds = array<i64: 1, 128>}, {transform_indices = @transform_3, window_bounds = array<i64: 32, 128>}]} {
    %c0 = arith.constant 0 : index
    %c0_0 = arith.constant 0 : index
    %0 = vector.load %arg1[%c0, %c0_0] : memref<32x128xf32, #tpu.memory_space<vmem>>, vector<32x128xf32>
    %c0_1 = arith.constant 0 : index
    %c0_2 = arith.constant 0 : index
    %1 = vector.load %arg2[%c0_1, %c0_2] : memref<1x128xf32, #tpu.memory_space<vmem>>, vector<1x128xf32>
    %2 = vector.broadcast %1 : vector<1x128xf32> to vector<32x128xf32>
    %3 = arith.mulf %0, %2 : vector<32x128xf32>
    %c0_3 = arith.constant 0 : index
    %c0_4 = arith.constant 0 : index
    %4 = vector.load %arg3[%c0_3, %c0_4] : memref<1x128xf32, #tpu.memory_space<vmem>>, vector<1x128xf32>
    %5 = vector.broadcast %4 : vector<1x128xf32> to vector<32x128xf32>
    %6 = arith.addf %3, %5 : vector<32x128xf32>
    %cst = arith.constant 0.000000e+00 : f32
    %7 = vector.broadcast %cst : f32 to vector<32x128xf32>
    %8 = arith.maximumf %6, %7 : vector<32x128xf32>
    %9 = arith.truncf %8 : vector<32x128xf32> to vector<32x128xbf16>
    %c0_5 = arith.constant 0 : index
    %c0_6 = arith.constant 0 : index
    %10 = vector.load %arg4[%c0_5, %c0_6] : memref<32x128xbf16, #tpu.memory_space<vmem>>, vector<32x128xbf16>
    tpu.vector_store %arg4[%c0_5, %c0_6], %9 {strides = array<i32>} : memref<32x128xbf16, #tpu.memory_space<vmem>>, vector<32x128xbf16>,
    return
  }
  func.func @transform_0(%arg0: i32) -> (i32, i32) {
    %c0_i32 = arith.constant 0 : i32
    %c0_i32_0 = arith.constant 0 : i32
    return %arg0, %c0_i32 : i32, i32
  }
  func.func @transform_1(%arg0: i32) -> (i32, i32) {
    %c0_i32 = arith.constant 0 : i32
    %c0_i32_0 = arith.constant 0 : i32
    %c0_i32_1 = arith.constant 0 : i32
    return %c0_i32, %c0_i32_0 : i32, i32
  }
  func.func @transform_2(%arg0: i32) -> (i32, i32) {
    %c0_i32 = arith.constant 0 : i32
    %c0_i32_0 = arith.constant 0 : i32
    %c0_i32_1 = arith.constant 0 : i32
    return %c0_i32, %c0_i32_0 : i32, i32
  }
  func.func @transform_3(%arg0: i32) -> (i32, i32) {
    %c0_i32 = arith.constant 0 : i32
    %c0_i32_0 = arith.constant 0 : i32
    return %arg0, %c0_i32 : i32, i32
  }
}

module attributes {stable_mosaic.version = 11 : i64} {
  func.func @_scale_shift_relu_kernel(%arg0: i32, %arg1: memref<8x128xf32, #tpu.memory_space<vmem>>, %arg2: memref<1x128xf32, #tpu.memory_space<vmem>>, %arg3: memref<1x128xf32, #tpu.memory_space<vmem>>, %arg4: memref<8x128xbf16, #tpu.memory_space<vmem>>) attributes {dimension_semantics = [#tpu.dimension_semantics<parallel>], iteration_bounds = array<i64: 1>, scalar_prefetch = 0 : i64, scratch_operands = 0 : i64, tpu.core_type = #tpu.core_type<tc>, window_params = [{transform_indices = @transform_0, window_bounds = array<i64: 8, 128>}, {pipeline_mode = #tpu.pipeline_mode<synchronous>, transform_indices = @transform_1, window_bounds = array<i64: 1, 128>}, {pipeline_mode = #tpu.pipeline_mode<synchronous>, transform_indices = @transform_2, window_bounds = array<i64: 1, 128>}, {transform_indices = @transform_3, window_bounds = array<i64: 8, 128>}]} {
    %c0 = arith.constant 0 : index
    %c0_0 = arith.constant 0 : index
    %0 = vector.load %arg1[%c0, %c0_0] : memref<8x128xf32, #tpu.memory_space<vmem>>, vector<8x128xf32>
    %c0_1 = arith.constant 0 : index
    %c0_2 = arith.constant 0 : index
    %1 = vector.load %arg2[%c0_1, %c0_2] : memref<1x128xf32, #tpu.memory_space<vmem>>, vector<1x128xf32>
    %2 = vector.broadcast %1 : vector<1x128xf32> to vector<8x128xf32>
    %3 = arith.mulf %0, %2 : vector<8x128xf32>
    %c0_3 = arith.constant 0 : index
    %c0_4 = arith.constant 0 : index
    %4 = vector.load %arg3[%c0_3, %c0_4] : memref<1x128xf32, #tpu.memory_space<vmem>>, vector<1x128xf32>
    %5 = vector.broadcast %4 : vector<1x128xf32> to vector<8x128xf32>
    %6 = arith.addf %3, %5 : vector<8x128xf32>
    %cst = arith.constant 0.000000e+00 : f32
    %7 = vector.broadcast %cst : f32 to vector<8x128xf32>
    %8 = arith.maximumf %6, %7 : vector<8x128xf32>
    %9 = arith.truncf %8 : vector<8x128xf32> to vector<8x128xbf16>
    %c0_5 = arith.constant 0 : index
    %c0_6 = arith.constant 0 : index
    %10 = vector.load %arg4[%c0_5, %c0_6] : memref<8x128xbf16, #tpu.memory_space<vmem>>, vector<8x128xbf16>
    tpu.vector_store %arg4[%c0_5, %c0_6], %9 {strides = array<i32>} : memref<8x128xbf16, #tpu.memory_space<vmem>>, vector<8x128xbf16>,
    return
  }
  func.func @transform_0(%arg0: i32) -> (i32, i32) {
    %c0_i32 = arith.constant 0 : i32
    %c0_i32_0 = arith.constant 0 : i32
    return %arg0, %c0_i32 : i32, i32
  }
  func.func @transform_1(%arg0: i32) -> (i32, i32) {
    %c0_i32 = arith.constant 0 : i32
    %c0_i32_0 = arith.constant 0 : i32
    %c0_i32_1 = arith.constant 0 : i32
    return %c0_i32, %c0_i32_0 : i32, i32
  }
  func.func @transform_2(%arg0: i32) -> (i32, i32) {
    %c0_i32 = arith.constant 0 : i32
    %c0_i32_0 = arith.constant 0 : i32
    %c0_i32_1 = arith.constant 0 : i32
    return %c0_i32, %c0_i32_0 : i32, i32
  }
  func.func @transform_3(%arg0: i32) -> (i32, i32) {
    %c0_i32 = arith.constant 0 : i32
    %c0_i32_0 = arith.constant 0 : i32
    return %arg0, %c0_i32 : i32, i32
  }
}

module attributes {stable_mosaic.version = 11 : i64} {
  func.func @_mm_stats_kernel(%arg0: i32, %arg1: i32, %arg2: memref<1x8x1024xbf16, #tpu.memory_space<vmem>>, %arg3: memref<1x1024x128xbf16, #tpu.memory_space<vmem>>, %arg4: memref<1x8x128xf32, #tpu.memory_space<vmem>>, %arg5: memref<1x128xf32, #tpu.memory_space<vmem>>, %arg6: memref<1x128xf32, #tpu.memory_space<vmem>>) attributes {dimension_semantics = [#tpu.dimension_semantics<arbitrary>, #tpu.dimension_semantics<arbitrary>], iteration_bounds = array<i64: 1, 1>, scalar_prefetch = 0 : i64, scratch_operands = 0 : i64, tpu.core_type = #tpu.core_type<tc>, window_params = [{transform_indices = @transform_0, window_bounds = array<i64: 1, 8, 1024>}, {transform_indices = @transform_1, window_bounds = array<i64: 1, 1024, 128>}, {transform_indices = @transform_2, window_bounds = array<i64: 1, 8, 128>}, {pipeline_mode = #tpu.pipeline_mode<synchronous>, transform_indices = @transform_3, window_bounds = array<i64: 1, 128>}, {pipeline_mode = #tpu.pipeline_mode<synchronous>, transform_indices = @transform_4, window_bounds = array<i64: 1, 128>}]} {
    %c0_i32 = arith.constant 0 : i32
    %0 = arith.cmpi eq, %arg0, %c0_i32 : i32
    %c0_i32_0 = arith.constant 0 : i32
    %1 = arith.cmpi eq, %arg1, %c0_i32_0 : i32
    %2 = arith.andi %0, %1 : i1
    %3 = arith.extui %2 : i1 to i32
    %c0_i32_1 = arith.constant 0 : i32
    %4 = arith.cmpi ne, %3, %c0_i32_1 : i32
    scf.if %4 {
      %cst_20 = arith.constant 0.000000e+00 : f32
      %24 = vector.broadcast %cst_20 : f32 to vector<1x128xf32>
      %c0_21 = arith.constant 0 : index
      %c0_22 = arith.constant 0 : index
      %25 = vector.load %arg5[%c0_21, %c0_22] : memref<1x128xf32, #tpu.memory_space<vmem>>, vector<1x128xf32>
      tpu.vector_store %arg5[%c0_21, %c0_22], %24 {strides = array<i32>} : memref<1x128xf32, #tpu.memory_space<vmem>>, vector<1x128xf32>,
      %cst_23 = arith.constant 0.000000e+00 : f32
      %26 = vector.broadcast %cst_23 : f32 to vector<1x128xf32>
      %c0_24 = arith.constant 0 : index
      %c0_25 = arith.constant 0 : index
      %27 = vector.load %arg6[%c0_24, %c0_25] : memref<1x128xf32, #tpu.memory_space<vmem>>, vector<1x128xf32>
      tpu.vector_store %arg6[%c0_24, %c0_25], %26 {strides = array<i32>} : memref<1x128xf32, #tpu.memory_space<vmem>>, vector<1x128xf32>,
    } else {
    }
    %c0 = arith.constant 0 : index
    %c0_2 = arith.constant 0 : index
    %c0_3 = arith.constant 0 : index
    %5 = vector.load %arg2[%c0, %c0_2, %c0_3] : memref<1x8x1024xbf16, #tpu.memory_space<vmem>>, vector<1x8x1024xbf16>
    %6 = vector.shape_cast %5 : vector<1x8x1024xbf16> to vector<8x1024xbf16>
    %c0_4 = arith.constant 0 : index
    %c0_5 = arith.constant 0 : index
    %c0_6 = arith.constant 0 : index
    %7 = vector.load %arg3[%c0_4, %c0_5, %c0_6] : memref<1x1024x128xbf16, #tpu.memory_space<vmem>>, vector<1x1024x128xbf16>
    %8 = vector.shape_cast %7 : vector<1x1024x128xbf16> to vector<1024x128xbf16>
    %cst = arith.constant dense<0.000000e+00> : vector<8x128xf32>
    %9 = tpu.matmul %6, %8, %cst {dimension_numbers = #tpu.dot_dimension_numbers<[1], [0], [0], [1], [0, 0, 1, 1], [], []>} : vector<8x1024xbf16>, vector<1024x128xbf16>, vector<8x128xf32> -> vector<8x128xf32>
    %c0_7 = arith.constant 0 : index
    %c0_8 = arith.constant 0 : index
    %c0_9 = arith.constant 0 : index
    %10 = vector.load %arg4[%c0_7, %c0_8, %c0_9] : memref<1x8x128xf32, #tpu.memory_space<vmem>>, vector<1x8x128xf32>
    %11 = vector.shape_cast %10 : vector<1x8x128xf32> to vector<8x128xf32>
    %12 = vector.shape_cast %9 : vector<8x128xf32> to vector<1x8x128xf32>
    tpu.vector_store %arg4[%c0_7, %c0_8, %c0_9], %12 {strides = array<i32>} : memref<1x8x128xf32, #tpu.memory_space<vmem>>, vector<1x8x128xf32>,
    %c0_10 = arith.constant 0 : index
    %c0_11 = arith.constant 0 : index
    %13 = vector.load %arg5[%c0_10, %c0_11] : memref<1x128xf32, #tpu.memory_space<vmem>>, vector<1x128xf32>
    %cst_12 = arith.constant dense<0.000000e+00> : vector<128xf32>
    %14 = vector.multi_reduction <add>, %9, %cst_12 [0] : vector<8x128xf32> to vector<128xf32>
    %15 = vector.shape_cast %14 : vector<128xf32> to vector<1x128xf32>
    %16 = arith.addf %13, %15 : vector<1x128xf32>
    %c0_13 = arith.constant 0 : index
    %c0_14 = arith.constant 0 : index
    %17 = vector.load %arg5[%c0_13, %c0_14] : memref<1x128xf32, #tpu.memory_space<vmem>>, vector<1x128xf32>
    tpu.vector_store %arg5[%c0_13, %c0_14], %16 {strides = array<i32>} : memref<1x128xf32, #tpu.memory_space<vmem>>, vector<1x128xf32>,
    %c0_15 = arith.constant 0 : index
    %c0_16 = arith.constant 0 : index
    %18 = vector.load %arg6[%c0_15, %c0_16] : memref<1x128xf32, #tpu.memory_space<vmem>>, vector<1x128xf32>
    %19 = arith.mulf %9, %9 : vector<8x128xf32>
    %cst_17 = arith.constant dense<0.000000e+00> : vector<128xf32>
    %20 = vector.multi_reduction <add>, %19, %cst_17 [0] : vector<8x128xf32> to vector<128xf32>
    %21 = vector.shape_cast %20 : vector<128xf32> to vector<1x128xf32>
    %22 = arith.addf %18, %21 : vector<1x128xf32>
    %c0_18 = arith.constant 0 : index
    %c0_19 = arith.constant 0 : index
    %23 = vector.load %arg6[%c0_18, %c0_19] : memref<1x128xf32, #tpu.memory_space<vmem>>, vector<1x128xf32>
    tpu.vector_store %arg6[%c0_18, %c0_19], %22 {strides = array<i32>} : memref<1x128xf32, #tpu.memory_space<vmem>>, vector<1x128xf32>,
    return
  }
  func.func @transform_0(%arg0: i32, %arg1: i32) -> (i32, i32, i32) {
    %c0_i32 = arith.constant 0 : i32
    %c0_i32_0 = arith.constant 0 : i32
    return %arg0, %arg1, %c0_i32 : i32, i32, i32
  }
  func.func @transform_1(%arg0: i32, %arg1: i32) -> (i32, i32, i32) {
    %c0_i32 = arith.constant 0 : i32
    %c0_i32_0 = arith.constant 0 : i32
    %c0_i32_1 = arith.constant 0 : i32
    return %arg0, %c0_i32, %c0_i32_0 : i32, i32, i32
  }
  func.func @transform_2(%arg0: i32, %arg1: i32) -> (i32, i32, i32) {
    %c0_i32 = arith.constant 0 : i32
    %c0_i32_0 = arith.constant 0 : i32
    return %arg0, %arg1, %c0_i32 : i32, i32, i32
  }
  func.func @transform_3(%arg0: i32, %arg1: i32) -> (i32, i32) {
    %c0_i32 = arith.constant 0 : i32
    %c0_i32_0 = arith.constant 0 : i32
    %c0_i32_1 = arith.constant 0 : i32
    return %c0_i32, %c0_i32_0 : i32, i32
  }
  func.func @transform_4(%arg0: i32, %arg1: i32) -> (i32, i32) {
    %c0_i32 = arith.constant 0 : i32
    %c0_i32_0 = arith.constant 0 : i32
    %c0_i32_1 = arith.constant 0 : i32
    return %c0_i32, %c0_i32_0 : i32, i32
  }
}

module attributes {stable_mosaic.version = 11 : i64} {
  func.func @_mm_stats_kernel(%arg0: i32, %arg1: i32, %arg2: memref<1x8x512xbf16, #tpu.memory_space<vmem>>, %arg3: memref<1x512x128xbf16, #tpu.memory_space<vmem>>, %arg4: memref<1x8x128xf32, #tpu.memory_space<vmem>>, %arg5: memref<1x128xf32, #tpu.memory_space<vmem>>, %arg6: memref<1x128xf32, #tpu.memory_space<vmem>>) attributes {dimension_semantics = [#tpu.dimension_semantics<arbitrary>, #tpu.dimension_semantics<arbitrary>], iteration_bounds = array<i64: 4, 1>, scalar_prefetch = 0 : i64, scratch_operands = 0 : i64, tpu.core_type = #tpu.core_type<tc>, window_params = [{transform_indices = @transform_0, window_bounds = array<i64: 1, 8, 512>}, {transform_indices = @transform_1, window_bounds = array<i64: 1, 512, 128>}, {transform_indices = @transform_2, window_bounds = array<i64: 1, 8, 128>}, {pipeline_mode = #tpu.pipeline_mode<synchronous>, transform_indices = @transform_3, window_bounds = array<i64: 1, 128>}, {pipeline_mode = #tpu.pipeline_mode<synchronous>, transform_indices = @transform_4, window_bounds = array<i64: 1, 128>}]} {
    %c0_i32 = arith.constant 0 : i32
    %0 = arith.cmpi eq, %arg0, %c0_i32 : i32
    %c0_i32_0 = arith.constant 0 : i32
    %1 = arith.cmpi eq, %arg1, %c0_i32_0 : i32
    %2 = arith.andi %0, %1 : i1
    %3 = arith.extui %2 : i1 to i32
    %c0_i32_1 = arith.constant 0 : i32
    %4 = arith.cmpi ne, %3, %c0_i32_1 : i32
    scf.if %4 {
      %cst_20 = arith.constant 0.000000e+00 : f32
      %24 = vector.broadcast %cst_20 : f32 to vector<1x128xf32>
      %c0_21 = arith.constant 0 : index
      %c0_22 = arith.constant 0 : index
      %25 = vector.load %arg5[%c0_21, %c0_22] : memref<1x128xf32, #tpu.memory_space<vmem>>, vector<1x128xf32>
      tpu.vector_store %arg5[%c0_21, %c0_22], %24 {strides = array<i32>} : memref<1x128xf32, #tpu.memory_space<vmem>>, vector<1x128xf32>,
      %cst_23 = arith.constant 0.000000e+00 : f32
      %26 = vector.broadcast %cst_23 : f32 to vector<1x128xf32>
      %c0_24 = arith.constant 0 : index
      %c0_25 = arith.constant 0 : index
      %27 = vector.load %arg6[%c0_24, %c0_25] : memref<1x128xf32, #tpu.memory_space<vmem>>, vector<1x128xf32>
      tpu.vector_store %arg6[%c0_24, %c0_25], %26 {strides = array<i32>} : memref<1x128xf32, #tpu.memory_space<vmem>>, vector<1x128xf32>,
    } else {
    }
    %c0 = arith.constant 0 : index
    %c0_2 = arith.constant 0 : index
    %c0_3 = arith.constant 0 : index
    %5 = vector.load %arg2[%c0, %c0_2, %c0_3] : memref<1x8x512xbf16, #tpu.memory_space<vmem>>, vector<1x8x512xbf16>
    %6 = vector.shape_cast %5 : vector<1x8x512xbf16> to vector<8x512xbf16>
    %c0_4 = arith.constant 0 : index
    %c0_5 = arith.constant 0 : index
    %c0_6 = arith.constant 0 : index
    %7 = vector.load %arg3[%c0_4, %c0_5, %c0_6] : memref<1x512x128xbf16, #tpu.memory_space<vmem>>, vector<1x512x128xbf16>
    %8 = vector.shape_cast %7 : vector<1x512x128xbf16> to vector<512x128xbf16>
    %cst = arith.constant dense<0.000000e+00> : vector<8x128xf32>
    %9 = tpu.matmul %6, %8, %cst {dimension_numbers = #tpu.dot_dimension_numbers<[1], [0], [0], [1], [0, 0, 1, 1], [], []>} : vector<8x512xbf16>, vector<512x128xbf16>, vector<8x128xf32> -> vector<8x128xf32>
    %c0_7 = arith.constant 0 : index
    %c0_8 = arith.constant 0 : index
    %c0_9 = arith.constant 0 : index
    %10 = vector.load %arg4[%c0_7, %c0_8, %c0_9] : memref<1x8x128xf32, #tpu.memory_space<vmem>>, vector<1x8x128xf32>
    %11 = vector.shape_cast %10 : vector<1x8x128xf32> to vector<8x128xf32>
    %12 = vector.shape_cast %9 : vector<8x128xf32> to vector<1x8x128xf32>
    tpu.vector_store %arg4[%c0_7, %c0_8, %c0_9], %12 {strides = array<i32>} : memref<1x8x128xf32, #tpu.memory_space<vmem>>, vector<1x8x128xf32>,
    %c0_10 = arith.constant 0 : index
    %c0_11 = arith.constant 0 : index
    %13 = vector.load %arg5[%c0_10, %c0_11] : memref<1x128xf32, #tpu.memory_space<vmem>>, vector<1x128xf32>
    %cst_12 = arith.constant dense<0.000000e+00> : vector<128xf32>
    %14 = vector.multi_reduction <add>, %9, %cst_12 [0] : vector<8x128xf32> to vector<128xf32>
    %15 = vector.shape_cast %14 : vector<128xf32> to vector<1x128xf32>
    %16 = arith.addf %13, %15 : vector<1x128xf32>
    %c0_13 = arith.constant 0 : index
    %c0_14 = arith.constant 0 : index
    %17 = vector.load %arg5[%c0_13, %c0_14] : memref<1x128xf32, #tpu.memory_space<vmem>>, vector<1x128xf32>
    tpu.vector_store %arg5[%c0_13, %c0_14], %16 {strides = array<i32>} : memref<1x128xf32, #tpu.memory_space<vmem>>, vector<1x128xf32>,
    %c0_15 = arith.constant 0 : index
    %c0_16 = arith.constant 0 : index
    %18 = vector.load %arg6[%c0_15, %c0_16] : memref<1x128xf32, #tpu.memory_space<vmem>>, vector<1x128xf32>
    %19 = arith.mulf %9, %9 : vector<8x128xf32>
    %cst_17 = arith.constant dense<0.000000e+00> : vector<128xf32>
    %20 = vector.multi_reduction <add>, %19, %cst_17 [0] : vector<8x128xf32> to vector<128xf32>
    %21 = vector.shape_cast %20 : vector<128xf32> to vector<1x128xf32>
    %22 = arith.addf %18, %21 : vector<1x128xf32>
    %c0_18 = arith.constant 0 : index
    %c0_19 = arith.constant 0 : index
    %23 = vector.load %arg6[%c0_18, %c0_19] : memref<1x128xf32, #tpu.memory_space<vmem>>, vector<1x128xf32>
    tpu.vector_store %arg6[%c0_18, %c0_19], %22 {strides = array<i32>} : memref<1x128xf32, #tpu.memory_space<vmem>>, vector<1x128xf32>,
    return
  }
  func.func @transform_0(%arg0: i32, %arg1: i32) -> (i32, i32, i32) {
    %c0_i32 = arith.constant 0 : i32
    %c0_i32_0 = arith.constant 0 : i32
    return %arg0, %arg1, %c0_i32 : i32, i32, i32
  }
  func.func @transform_1(%arg0: i32, %arg1: i32) -> (i32, i32, i32) {
    %c0_i32 = arith.constant 0 : i32
    %c0_i32_0 = arith.constant 0 : i32
    %c0_i32_1 = arith.constant 0 : i32
    return %arg0, %c0_i32, %c0_i32_0 : i32, i32, i32
  }
  func.func @transform_2(%arg0: i32, %arg1: i32) -> (i32, i32, i32) {
    %c0_i32 = arith.constant 0 : i32
    %c0_i32_0 = arith.constant 0 : i32
    return %arg0, %arg1, %c0_i32 : i32, i32, i32
  }
  func.func @transform_3(%arg0: i32, %arg1: i32) -> (i32, i32) {
    %c0_i32 = arith.constant 0 : i32
    %c0_i32_0 = arith.constant 0 : i32
    %c0_i32_1 = arith.constant 0 : i32
    return %c0_i32, %c0_i32_0 : i32, i32
  }
  func.func @transform_4(%arg0: i32, %arg1: i32) -> (i32, i32) {
    %c0_i32 = arith.constant 0 : i32
    %c0_i32_0 = arith.constant 0 : i32
    %c0_i32_1 = arith.constant 0 : i32
    return %c0_i32, %c0_i32_0 : i32, i32
  }
}

module attributes {stable_mosaic.version = 11 : i64} {
  func.func @_scale_shift_relu_kernel(%arg0: i32, %arg1: memref<8x128xf32, #tpu.memory_space<vmem>>, %arg2: memref<1x128xf32, #tpu.memory_space<vmem>>, %arg3: memref<1x128xf32, #tpu.memory_space<vmem>>, %arg4: memref<8x128xbf16, #tpu.memory_space<vmem>>) attributes {dimension_semantics = [#tpu.dimension_semantics<parallel>], iteration_bounds = array<i64: 4>, scalar_prefetch = 0 : i64, scratch_operands = 0 : i64, tpu.core_type = #tpu.core_type<tc>, window_params = [{transform_indices = @transform_0, window_bounds = array<i64: 8, 128>}, {pipeline_mode = #tpu.pipeline_mode<synchronous>, transform_indices = @transform_1, window_bounds = array<i64: 1, 128>}, {pipeline_mode = #tpu.pipeline_mode<synchronous>, transform_indices = @transform_2, window_bounds = array<i64: 1, 128>}, {transform_indices = @transform_3, window_bounds = array<i64: 8, 128>}]} {
    %c0 = arith.constant 0 : index
    %c0_0 = arith.constant 0 : index
    %0 = vector.load %arg1[%c0, %c0_0] : memref<8x128xf32, #tpu.memory_space<vmem>>, vector<8x128xf32>
    %c0_1 = arith.constant 0 : index
    %c0_2 = arith.constant 0 : index
    %1 = vector.load %arg2[%c0_1, %c0_2] : memref<1x128xf32, #tpu.memory_space<vmem>>, vector<1x128xf32>
    %2 = vector.broadcast %1 : vector<1x128xf32> to vector<8x128xf32>
    %3 = arith.mulf %0, %2 : vector<8x128xf32>
    %c0_3 = arith.constant 0 : index
    %c0_4 = arith.constant 0 : index
    %4 = vector.load %arg3[%c0_3, %c0_4] : memref<1x128xf32, #tpu.memory_space<vmem>>, vector<1x128xf32>
    %5 = vector.broadcast %4 : vector<1x128xf32> to vector<8x128xf32>
    %6 = arith.addf %3, %5 : vector<8x128xf32>
    %cst = arith.constant 0.000000e+00 : f32
    %7 = vector.broadcast %cst : f32 to vector<8x128xf32>
    %8 = arith.maximumf %6, %7 : vector<8x128xf32>
    %9 = arith.truncf %8 : vector<8x128xf32> to vector<8x128xbf16>
    %c0_5 = arith.constant 0 : index
    %c0_6 = arith.constant 0 : index
    %10 = vector.load %arg4[%c0_5, %c0_6] : memref<8x128xbf16, #tpu.memory_space<vmem>>, vector<8x128xbf16>
    tpu.vector_store %arg4[%c0_5, %c0_6], %9 {strides = array<i32>} : memref<8x128xbf16, #tpu.memory_space<vmem>>, vector<8x128xbf16>,
    return
  }
  func.func @transform_0(%arg0: i32) -> (i32, i32) {
    %c0_i32 = arith.constant 0 : i32
    %c0_i32_0 = arith.constant 0 : i32
    return %arg0, %c0_i32 : i32, i32
  }
  func.func @transform_1(%arg0: i32) -> (i32, i32) {
    %c0_i32 = arith.constant 0 : i32
    %c0_i32_0 = arith.constant 0 : i32
    %c0_i32_1 = arith.constant 0 : i32
    return %c0_i32, %c0_i32_0 : i32, i32
  }
  func.func @transform_2(%arg0: i32) -> (i32, i32) {
    %c0_i32 = arith.constant 0 : i32
    %c0_i32_0 = arith.constant 0 : i32
    %c0_i32_1 = arith.constant 0 : i32
    return %c0_i32, %c0_i32_0 : i32, i32
  }
  func.func @transform_3(%arg0: i32) -> (i32, i32) {
    %c0_i32 = arith.constant 0 : i32
    %c0_i32_0 = arith.constant 0 : i32
    return %arg0, %c0_i32 : i32, i32
  }
}

module attributes {stable_mosaic.version = 11 : i64} {
  func.func @_mm_stats_kernel(%arg0: i32, %arg1: i32, %arg2: memref<1x32x256xbf16, #tpu.memory_space<vmem>>, %arg3: memref<1x256x128xbf16, #tpu.memory_space<vmem>>, %arg4: memref<1x32x128xf32, #tpu.memory_space<vmem>>, %arg5: memref<1x128xf32, #tpu.memory_space<vmem>>, %arg6: memref<1x128xf32, #tpu.memory_space<vmem>>) attributes {dimension_semantics = [#tpu.dimension_semantics<arbitrary>, #tpu.dimension_semantics<arbitrary>], iteration_bounds = array<i64: 4, 1>, scalar_prefetch = 0 : i64, scratch_operands = 0 : i64, tpu.core_type = #tpu.core_type<tc>, window_params = [{transform_indices = @transform_0, window_bounds = array<i64: 1, 32, 256>}, {transform_indices = @transform_1, window_bounds = array<i64: 1, 256, 128>}, {transform_indices = @transform_2, window_bounds = array<i64: 1, 32, 128>}, {pipeline_mode = #tpu.pipeline_mode<synchronous>, transform_indices = @transform_3, window_bounds = array<i64: 1, 128>}, {pipeline_mode = #tpu.pipeline_mode<synchronous>, transform_indices = @transform_4, window_bounds = array<i64: 1, 128>}]} {
    %c0_i32 = arith.constant 0 : i32
    %0 = arith.cmpi eq, %arg0, %c0_i32 : i32
    %c0_i32_0 = arith.constant 0 : i32
    %1 = arith.cmpi eq, %arg1, %c0_i32_0 : i32
    %2 = arith.andi %0, %1 : i1
    %3 = arith.extui %2 : i1 to i32
    %c0_i32_1 = arith.constant 0 : i32
    %4 = arith.cmpi ne, %3, %c0_i32_1 : i32
    scf.if %4 {
      %cst_20 = arith.constant 0.000000e+00 : f32
      %24 = vector.broadcast %cst_20 : f32 to vector<1x128xf32>
      %c0_21 = arith.constant 0 : index
      %c0_22 = arith.constant 0 : index
      %25 = vector.load %arg5[%c0_21, %c0_22] : memref<1x128xf32, #tpu.memory_space<vmem>>, vector<1x128xf32>
      tpu.vector_store %arg5[%c0_21, %c0_22], %24 {strides = array<i32>} : memref<1x128xf32, #tpu.memory_space<vmem>>, vector<1x128xf32>,
      %cst_23 = arith.constant 0.000000e+00 : f32
      %26 = vector.broadcast %cst_23 : f32 to vector<1x128xf32>
      %c0_24 = arith.constant 0 : index
      %c0_25 = arith.constant 0 : index
      %27 = vector.load %arg6[%c0_24, %c0_25] : memref<1x128xf32, #tpu.memory_space<vmem>>, vector<1x128xf32>
      tpu.vector_store %arg6[%c0_24, %c0_25], %26 {strides = array<i32>} : memref<1x128xf32, #tpu.memory_space<vmem>>, vector<1x128xf32>,
    } else {
    }
    %c0 = arith.constant 0 : index
    %c0_2 = arith.constant 0 : index
    %c0_3 = arith.constant 0 : index
    %5 = vector.load %arg2[%c0, %c0_2, %c0_3] : memref<1x32x256xbf16, #tpu.memory_space<vmem>>, vector<1x32x256xbf16>
    %6 = vector.shape_cast %5 : vector<1x32x256xbf16> to vector<32x256xbf16>
    %c0_4 = arith.constant 0 : index
    %c0_5 = arith.constant 0 : index
    %c0_6 = arith.constant 0 : index
    %7 = vector.load %arg3[%c0_4, %c0_5, %c0_6] : memref<1x256x128xbf16, #tpu.memory_space<vmem>>, vector<1x256x128xbf16>
    %8 = vector.shape_cast %7 : vector<1x256x128xbf16> to vector<256x128xbf16>
    %cst = arith.constant dense<0.000000e+00> : vector<32x128xf32>
    %9 = tpu.matmul %6, %8, %cst {dimension_numbers = #tpu.dot_dimension_numbers<[1], [0], [0], [1], [0, 0, 1, 1], [], []>} : vector<32x256xbf16>, vector<256x128xbf16>, vector<32x128xf32> -> vector<32x128xf32>
    %c0_7 = arith.constant 0 : index
    %c0_8 = arith.constant 0 : index
    %c0_9 = arith.constant 0 : index
    %10 = vector.load %arg4[%c0_7, %c0_8, %c0_9] : memref<1x32x128xf32, #tpu.memory_space<vmem>>, vector<1x32x128xf32>
    %11 = vector.shape_cast %10 : vector<1x32x128xf32> to vector<32x128xf32>
    %12 = vector.shape_cast %9 : vector<32x128xf32> to vector<1x32x128xf32>
    tpu.vector_store %arg4[%c0_7, %c0_8, %c0_9], %12 {strides = array<i32>} : memref<1x32x128xf32, #tpu.memory_space<vmem>>, vector<1x32x128xf32>,
    %c0_10 = arith.constant 0 : index
    %c0_11 = arith.constant 0 : index
    %13 = vector.load %arg5[%c0_10, %c0_11] : memref<1x128xf32, #tpu.memory_space<vmem>>, vector<1x128xf32>
    %cst_12 = arith.constant dense<0.000000e+00> : vector<128xf32>
    %14 = vector.multi_reduction <add>, %9, %cst_12 [0] : vector<32x128xf32> to vector<128xf32>
    %15 = vector.shape_cast %14 : vector<128xf32> to vector<1x128xf32>
    %16 = arith.addf %13, %15 : vector<1x128xf32>
    %c0_13 = arith.constant 0 : index
    %c0_14 = arith.constant 0 : index
    %17 = vector.load %arg5[%c0_13, %c0_14] : memref<1x128xf32, #tpu.memory_space<vmem>>, vector<1x128xf32>
    tpu.vector_store %arg5[%c0_13, %c0_14], %16 {strides = array<i32>} : memref<1x128xf32, #tpu.memory_space<vmem>>, vector<1x128xf32>,
    %c0_15 = arith.constant 0 : index
    %c0_16 = arith.constant 0 : index
    %18 = vector.load %arg6[%c0_15, %c0_16] : memref<1x128xf32, #tpu.memory_space<vmem>>, vector<1x128xf32>
    %19 = arith.mulf %9, %9 : vector<32x128xf32>
    %cst_17 = arith.constant dense<0.000000e+00> : vector<128xf32>
    %20 = vector.multi_reduction <add>, %19, %cst_17 [0] : vector<32x128xf32> to vector<128xf32>
    %21 = vector.shape_cast %20 : vector<128xf32> to vector<1x128xf32>
    %22 = arith.addf %18, %21 : vector<1x128xf32>
    %c0_18 = arith.constant 0 : index
    %c0_19 = arith.constant 0 : index
    %23 = vector.load %arg6[%c0_18, %c0_19] : memref<1x128xf32, #tpu.memory_space<vmem>>, vector<1x128xf32>
    tpu.vector_store %arg6[%c0_18, %c0_19], %22 {strides = array<i32>} : memref<1x128xf32, #tpu.memory_space<vmem>>, vector<1x128xf32>,
    return
  }
  func.func @transform_0(%arg0: i32, %arg1: i32) -> (i32, i32, i32) {
    %c0_i32 = arith.constant 0 : i32
    %c0_i32_0 = arith.constant 0 : i32
    return %arg0, %arg1, %c0_i32 : i32, i32, i32
  }
  func.func @transform_1(%arg0: i32, %arg1: i32) -> (i32, i32, i32) {
    %c0_i32 = arith.constant 0 : i32
    %c0_i32_0 = arith.constant 0 : i32
    %c0_i32_1 = arith.constant 0 : i32
    return %arg0, %c0_i32, %c0_i32_0 : i32, i32, i32
  }
  func.func @transform_2(%arg0: i32, %arg1: i32) -> (i32, i32, i32) {
    %c0_i32 = arith.constant 0 : i32
    %c0_i32_0 = arith.constant 0 : i32
    return %arg0, %arg1, %c0_i32 : i32, i32, i32
  }
  func.func @transform_3(%arg0: i32, %arg1: i32) -> (i32, i32) {
    %c0_i32 = arith.constant 0 : i32
    %c0_i32_0 = arith.constant 0 : i32
    %c0_i32_1 = arith.constant 0 : i32
    return %c0_i32, %c0_i32_0 : i32, i32
  }
  func.func @transform_4(%arg0: i32, %arg1: i32) -> (i32, i32) {
    %c0_i32 = arith.constant 0 : i32
    %c0_i32_0 = arith.constant 0 : i32
    %c0_i32_1 = arith.constant 0 : i32
    return %c0_i32, %c0_i32_0 : i32, i32
  }
}

module attributes {stable_mosaic.version = 11 : i64} {
  func.func @_scale_shift_relu_kernel(%arg0: i32, %arg1: memref<32x128xf32, #tpu.memory_space<vmem>>, %arg2: memref<1x128xf32, #tpu.memory_space<vmem>>, %arg3: memref<1x128xf32, #tpu.memory_space<vmem>>, %arg4: memref<32x128xbf16, #tpu.memory_space<vmem>>) attributes {dimension_semantics = [#tpu.dimension_semantics<parallel>], iteration_bounds = array<i64: 4>, scalar_prefetch = 0 : i64, scratch_operands = 0 : i64, tpu.core_type = #tpu.core_type<tc>, window_params = [{transform_indices = @transform_0, window_bounds = array<i64: 32, 128>}, {pipeline_mode = #tpu.pipeline_mode<synchronous>, transform_indices = @transform_1, window_bounds = array<i64: 1, 128>}, {pipeline_mode = #tpu.pipeline_mode<synchronous>, transform_indices = @transform_2, window_bounds = array<i64: 1, 128>}, {transform_indices = @transform_3, window_bounds = array<i64: 32, 128>}]} {
    %c0 = arith.constant 0 : index
    %c0_0 = arith.constant 0 : index
    %0 = vector.load %arg1[%c0, %c0_0] : memref<32x128xf32, #tpu.memory_space<vmem>>, vector<32x128xf32>
    %c0_1 = arith.constant 0 : index
    %c0_2 = arith.constant 0 : index
    %1 = vector.load %arg2[%c0_1, %c0_2] : memref<1x128xf32, #tpu.memory_space<vmem>>, vector<1x128xf32>
    %2 = vector.broadcast %1 : vector<1x128xf32> to vector<32x128xf32>
    %3 = arith.mulf %0, %2 : vector<32x128xf32>
    %c0_3 = arith.constant 0 : index
    %c0_4 = arith.constant 0 : index
    %4 = vector.load %arg3[%c0_3, %c0_4] : memref<1x128xf32, #tpu.memory_space<vmem>>, vector<1x128xf32>
    %5 = vector.broadcast %4 : vector<1x128xf32> to vector<32x128xf32>
    %6 = arith.addf %3, %5 : vector<32x128xf32>
    %cst = arith.constant 0.000000e+00 : f32
    %7 = vector.broadcast %cst : f32 to vector<32x128xf32>
    %8 = arith.maximumf %6, %7 : vector<32x128xf32>
    %9 = arith.truncf %8 : vector<32x128xf32> to vector<32x128xbf16>
    %c0_5 = arith.constant 0 : index
    %c0_6 = arith.constant 0 : index
    %10 = vector.load %arg4[%c0_5, %c0_6] : memref<32x128xbf16, #tpu.memory_space<vmem>>, vector<32x128xbf16>
    tpu.vector_store %arg4[%c0_5, %c0_6], %9 {strides = array<i32>} : memref<32x128xbf16, #tpu.memory_space<vmem>>, vector<32x128xbf16>,
    return
  }
  func.func @transform_0(%arg0: i32) -> (i32, i32) {
    %c0_i32 = arith.constant 0 : i32
    %c0_i32_0 = arith.constant 0 : i32
    return %arg0, %c0_i32 : i32, i32
  }
  func.func @transform_1(%arg0: i32) -> (i32, i32) {
    %c0_i32 = arith.constant 0 : i32
    %c0_i32_0 = arith.constant 0 : i32
    %c0_i32_1 = arith.constant 0 : i32
    return %c0_i32, %c0_i32_0 : i32, i32
  }
  func.func @transform_2(%arg0: i32) -> (i32, i32) {
    %c0_i32 = arith.constant 0 : i32
    %c0_i32_0 = arith.constant 0 : i32
    %c0_i32_1 = arith.constant 0 : i32
    return %c0_i32, %c0_i32_0 : i32, i32
  }
  func.func @transform_3(%arg0: i32) -> (i32, i32) {
    %c0_i32 = arith.constant 0 : i32
    %c0_i32_0 = arith.constant 0 : i32
    return %arg0, %c0_i32 : i32, i32
  }
}

module attributes {stable_mosaic.version = 11 : i64} {
  func.func @_scale_shift_relu_kernel(%arg0: i32, %arg1: memref<128x128xf32, #tpu.memory_space<vmem>>, %arg2: memref<1x128xf32, #tpu.memory_space<vmem>>, %arg3: memref<1x128xf32, #tpu.memory_space<vmem>>, %arg4: memref<128x128xbf16, #tpu.memory_space<vmem>>) attributes {dimension_semantics = [#tpu.dimension_semantics<parallel>], iteration_bounds = array<i64: 4>, scalar_prefetch = 0 : i64, scratch_operands = 0 : i64, tpu.core_type = #tpu.core_type<tc>, window_params = [{transform_indices = @transform_0, window_bounds = array<i64: 128, 128>}, {pipeline_mode = #tpu.pipeline_mode<synchronous>, transform_indices = @transform_1, window_bounds = array<i64: 1, 128>}, {pipeline_mode = #tpu.pipeline_mode<synchronous>, transform_indices = @transform_2, window_bounds = array<i64: 1, 128>}, {transform_indices = @transform_3, window_bounds = array<i64: 128, 128>}]} {
    %c0 = arith.constant 0 : index
    %c0_0 = arith.constant 0 : index
    %0 = vector.load %arg1[%c0, %c0_0] : memref<128x128xf32, #tpu.memory_space<vmem>>, vector<128x128xf32>
    %c0_1 = arith.constant 0 : index
    %c0_2 = arith.constant 0 : index
    %1 = vector.load %arg2[%c0_1, %c0_2] : memref<1x128xf32, #tpu.memory_space<vmem>>, vector<1x128xf32>
    %2 = vector.broadcast %1 : vector<1x128xf32> to vector<128x128xf32>
    %3 = arith.mulf %0, %2 : vector<128x128xf32>
    %c0_3 = arith.constant 0 : index
    %c0_4 = arith.constant 0 : index
    %4 = vector.load %arg3[%c0_3, %c0_4] : memref<1x128xf32, #tpu.memory_space<vmem>>, vector<1x128xf32>
    %5 = vector.broadcast %4 : vector<1x128xf32> to vector<128x128xf32>
    %6 = arith.addf %3, %5 : vector<128x128xf32>
    %cst = arith.constant 0.000000e+00 : f32
    %7 = vector.broadcast %cst : f32 to vector<128x128xf32>
    %8 = arith.maximumf %6, %7 : vector<128x128xf32>
    %9 = arith.truncf %8 : vector<128x128xf32> to vector<128x128xbf16>
    %c0_5 = arith.constant 0 : index
    %c0_6 = arith.constant 0 : index
    %10 = vector.load %arg4[%c0_5, %c0_6] : memref<128x128xbf16, #tpu.memory_space<vmem>>, vector<128x128xbf16>
    tpu.vector_store %arg4[%c0_5, %c0_6], %9 {strides = array<i32>} : memref<128x128xbf16, #tpu.memory_space<vmem>>, vector<128x128xbf16>,
    return
  }
  func.func @transform_0(%arg0: i32) -> (i32, i32) {
    %c0_i32 = arith.constant 0 : i32
    %c0_i32_0 = arith.constant 0 : i32
    return %arg0, %c0_i32 : i32, i32
  }
  func.func @transform_1(%arg0: i32) -> (i32, i32) {
    %c0_i32 = arith.constant 0 : i32
    %c0_i32_0 = arith.constant 0 : i32
    %c0_i32_1 = arith.constant 0 : i32
    return %c0_i32, %c0_i32_0 : i32, i32
  }
  func.func @transform_2(%arg0: i32) -> (i32, i32) {
    %c0_i32 = arith.constant 0 : i32
    %c0_i32_0 = arith.constant 0 : i32
    %c0_i32_1 = arith.constant 0 : i32
    return %c0_i32, %c0_i32_0 : i32, i32
  }
  func.func @transform_3(%arg0: i32) -> (i32, i32) {
    %c0_i32 = arith.constant 0 : i32
    %c0_i32_0 = arith.constant 0 : i32
    return %arg0, %c0_i32 : i32, i32
  }
}

module attributes {stable_mosaic.version = 11 : i64} {
  func.func @_mm_stats_kernel(%arg0: i32, %arg1: i32, %arg2: memref<1x128x128xbf16, #tpu.memory_space<vmem>>, %arg3: memref<1x128x128xbf16, #tpu.memory_space<vmem>>, %arg4: memref<1x128x128xf32, #tpu.memory_space<vmem>>, %arg5: memref<1x128xf32, #tpu.memory_space<vmem>>, %arg6: memref<1x128xf32, #tpu.memory_space<vmem>>) attributes {dimension_semantics = [#tpu.dimension_semantics<arbitrary>, #tpu.dimension_semantics<arbitrary>], iteration_bounds = array<i64: 4, 1>, scalar_prefetch = 0 : i64, scratch_operands = 0 : i64, tpu.core_type = #tpu.core_type<tc>, window_params = [{transform_indices = @transform_0, window_bounds = array<i64: 1, 128, 128>}, {transform_indices = @transform_1, window_bounds = array<i64: 1, 128, 128>}, {transform_indices = @transform_2, window_bounds = array<i64: 1, 128, 128>}, {pipeline_mode = #tpu.pipeline_mode<synchronous>, transform_indices = @transform_3, window_bounds = array<i64: 1, 128>}, {pipeline_mode = #tpu.pipeline_mode<synchronous>, transform_indices = @transform_4, window_bounds = array<i64: 1, 128>}]} {
    %c0_i32 = arith.constant 0 : i32
    %0 = arith.cmpi eq, %arg0, %c0_i32 : i32
    %c0_i32_0 = arith.constant 0 : i32
    %1 = arith.cmpi eq, %arg1, %c0_i32_0 : i32
    %2 = arith.andi %0, %1 : i1
    %3 = arith.extui %2 : i1 to i32
    %c0_i32_1 = arith.constant 0 : i32
    %4 = arith.cmpi ne, %3, %c0_i32_1 : i32
    scf.if %4 {
      %cst_20 = arith.constant 0.000000e+00 : f32
      %24 = vector.broadcast %cst_20 : f32 to vector<1x128xf32>
      %c0_21 = arith.constant 0 : index
      %c0_22 = arith.constant 0 : index
      %25 = vector.load %arg5[%c0_21, %c0_22] : memref<1x128xf32, #tpu.memory_space<vmem>>, vector<1x128xf32>
      tpu.vector_store %arg5[%c0_21, %c0_22], %24 {strides = array<i32>} : memref<1x128xf32, #tpu.memory_space<vmem>>, vector<1x128xf32>,
      %cst_23 = arith.constant 0.000000e+00 : f32
      %26 = vector.broadcast %cst_23 : f32 to vector<1x128xf32>
      %c0_24 = arith.constant 0 : index
      %c0_25 = arith.constant 0 : index
      %27 = vector.load %arg6[%c0_24, %c0_25] : memref<1x128xf32, #tpu.memory_space<vmem>>, vector<1x128xf32>
      tpu.vector_store %arg6[%c0_24, %c0_25], %26 {strides = array<i32>} : memref<1x128xf32, #tpu.memory_space<vmem>>, vector<1x128xf32>,
    } else {
    }
    %c0 = arith.constant 0 : index
    %c0_2 = arith.constant 0 : index
    %c0_3 = arith.constant 0 : index
    %5 = vector.load %arg2[%c0, %c0_2, %c0_3] : memref<1x128x128xbf16, #tpu.memory_space<vmem>>, vector<1x128x128xbf16>
    %6 = vector.shape_cast %5 : vector<1x128x128xbf16> to vector<128x128xbf16>
    %c0_4 = arith.constant 0 : index
    %c0_5 = arith.constant 0 : index
    %c0_6 = arith.constant 0 : index
    %7 = vector.load %arg3[%c0_4, %c0_5, %c0_6] : memref<1x128x128xbf16, #tpu.memory_space<vmem>>, vector<1x128x128xbf16>
    %8 = vector.shape_cast %7 : vector<1x128x128xbf16> to vector<128x128xbf16>
    %cst = arith.constant dense<0.000000e+00> : vector<128x128xf32>
    %9 = tpu.matmul %6, %8, %cst {dimension_numbers = #tpu.dot_dimension_numbers<[1], [0], [0], [1], [0, 0, 1, 1], [], []>} : vector<128x128xbf16>, vector<128x128xbf16>, vector<128x128xf32> -> vector<128x128xf32>
    %c0_7 = arith.constant 0 : index
    %c0_8 = arith.constant 0 : index
    %c0_9 = arith.constant 0 : index
    %10 = vector.load %arg4[%c0_7, %c0_8, %c0_9] : memref<1x128x128xf32, #tpu.memory_space<vmem>>, vector<1x128x128xf32>
    %11 = vector.shape_cast %10 : vector<1x128x128xf32> to vector<128x128xf32>
    %12 = vector.shape_cast %9 : vector<128x128xf32> to vector<1x128x128xf32>
    tpu.vector_store %arg4[%c0_7, %c0_8, %c0_9], %12 {strides = array<i32>} : memref<1x128x128xf32, #tpu.memory_space<vmem>>, vector<1x128x128xf32>,
    %c0_10 = arith.constant 0 : index
    %c0_11 = arith.constant 0 : index
    %13 = vector.load %arg5[%c0_10, %c0_11] : memref<1x128xf32, #tpu.memory_space<vmem>>, vector<1x128xf32>
    %cst_12 = arith.constant dense<0.000000e+00> : vector<128xf32>
    %14 = vector.multi_reduction <add>, %9, %cst_12 [0] : vector<128x128xf32> to vector<128xf32>
    %15 = vector.shape_cast %14 : vector<128xf32> to vector<1x128xf32>
    %16 = arith.addf %13, %15 : vector<1x128xf32>
    %c0_13 = arith.constant 0 : index
    %c0_14 = arith.constant 0 : index
    %17 = vector.load %arg5[%c0_13, %c0_14] : memref<1x128xf32, #tpu.memory_space<vmem>>, vector<1x128xf32>
    tpu.vector_store %arg5[%c0_13, %c0_14], %16 {strides = array<i32>} : memref<1x128xf32, #tpu.memory_space<vmem>>, vector<1x128xf32>,
    %c0_15 = arith.constant 0 : index
    %c0_16 = arith.constant 0 : index
    %18 = vector.load %arg6[%c0_15, %c0_16] : memref<1x128xf32, #tpu.memory_space<vmem>>, vector<1x128xf32>
    %19 = arith.mulf %9, %9 : vector<128x128xf32>
    %cst_17 = arith.constant dense<0.000000e+00> : vector<128xf32>
    %20 = vector.multi_reduction <add>, %19, %cst_17 [0] : vector<128x128xf32> to vector<128xf32>
    %21 = vector.shape_cast %20 : vector<128xf32> to vector<1x128xf32>
    %22 = arith.addf %18, %21 : vector<1x128xf32>
    %c0_18 = arith.constant 0 : index
    %c0_19 = arith.constant 0 : index
    %23 = vector.load %arg6[%c0_18, %c0_19] : memref<1x128xf32, #tpu.memory_space<vmem>>, vector<1x128xf32>
    tpu.vector_store %arg6[%c0_18, %c0_19], %22 {strides = array<i32>} : memref<1x128xf32, #tpu.memory_space<vmem>>, vector<1x128xf32>,
    return
  }
  func.func @transform_0(%arg0: i32, %arg1: i32) -> (i32, i32, i32) {
    %c0_i32 = arith.constant 0 : i32
    %c0_i32_0 = arith.constant 0 : i32
    return %arg0, %arg1, %c0_i32 : i32, i32, i32
  }
  func.func @transform_1(%arg0: i32, %arg1: i32) -> (i32, i32, i32) {
    %c0_i32 = arith.constant 0 : i32
    %c0_i32_0 = arith.constant 0 : i32
    %c0_i32_1 = arith.constant 0 : i32
    return %arg0, %c0_i32, %c0_i32_0 : i32, i32, i32
  }
  func.func @transform_2(%arg0: i32, %arg1: i32) -> (i32, i32, i32) {
    %c0_i32 = arith.constant 0 : i32
    %c0_i32_0 = arith.constant 0 : i32
    return %arg0, %arg1, %c0_i32 : i32, i32, i32
  }
  func.func @transform_3(%arg0: i32, %arg1: i32) -> (i32, i32) {
    %c0_i32 = arith.constant 0 : i32
    %c0_i32_0 = arith.constant 0 : i32
    %c0_i32_1 = arith.constant 0 : i32
    return %c0_i32, %c0_i32_0 : i32, i32
  }
  func.func @transform_4(%arg0: i32, %arg1: i32) -> (i32, i32) {
    %c0_i32 = arith.constant 0 : i32
    %c0_i32_0 = arith.constant 0 : i32
    %c0_i32_1 = arith.constant 0 : i32
    return %c0_i32, %c0_i32_0 : i32, i32
  }
}

module attributes {stable_mosaic.version = 11 : i64} {
  func.func @_mm_bias_tanh_kernel(%arg0: i32, %arg1: i32, %arg2: memref<1x512x64xbf16, #tpu.memory_space<vmem>>, %arg3: memref<1x64x128xbf16, #tpu.memory_space<vmem>>, %arg4: memref<1x128xf32, #tpu.memory_space<vmem>>, %arg5: memref<1x512x128xf32, #tpu.memory_space<vmem>>) attributes {dimension_semantics = [#tpu.dimension_semantics<parallel>, #tpu.dimension_semantics<parallel>], iteration_bounds = array<i64: 4, 1>, scalar_prefetch = 0 : i64, scratch_operands = 0 : i64, tpu.core_type = #tpu.core_type<tc>, window_params = [{transform_indices = @transform_0, window_bounds = array<i64: 1, 512, 64>}, {transform_indices = @transform_1, window_bounds = array<i64: 1, 64, 128>}, {pipeline_mode = #tpu.pipeline_mode<synchronous>, transform_indices = @transform_2, window_bounds = array<i64: 1, 128>}, {transform_indices = @transform_3, window_bounds = array<i64: 1, 512, 128>}]} {
    %c0 = arith.constant 0 : index
    %c0_0 = arith.constant 0 : index
    %c0_1 = arith.constant 0 : index
    %0 = vector.load %arg2[%c0, %c0_0, %c0_1] : memref<1x512x64xbf16, #tpu.memory_space<vmem>>, vector<1x512x64xbf16>
    %1 = vector.shape_cast %0 : vector<1x512x64xbf16> to vector<512x64xbf16>
    %c0_2 = arith.constant 0 : index
    %c0_3 = arith.constant 0 : index
    %c0_4 = arith.constant 0 : index
    %2 = vector.load %arg3[%c0_2, %c0_3, %c0_4] : memref<1x64x128xbf16, #tpu.memory_space<vmem>>, vector<1x64x128xbf16>
    %3 = vector.shape_cast %2 : vector<1x64x128xbf16> to vector<64x128xbf16>
    %cst = arith.constant dense<0.000000e+00> : vector<512x128xf32>
    %4 = tpu.matmul %1, %3, %cst {dimension_numbers = #tpu.dot_dimension_numbers<[1], [0], [0], [1], [0, 0, 1, 1], [], []>} : vector<512x64xbf16>, vector<64x128xbf16>, vector<512x128xf32> -> vector<512x128xf32>
    %c0_5 = arith.constant 0 : index
    %c0_6 = arith.constant 0 : index
    %5 = vector.load %arg4[%c0_5, %c0_6] : memref<1x128xf32, #tpu.memory_space<vmem>>, vector<1x128xf32>
    %6 = vector.broadcast %5 : vector<1x128xf32> to vector<512x128xf32>
    %7 = arith.addf %4, %6 : vector<512x128xf32>
    %8 = math.tanh %7 : vector<512x128xf32>
    %c0_7 = arith.constant 0 : index
    %c0_8 = arith.constant 0 : index
    %c0_9 = arith.constant 0 : index
    %9 = vector.load %arg5[%c0_7, %c0_8, %c0_9] : memref<1x512x128xf32, #tpu.memory_space<vmem>>, vector<1x512x128xf32>
    %10 = vector.shape_cast %9 : vector<1x512x128xf32> to vector<512x128xf32>
    %11 = vector.shape_cast %8 : vector<512x128xf32> to vector<1x512x128xf32>
    tpu.vector_store %arg5[%c0_7, %c0_8, %c0_9], %11 {strides = array<i32>} : memref<1x512x128xf32, #tpu.memory_space<vmem>>, vector<1x512x128xf32>,
    return
  }
  func.func @transform_0(%arg0: i32, %arg1: i32) -> (i32, i32, i32) {
    %c0_i32 = arith.constant 0 : i32
    %c0_i32_0 = arith.constant 0 : i32
    return %arg0, %arg1, %c0_i32 : i32, i32, i32
  }
  func.func @transform_1(%arg0: i32, %arg1: i32) -> (i32, i32, i32) {
    %c0_i32 = arith.constant 0 : i32
    %c0_i32_0 = arith.constant 0 : i32
    %c0_i32_1 = arith.constant 0 : i32
    return %arg0, %c0_i32, %c0_i32_0 : i32, i32, i32
  }
  func.func @transform_2(%arg0: i32, %arg1: i32) -> (i32, i32) {
    %c0_i32 = arith.constant 0 : i32
    %c0_i32_0 = arith.constant 0 : i32
    %c0_i32_1 = arith.constant 0 : i32
    return %c0_i32, %c0_i32_0 : i32, i32
  }
  func.func @transform_3(%arg0: i32, %arg1: i32) -> (i32, i32, i32) {
    %c0_i32 = arith.constant 0 : i32
    %c0_i32_0 = arith.constant 0 : i32
    return %arg0, %arg1, %c0_i32 : i32, i32, i32
  }
}

</mosaic_0001>

<bundles_post_ra>
// kernel: _lambda_.16
= control target key start
LH: loop header
LB: loop body
LE: loop exit
PB: predicated region body
PF: predicated region fallthrough
CT: control target
= control target key end

     0   :  { %s1375_s0 = inlined_call_operand.vmem [shape: f32[512,128], index: 0, kind: input, shape index: {}]   ;;  %s1376_s1 = inlined_call_operand.vmem [shape: f32[1,128], index: 1, kind: input, shape index: {}]   ;;  %s1377_s2 = inlined_call_operand.vmem [shape: f32[1,128], index: 2, kind: input, shape index: {}]   ;;  %s1378_s3 = inlined_call_operand.vmem [shape: bf16[512,128], index: 3, kind: output, shape index: {}]  }
   0x1   :  { %v14_v0 = vld [vmem:[%s1375_s0] sm:$0xff]  ;;  %v15_v1 = vld [vmem:[%s1375_s0 + $0x8] sm:$0xff]  ;;  %v16_v6 = vld [vmem:[%s1375_s0 + $0x10] sm:$0xff] }
   0x2   :  { %v958_v2 = vld [vmem:[%s1376_s1] ss:$0 sm:$0xff]  ;;  %v17_v7 = vld [vmem:[%s1375_s0 + $0x18] sm:$0xff]  ;;  %v19_v11 = vld [vmem:[%s1375_s0 + $0x28] sm:$0xff] }
   0x3   :  { %v85_v3 = vmul.f32 %v958_v2, %v14_v0  ;;  %v86_v4 = vmul.f32 %v958_v2, %v15_v1  ;;  %v965_v5 = vld [vmem:[%s1377_s2] ss:$0 sm:$0xff]  ;;  %v87_v8 = vmul.f32 %v958_v2, %v16_v6  ;;  %v88_v9 = vmul.f32 %v958_v2, %v17_v7  ;;  %v20_v12 = vld [vmem:[%s1375_s0 + $0x30] sm:$0xff]  ;;  %v21_v17 = vld [vmem:[%s1375_s0 + $0x38] sm:$0xff] }
   0x4   :  { %v18_v10 = vld [vmem:[%s1375_s0 + $0x20] sm:$0xff]  ;;  %v90_v16 = vmul.f32 %v958_v2, %v19_v11  ;;  %v91_v20 = vmul.f32 %v958_v2, %v20_v12  ;;  %v92_v21 = vmul.f32 %v958_v2, %v21_v17  ;;  %v23_v27 = vld [vmem:[%s1375_s0 + $0x48] sm:$0xff]  ;;  %v24_v32 = vld [vmem:[%s1375_s0 + $0x50] sm:$0xff] }
   0x5   :  { %v156_v13 = vadd.f32 %v965_v5, %v85_v3  ;;  %v157_v14 = vadd.f32 %v965_v5, %v86_v4  ;;  %v89_v15 = vmul.f32 %v958_v2, %v18_v10  ;;  %v158_v18 = vadd.f32 %v965_v5, %v87_v8  ;;  %v22_v22 = vld [vmem:[%s1375_s0 + $0x40] sm:$0xff]  ;;  %v25_v33 = vld [vmem:[%s1375_s0 + $0x58] sm:$0xff]  ;;  %v27_v39 = vld [vmem:[%s1375_s0 + $0x68] sm:$0xff] }
   0x6   :  { %v159_v19 = vadd.f32 %v965_v5, %v88_v9  ;;  %v161_v26 = vadd.f32 %v965_v5, %v90_v16  ;;  %v162_v30 = vadd.f32 %v965_v5, %v91_v20  ;;  %v163_v31 = vadd.f32 %v965_v5, %v92_v21  ;;  %v26_v38 = vld [vmem:[%s1375_s0 + $0x60] sm:$0xff]  ;;  %v28_v44 = vld [vmem:[%s1375_s0 + $0x70] sm:$0xff]  ;;  %v29_v49 = vld [vmem:[%s1375_s0 + $0x78] sm:$0xff] }
   0x7   :  { %v220_v23 = vmax.f32 %v156_v13, 0.0  ;;  %v221_v24 = vmax.f32 %v157_v14, 0.0  ;;  %v160_v25 = vadd.f32 %v965_v5, %v89_v15  ;;  %v222_v28 = vmax.f32 %v158_v18, 0.0  ;;  %v30_v54 = vld [vmem:[%s1375_s0 + $0x80] sm:$0xff]  ;;  %v31_v63 = vld [vmem:[%s1375_s0 + $0x88] sm:$0xff]  ;;  %v32_v6 = vld [vmem:[%s1375_s0 + $0x90] sm:$0xff] }
   0x8   :  { %v223_v29 = vmax.f32 %v159_v19, 0.0  ;;  %v225_v36 = vmax.f32 %v161_v26, 0.0  ;;  %v93_v37 = vmul.f32 %v958_v2, %v22_v22  ;;  %v226_v41 = vmax.f32 %v162_v30, 0.0  ;;  %v33_v7 = vld [vmem:[%s1375_s0 + $0x98] sm:$0xff]  ;;  %v34_v12 = vld [vmem:[%s1375_s0 + $0xa0] sm:$0xff]  ;;  %v35_v13 = vld [vmem:[%s1375_s0 + $0xa8] sm:$0xff] }
   0x9   :  { %v741_v34 = vpack.c.bf16 %v221_v24, %v220_v23  ;;  %v224_v35 = vmax.f32 %v160_v25, 0.0  ;;  %v227_v42 = vmax.f32 %v163_v31, 0.0  ;;  %v94_v43 = vmul.f32 %v958_v2, %v23_v27  ;;  %v36_v18 = vld [vmem:[%s1375_s0 + $0xb0] sm:$0xff]  ;;  %v37_v23 = vld [vmem:[%s1375_s0 + $0xb8] sm:$0xff] }
   0xa   :  { %v746_v40 = vpack.c.bf16 %v223_v29, %v222_v28  ;;  %v164_v46 = vadd.f32 %v965_v5, %v93_v37  ;;  %v95_v47 = vmul.f32 %v958_v2, %v24_v32  ;;  %v96_v48 = vmul.f32 %v958_v2, %v25_v33  ;;  %v38_v28 = vld [vmem:[%s1375_s0 + $0xc0] sm:$0xff]  ;;  %v39_v37 = vld [vmem:[%s1375_s0 + $0xc8] sm:$0xff] }
   0xb   :  { %742 = vst [vmem:[%s1378_s3] sm:$0xff] %v741_v34   ;;  %v751_v45 = vpack.c.bf16 %v225_v36, %v224_v35  ;;  %v756_v50 = vpack.c.bf16 %v227_v42, %v226_v41  ;;  %v165_v51 = vadd.f32 %v965_v5, %v94_v43  ;;  %v97_v52 = vmul.f32 %v958_v2, %v26_v38  ;;  %v40_v42 = vld [vmem:[%s1375_s0 + $0xd0] sm:$0xff]  ;;  %v41_v43 = vld [vmem:[%s1375_s0 + $0xd8] sm:$0xff] }
   0xc   :  { %898 = vst [vmem:[%s1378_s3 + $0x8] sm:$0xff] %v746_v40   ;;  %v98_v53 = vmul.f32 %v958_v2, %v27_v39  ;;  %v228_v55 = vmax.f32 %v164_v46, 0.0  ;;  %v166_v56 = vadd.f32 %v965_v5, %v95_v47  ;;  %v167_v57 = vadd.f32 %v965_v5, %v96_v48  ;;  %v42_v48 = vld [vmem:[%s1375_s0 + $0xe0] sm:$0xff] }
   0xd   :  { %899 = vst [vmem:[%s1378_s3 + $0x10] sm:$0xff] %v751_v45   ;;  %v99_v58 = vmul.f32 %v958_v2, %v28_v44  ;;  %900 = vst [vmem:[%s1378_s3 + $0x18] sm:$0xff] %v756_v50   ;;  %v229_v59 = vmax.f32 %v165_v51, 0.0  ;;  %v168_v60 = vadd.f32 %v965_v5, %v97_v52  ;;  %v100_v62 = vmul.f32 %v958_v2, %v29_v49  ;;  %v43_v49 = vld [vmem:[%s1375_s0 + $0xe8] sm:$0xff] }
   0xe   :  { %v169_v61 = vadd.f32 %v965_v5, %v98_v53  ;;  %v230_v0 = vmax.f32 %v166_v56, 0.0  ;;  %v231_v1 = vmax.f32 %v167_v57, 0.0  ;;  %v101_v4 = vmul.f32 %v958_v2, %v30_v54  ;;  %v44_v54 = vld [vmem:[%s1375_s0 + $0xf0] sm:$0xff] }
   0xf   :  { %v170_v3 = vadd.f32 %v965_v5, %v99_v58  ;;  %v761_v8 = vpack.c.bf16 %v229_v59, %v228_v55  ;;  %v232_v9 = vmax.f32 %v168_v60, 0.0  ;;  %v171_v11 = vadd.f32 %v965_v5, %v100_v62  ;;  %v45_v59 = vld [vmem:[%s1375_s0 + $0xf8] sm:$0xff] }
  0x10   :  { %v233_v10 = vmax.f32 %v169_v61, 0.0  ;;  %v766_v14 = vpack.c.bf16 %v231_v1, %v230_v0  ;;  %v102_v16 = vmul.f32 %v958_v2, %v31_v63  ;;  %v172_v17 = vadd.f32 %v965_v5, %v101_v4  ;;  %v46_v0 = vld [vmem:[%s1375_s0 + $0x100] sm:$0xff] }
  0x11   :  { %v234_v15 = vmax.f32 %v170_v3, 0.0  ;;  %901 = vst [vmem:[%s1378_s3 + $0x20] sm:$0xff] %v761_v8   ;;  %v235_v20 = vmax.f32 %v171_v11, 0.0  ;;  %v103_v21 = vmul.f32 %v958_v2, %v32_v6  ;;  %v104_v22 = vmul.f32 %v958_v2, %v33_v7  ;;  %v47_v11 = vld [vmem:[%s1375_s0 + $0x108] sm:$0xff] }
  0x12   :  { %v771_v19 = vpack.c.bf16 %v233_v10, %v232_v9  ;;  %902 = vst [vmem:[%s1378_s3 + $0x28] sm:$0xff] %v766_v14   ;;  %v173_v24 = vadd.f32 %v965_v5, %v102_v16  ;;  %v236_v25 = vmax.f32 %v172_v17, 0.0  ;;  %v105_v26 = vmul.f32 %v958_v2, %v34_v12  ;;  %v48_v16 = vld [vmem:[%s1375_s0 + $0x110] sm:$0xff]  ;;  %v49_v17 = vld [vmem:[%s1375_s0 + $0x118] sm:$0xff] }
  0x13   :  { %v106_v27 = vmul.f32 %v958_v2, %v35_v13  ;;  %v776_v29 = vpack.c.bf16 %v235_v20, %v234_v15  ;;  %v174_v30 = vadd.f32 %v965_v5, %v103_v21  ;;  %v175_v31 = vadd.f32 %v965_v5, %v104_v22  ;;  %v50_v22 = vld [vmem:[%s1375_s0 + $0x120] sm:$0xff] }
  0x14   :  { %903 = vst [vmem:[%s1378_s3 + $0x30] sm:$0xff] %v771_v19   ;;  %v107_v32 = vmul.f32 %v958_v2, %v36_v18  ;;  %v237_v33 = vmax.f32 %v173_v24, 0.0  ;;  %v176_v34 = vadd.f32 %v965_v5, %v105_v26  ;;  %v108_v36 = vmul.f32 %v958_v2, %v37_v23  ;;  %v51_v23 = vld [vmem:[%s1375_s0 + $0x128] sm:$0xff] }
  0x15   :  { %v177_v35 = vadd.f32 %v965_v5, %v106_v27  ;;  %904 = vst [vmem:[%s1378_s3 + $0x38] sm:$0xff] %v776_v29   ;;  %v238_v38 = vmax.f32 %v174_v30, 0.0  ;;  %v239_v39 = vmax.f32 %v175_v31, 0.0  ;;  %v109_v41 = vmul.f32 %v958_v2, %v38_v28  ;;  %v52_v28 = vld [vmem:[%s1375_s0 + $0x130] sm:$0xff] }
  0x16   :  { %v178_v40 = vadd.f32 %v965_v5, %v107_v32  ;;  %v781_v44 = vpack.c.bf16 %v237_v33, %v236_v25  ;;  %v240_v45 = vmax.f32 %v176_v34, 0.0  ;;  %v179_v47 = vadd.f32 %v965_v5, %v108_v36  ;;  %v53_v33 = vld [vmem:[%s1375_s0 + $0x138] sm:$0xff] }
  0x17   :  { %v241_v46 = vmax.f32 %v177_v35, 0.0  ;;  %v786_v50 = vpack.c.bf16 %v239_v39, %v238_v38  ;;  %v110_v52 = vmul.f32 %v958_v2, %v39_v37  ;;  %v180_v53 = vadd.f32 %v965_v5, %v109_v41  ;;  %v54_v38 = vld [vmem:[%s1375_s0 + $0x140] sm:$0xff] }
  0x18   :  { %v242_v51 = vmax.f32 %v178_v40, 0.0  ;;  %905 = vst [vmem:[%s1378_s3 + $0x40] sm:$0xff] %v781_v44   ;;  %v243_v56 = vmax.f32 %v179_v47, 0.0  ;;  %v111_v57 = vmul.f32 %v958_v2, %v40_v42  ;;  %v112_v58 = vmul.f32 %v958_v2, %v41_v43  ;;  %v55_v47 = vld [vmem:[%s1375_s0 + $0x148] sm:$0xff] }
  0x19   :  { %v791_v55 = vpack.c.bf16 %v241_v46, %v240_v45  ;;  %906 = vst [vmem:[%s1378_s3 + $0x48] sm:$0xff] %v786_v50   ;;  %v181_v60 = vadd.f32 %v965_v5, %v110_v52  ;;  %v244_v61 = vmax.f32 %v180_v53, 0.0  ;;  %v113_v62 = vmul.f32 %v958_v2, %v42_v48  ;;  %v56_v52 = vld [vmem:[%s1375_s0 + $0x150] sm:$0xff]  ;;  %v57_v53 = vld [vmem:[%s1375_s0 + $0x158] sm:$0xff] }
  0x1a   :  { %v114_v63 = vmul.f32 %v958_v2, %v43_v49  ;;  %v796_v1 = vpack.c.bf16 %v243_v56, %v242_v51  ;;  %v182_v3 = vadd.f32 %v965_v5, %v111_v57  ;;  %v183_v4 = vadd.f32 %v965_v5, %v112_v58  ;;  %v58_v58 = vld [vmem:[%s1375_s0 + $0x160] sm:$0xff] }
  0x1b   :  { %907 = vst [vmem:[%s1378_s3 + $0x50] sm:$0xff] %v791_v55   ;;  %v115_v6 = vmul.f32 %v958_v2, %v44_v54  ;;  %v245_v7 = vmax.f32 %v181_v60, 0.0  ;;  %v184_v8 = vadd.f32 %v965_v5, %v113_v62  ;;  %v116_v10 = vmul.f32 %v958_v2, %v45_v59  ;;  %v59_v59 = vld [vmem:[%s1375_s0 + $0x168] sm:$0xff] }
  0x1c   :  { %v185_v9 = vadd.f32 %v965_v5, %v114_v63  ;;  %908 = vst [vmem:[%s1378_s3 + $0x58] sm:$0xff] %v796_v1   ;;  %v246_v12 = vmax.f32 %v182_v3, 0.0  ;;  %v247_v13 = vmax.f32 %v183_v4, 0.0  ;;  %v117_v15 = vmul.f32 %v958_v2, %v46_v0  ;;  %v60_v0 = vld [vmem:[%s1375_s0 + $0x170] sm:$0xff] }
  0x1d   :  { %v186_v14 = vadd.f32 %v965_v5, %v115_v6  ;;  %v801_v18 = vpack.c.bf16 %v245_v7, %v244_v61  ;;  %v248_v19 = vmax.f32 %v184_v8, 0.0  ;;  %v187_v21 = vadd.f32 %v965_v5, %v116_v10  ;;  %v61_v7 = vld [vmem:[%s1375_s0 + $0x178] sm:$0xff] }
  0x1e   :  { %v249_v20 = vmax.f32 %v185_v9, 0.0  ;;  %v806_v24 = vpack.c.bf16 %v247_v13, %v246_v12  ;;  %v118_v26 = vmul.f32 %v958_v2, %v47_v11  ;;  %v188_v27 = vadd.f32 %v965_v5, %v117_v15  ;;  %v62_v12 = vld [vmem:[%s1375_s0 + $0x180] sm:$0xff] }
  0x1f   :  { %v250_v25 = vmax.f32 %v186_v14, 0.0  ;;  %909 = vst [vmem:[%s1378_s3 + $0x60] sm:$0xff] %v801_v18   ;;  %v251_v30 = vmax.f32 %v187_v21, 0.0  ;;  %v119_v31 = vmul.f32 %v958_v2, %v48_v16  ;;  %v120_v32 = vmul.f32 %v958_v2, %v49_v17  ;;  %v63_v21 = vld [vmem:[%s1375_s0 + $0x188] sm:$0xff] }
  0x20   :  { %v811_v29 = vpack.c.bf16 %v249_v20, %v248_v19  ;;  %910 = vst [vmem:[%s1378_s3 + $0x68] sm:$0xff] %v806_v24   ;;  %v189_v34 = vadd.f32 %v965_v5, %v118_v26  ;;  %v252_v35 = vmax.f32 %v188_v27, 0.0  ;;  %v121_v36 = vmul.f32 %v958_v2, %v50_v22  ;;  %v64_v26 = vld [vmem:[%s1375_s0 + $0x190] sm:$0xff]  ;;  %v65_v27 = vld [vmem:[%s1375_s0 + $0x198] sm:$0xff] }
  0x21   :  { %v122_v37 = vmul.f32 %v958_v2, %v51_v23  ;;  %v816_v39 = vpack.c.bf16 %v251_v30, %v250_v25  ;;  %v190_v40 = vadd.f32 %v965_v5, %v119_v31  ;;  %v191_v41 = vadd.f32 %v965_v5, %v120_v32  ;;  %v66_v32 = vld [vmem:[%s1375_s0 + $0x1a0] sm:$0xff] }
  0x22   :  { %911 = vst [vmem:[%s1378_s3 + $0x70] sm:$0xff] %v811_v29   ;;  %v123_v42 = vmul.f32 %v958_v2, %v52_v28  ;;  %v253_v43 = vmax.f32 %v189_v34, 0.0  ;;  %v192_v44 = vadd.f32 %v965_v5, %v121_v36  ;;  %v124_v46 = vmul.f32 %v958_v2, %v53_v33  ;;  %v67_v33 = vld [vmem:[%s1375_s0 + $0x1a8] sm:$0xff] }
  0x23   :  { %v193_v45 = vadd.f32 %v965_v5, %v122_v37  ;;  %912 = vst [vmem:[%s1378_s3 + $0x78] sm:$0xff] %v816_v39   ;;  %v254_v48 = vmax.f32 %v190_v40, 0.0  ;;  %v255_v49 = vmax.f32 %v191_v41, 0.0  ;;  %v125_v51 = vmul.f32 %v958_v2, %v54_v38  ;;  %v68_v38 = vld [vmem:[%s1375_s0 + $0x1b0] sm:$0xff] }
  0x24   :  { %v194_v50 = vadd.f32 %v965_v5, %v123_v42  ;;  %v821_v54 = vpack.c.bf16 %v253_v43, %v252_v35  ;;  %v256_v55 = vmax.f32 %v192_v44, 0.0  ;;  %v195_v57 = vadd.f32 %v965_v5, %v124_v46  ;;  %v69_v43 = vld [vmem:[%s1375_s0 + $0x1b8] sm:$0xff] }
  0x25   :  { %v257_v56 = vmax.f32 %v193_v45, 0.0  ;;  %v826_v60 = vpack.c.bf16 %v255_v49, %v254_v48  ;;  %v126_v62 = vmul.f32 %v958_v2, %v55_v47  ;;  %v196_v63 = vadd.f32 %v965_v5, %v125_v51  ;;  %v70_v48 = vld [vmem:[%s1375_s0 + $0x1c0] sm:$0xff] }
  0x26   :  { %v258_v61 = vmax.f32 %v194_v50, 0.0  ;;  %913 = vst [vmem:[%s1378_s3 + $0x80] sm:$0xff] %v821_v54   ;;  %v259_v3 = vmax.f32 %v195_v57, 0.0  ;;  %v127_v4 = vmul.f32 %v958_v2, %v56_v52  ;;  %v128_v6 = vmul.f32 %v958_v2, %v57_v53  ;;  %v71_v57 = vld [vmem:[%s1375_s0 + $0x1c8] sm:$0xff] }
  0x27   :  { %v831_v1 = vpack.c.bf16 %v257_v56, %v256_v55  ;;  %914 = vst [vmem:[%s1378_s3 + $0x88] sm:$0xff] %v826_v60   ;;  %v197_v8 = vadd.f32 %v965_v5, %v126_v62  ;;  %v260_v9 = vmax.f32 %v196_v63, 0.0  ;;  %v129_v10 = vmul.f32 %v958_v2, %v58_v58  ;;  %v72_v62 = vld [vmem:[%s1375_s0 + $0x1d0] sm:$0xff]  ;;  %v73_v63 = vld [vmem:[%s1375_s0 + $0x1d8] sm:$0xff] }
  0x28   :  { %v130_v11 = vmul.f32 %v958_v2, %v59_v59  ;;  %v836_v13 = vpack.c.bf16 %v259_v3, %v258_v61  ;;  %v198_v14 = vadd.f32 %v965_v5, %v127_v4  ;;  %v199_v15 = vadd.f32 %v965_v5, %v128_v6  ;;  %v74_v6 = vld [vmem:[%s1375_s0 + $0x1e0] sm:$0xff] }
  0x29   :  { %915 = vst [vmem:[%s1378_s3 + $0x90] sm:$0xff] %v831_v1   ;;  %v131_v16 = vmul.f32 %v958_v2, %v60_v0  ;;  %v261_v17 = vmax.f32 %v197_v8, 0.0  ;;  %v200_v18 = vadd.f32 %v965_v5, %v129_v10  ;;  %v132_v20 = vmul.f32 %v958_v2, %v61_v7  ;;  %v75_v7 = vld [vmem:[%s1375_s0 + $0x1e8] sm:$0xff] }
  0x2a   :  { %v201_v19 = vadd.f32 %v965_v5, %v130_v11  ;;  %916 = vst [vmem:[%s1378_s3 + $0x98] sm:$0xff] %v836_v13   ;;  %v262_v22 = vmax.f32 %v198_v14, 0.0  ;;  %v263_v23 = vmax.f32 %v199_v15, 0.0  ;;  %v133_v25 = vmul.f32 %v958_v2, %v62_v12  ;;  %v76_v12 = vld [vmem:[%s1375_s0 + $0x1f0] sm:$0xff] }
  0x2b   :  { %v202_v24 = vadd.f32 %v965_v5, %v131_v16  ;;  %v841_v28 = vpack.c.bf16 %v261_v17, %v260_v9  ;;  %v264_v29 = vmax.f32 %v200_v18, 0.0  ;;  %v203_v31 = vadd.f32 %v965_v5, %v132_v20  ;;  %v77_v17 = vld [vmem:[%s1375_s0 + $0x1f8] sm:$0xff] }
  0x2c   :  { %v265_v30 = vmax.f32 %v201_v19, 0.0  ;;  %v846_v34 = vpack.c.bf16 %v263_v23, %v262_v22  ;;  %v134_v36 = vmul.f32 %v958_v2, %v63_v21  ;;  %v204_v37 = vadd.f32 %v965_v5, %v133_v25 }
  0x2d   :  { %v266_v35 = vmax.f32 %v202_v24, 0.0  ;;  %917 = vst [vmem:[%s1378_s3 + $0xa0] sm:$0xff] %v841_v28   ;;  %v267_v40 = vmax.f32 %v203_v31, 0.0  ;;  %v135_v41 = vmul.f32 %v958_v2, %v64_v26  ;;  %v136_v42 = vmul.f32 %v958_v2, %v65_v27 }
  0x2e   :  { %v851_v39 = vpack.c.bf16 %v265_v30, %v264_v29  ;;  %918 = vst [vmem:[%s1378_s3 + $0xa8] sm:$0xff] %v846_v34   ;;  %v205_v44 = vadd.f32 %v965_v5, %v134_v36  ;;  %v268_v45 = vmax.f32 %v204_v37, 0.0  ;;  %v137_v46 = vmul.f32 %v958_v2, %v66_v32 }
  0x2f   :  { %v138_v47 = vmul.f32 %v958_v2, %v67_v33  ;;  %v856_v49 = vpack.c.bf16 %v267_v40, %v266_v35  ;;  %v206_v50 = vadd.f32 %v965_v5, %v135_v41  ;;  %v207_v51 = vadd.f32 %v965_v5, %v136_v42 }
  0x30   :  { %919 = vst [vmem:[%s1378_s3 + $0xb0] sm:$0xff] %v851_v39   ;;  %v139_v52 = vmul.f32 %v958_v2, %v68_v38  ;;  %v269_v53 = vmax.f32 %v205_v44, 0.0  ;;  %v208_v54 = vadd.f32 %v965_v5, %v137_v46  ;;  %v140_v56 = vmul.f32 %v958_v2, %v69_v43 }
  0x31   :  { %v209_v55 = vadd.f32 %v965_v5, %v138_v47  ;;  %920 = vst [vmem:[%s1378_s3 + $0xb8] sm:$0xff] %v856_v49   ;;  %v270_v58 = vmax.f32 %v206_v50, 0.0  ;;  %v271_v59 = vmax.f32 %v207_v51, 0.0  ;;  %v141_v61 = vmul.f32 %v958_v2, %v70_v48 }
  0x32   :  { %v210_v60 = vadd.f32 %v965_v5, %v139_v52  ;;  %v861_v0 = vpack.c.bf16 %v269_v53, %v268_v45  ;;  %v272_v1 = vmax.f32 %v208_v54, 0.0  ;;  %v211_v4 = vadd.f32 %v965_v5, %v140_v56 }
  0x33   :  { %v273_v3 = vmax.f32 %v209_v55, 0.0  ;;  %v866_v8 = vpack.c.bf16 %v271_v59, %v270_v58  ;;  %v142_v10 = vmul.f32 %v958_v2, %v71_v57  ;;  %v212_v11 = vadd.f32 %v965_v5, %v141_v61 }
  0x34   :  { %v274_v9 = vmax.f32 %v210_v60, 0.0  ;;  %921 = vst [vmem:[%s1378_s3 + $0xc0] sm:$0xff] %v861_v0   ;;  %v275_v14 = vmax.f32 %v211_v4, 0.0  ;;  %v143_v15 = vmul.f32 %v958_v2, %v72_v62  ;;  %v144_v16 = vmul.f32 %v958_v2, %v73_v63 }
  0x35   :  { %v871_v13 = vpack.c.bf16 %v273_v3, %v272_v1  ;;  %922 = vst [vmem:[%s1378_s3 + $0xc8] sm:$0xff] %v866_v8   ;;  %v213_v18 = vadd.f32 %v965_v5, %v142_v10  ;;  %v276_v19 = vmax.f32 %v212_v11, 0.0  ;;  %v145_v20 = vmul.f32 %v958_v2, %v74_v6 }
  0x36   :  { %v146_v21 = vmul.f32 %v958_v2, %v75_v7  ;;  %v876_v22 = vpack.c.bf16 %v275_v14, %v274_v9  ;;  %v214_v23 = vadd.f32 %v965_v5, %v143_v15  ;;  %v215_v24 = vadd.f32 %v965_v5, %v144_v16 }
  0x37   :  { %923 = vst [vmem:[%s1378_s3 + $0xd0] sm:$0xff] %v871_v13   ;;  %v147_v25 = vmul.f32 %v958_v2, %v76_v12  ;;  %v277_v26 = vmax.f32 %v213_v18, 0.0  ;;  %v216_v27 = vadd.f32 %v965_v5, %v145_v20  ;;  %v148_v29 = vmul.f32 %v958_v2, %v77_v17 }
  0x38   :  { %v217_v28 = vadd.f32 %v965_v5, %v146_v21  ;;  %924 = vst [vmem:[%s1378_s3 + $0xd8] sm:$0xff] %v876_v22   ;;  %v278_v30 = vmax.f32 %v214_v23, 0.0  ;;  %v279_v31 = vmax.f32 %v215_v24, 0.0 }
  0x39   :  { %v218_v32 = vadd.f32 %v965_v5, %v147_v25  ;;  %v881_v33 = vpack.c.bf16 %v277_v26, %v276_v19  ;;  %v280_v34 = vmax.f32 %v216_v27, 0.0  ;;  %v219_v36 = vadd.f32 %v965_v5, %v148_v29 }
  0x3a   :  { %v281_v35 = vmax.f32 %v217_v28, 0.0  ;;  %v886_v37 = vpack.c.bf16 %v279_v31, %v278_v30 }
  0x3b   :  { %v282_v38 = vmax.f32 %v218_v32, 0.0  ;;  %925 = vst [vmem:[%s1378_s3 + $0xe0] sm:$0xff] %v881_v33   ;;  %v283_v39 = vmax.f32 %v219_v36, 0.0 }
  0x3c   :  { %v891_v2 = vpack.c.bf16 %v281_v35, %v280_v34  ;;  %926 = vst [vmem:[%s1378_s3 + $0xe8] sm:$0xff] %v886_v37  }
  0x3d   :  { %v896_v40 = vpack.c.bf16 %v283_v39, %v282_v38 }
  0x3e   :  { %927 = vst [vmem:[%s1378_s3 + $0xf0] sm:$0xff] %v891_v2  }
  0x3f   :  { %928 = vst [vmem:[%s1378_s3 + $0xf8] sm:$0xff] %v896_v40  }

// kernel: _lambda_.15
= control target key start
LH: loop header
LB: loop body
LE: loop exit
PB: predicated region body
PF: predicated region fallthrough
CT: control target
= control target key end

     0   :  { %vm271_vm0 = vcmask 392192   ;;  %v1155_v36 = vmov 0.0   ;;  %s1720_s1 = inlined_call_operand.vmem [shape: bf16[1,48,128], index: 1, kind: input, shape index: {}]   ;;  %s1721_s0 = inlined_call_operand.vmem [shape: bf16[1,512,48], index: 0, kind: input, shape index: {}]   ;;  %s1722_s2 = inlined_call_operand.vmem [shape: f32[1,512,128], index: 2, kind: output, shape index: {0}]   ;;  %s1723_s3 = inlined_call_operand.vmem [shape: f32[1,128], index: 3, kind: output, shape index: {1}]   ;;  %s1724_s4 = inlined_call_operand.vmem [shape: f32[1,128], index: 4, kind: output, shape index: {2}]  }
   0x1   :  { %v1120_v0 = vld [vmem:[%s1720_s1 + $0x10] sm:$0xff]   ;;  %v1121_v1 = vld [vmem:[%s1720_s1 + $0x8] sm:$0xff]   ;;  %v1123_v2 = vld [vmem:[%s1721_s0] sm:$0xff]   ;;  %21 = vst [vmem:[%s1723_s3] sm:$0x1] %v1155_v36 }
   0x2   :  { %1043 = vmatprep.subr.bf16.mxu0 %v1120_v0  ;;  %1113 = vmatprep.subr.bf16.mxu1 %v1120_v0  ;;  %v1122_v3 = vld [vmem:[%s1720_s1] sm:$0xff]   ;;  %v1124_v4 = vld [vmem:[%s1721_s0 + $0x8] sm:$0xff]   ;;  %v1125_v5 = vld [vmem:[%s1721_s0 + $0x10] sm:$0xff]   ;;  %22 = vst [vmem:[%s1724_s4] sm:$0x1] %v1155_v36 }
   0x3   :  { %1044 = vmatpush3.bf16.msra.mxu0 %v1120_v0  ;;  %1116 = vmatpush3.bf16.msra.mxu1 %v1120_v0  ;;  %v1126_v6 = vld [vmem:[%s1721_s0 + $0x18] sm:$0xff]   ;;  %v1127_v7 = vld [vmem:[%s1721_s0 + $0x20] sm:$0xff]   ;;  %v1140_v9 = vld [vmem:[%s1721_s0 + $0x88] sm:$0xff]  }
   0x4   :  { %1045 = vmatprep.subr.bf16.mxu0 %v1121_v1  ;;  %1114 = vmatprep.subr.bf16.mxu1 %v1121_v1  ;;  %v1139_v8 = vld [vmem:[%s1721_s0 + $0x80] sm:$0xff]   ;;  %v1141_v10 = vld [vmem:[%s1721_s0 + $0x90] sm:$0xff]   ;;  %v1128_v11 = vld [vmem:[%s1721_s0 + $0x28] sm:$0xff]  }
   0x5   :  { %1049 = vmatprep.mubr.msk.bf16.mxu0 %vm271_vm0, %v1123_v2  ;;  %1081 = vmatprep.mubr.msk.bf16.mxu1 %vm271_vm0, %v1139_v8  ;;  %v1129_v12 = vld [vmem:[%s1721_s0 + $0x30] sm:$0xff]   ;;  %v1142_v13 = vld [vmem:[%s1721_s0 + $0x98] sm:$0xff]   ;;  %v1143_v14 = vld [vmem:[%s1721_s0 + $0xa0] sm:$0xff]  }
   0x6   :  { %v1130_v15 = vld [vmem:[%s1721_s0 + $0x38] sm:$0xff]   ;;  %v1144_v16 = vld [vmem:[%s1721_s0 + $0xa8] sm:$0xff]   ;;  %v1131_v17 = vld [vmem:[%s1721_s0 + $0x40] sm:$0xff]  }
   0x7   :  { %1046 = vmatpush3.bf16.msra.mxu0 %v1121_v1  ;;  %1117 = vmatpush3.bf16.msra.mxu1 %v1121_v1  ;;  %v1145_v18 = vld [vmem:[%s1721_s0 + $0xb0] sm:$0xff]   ;;  %v1132_v19 = vld [vmem:[%s1721_s0 + $0x48] sm:$0xff]   ;;  %v1146_v20 = vld [vmem:[%s1721_s0 + $0xb8] sm:$0xff]  }
   0x8   :  { %1047 = vmatprep.subr.bf16.mxu0 %v1122_v3  ;;  %1115 = vmatprep.subr.bf16.mxu1 %v1122_v3  ;;  %v1133_v21 = vld [vmem:[%s1721_s0 + $0x50] sm:$0xff]   ;;  %v1147_v22 = vld [vmem:[%s1721_s0 + $0xc0] sm:$0xff]   ;;  %v1134_v23 = vld [vmem:[%s1721_s0 + $0x58] sm:$0xff]  }
   0x9   :  { %v1148_v24 = vld [vmem:[%s1721_s0 + $0xc8] sm:$0xff]   ;;  %v1135_v25 = vld [vmem:[%s1721_s0 + $0x60] sm:$0xff]   ;;  %v1149_v26 = vld [vmem:[%s1721_s0 + $0xd0] sm:$0xff]  }
   0xa   :  { %v1136_v27 = vld [vmem:[%s1721_s0 + $0x68] sm:$0xff]   ;;  %v1150_v28 = vld [vmem:[%s1721_s0 + $0xd8] sm:$0xff]   ;;  %v1137_v29 = vld [vmem:[%s1721_s0 + $0x70] sm:$0xff]  }
   0xb   :  { %1048 = vmatpush3.bf16.msra.mxu0 %v1122_v3  ;;  %1118 = vmatpush3.bf16.msra.mxu1 %v1122_v3  ;;  %v1151_v30 = vld [vmem:[%s1721_s0 + $0xe0] sm:$0xff]   ;;  %v1138_v31 = vld [vmem:[%s1721_s0 + $0x78] sm:$0xff]   ;;  %v1152_v32 = vld [vmem:[%s1721_s0 + $0xe8] sm:$0xff]  }
   0xc   :  { %v1153_v33 = vld [vmem:[%s1721_s0 + $0xf0] sm:$0xff]   ;;  %v1154_v34 = vld [vmem:[%s1721_s0 + $0xf8] sm:$0xff]  }
   0xe   :  { %1050 = vmatmul.mubr.msk.bf16.vlgmr.msra.gmra.mxu0 %vm271_vm0, %v1124_v4  ;;  %1082 = vmatmul.mubr.msk.bf16.vlgmr.msra.gmra.mxu1 %vm271_vm0, %v1140_v9 }
   0xf   :  { %1053 = vmatprep.mubr.msk.bf16.mxu0 %vm271_vm0, %v1125_v5  ;;  %1085 = vmatprep.mubr.msk.bf16.mxu1 %vm271_vm0, %v1141_v10 }
  0x16   :  { %1054 = vmatmul.mubr.msk.bf16.gmra.mxu0 %vm271_vm0, %v1126_v6  ;;  %1086 = vmatmul.mubr.msk.bf16.gmra.mxu1 %vm271_vm0, %v1142_v13 }
  0x17   :  { %1057 = vmatprep.mubr.msk.bf16.mxu0 %vm271_vm0, %v1127_v7  ;;  %1089 = vmatprep.mubr.msk.bf16.mxu1 %vm271_vm0, %v1143_v14 }
  0x1e   :  { %1058 = vmatmul.mubr.msk.bf16.gmra.mxu0 %vm271_vm0, %v1128_v11  ;;  %1090 = vmatmul.mubr.msk.bf16.gmra.mxu1 %vm271_vm0, %v1144_v16 }
  0x1f   :  { %1061 = vmatprep.mubr.msk.bf16.mxu0 %vm271_vm0, %v1129_v12  ;;  %1093 = vmatprep.mubr.msk.bf16.mxu1 %vm271_vm0, %v1145_v18 }
  0x26   :  { %1062 = vmatmul.mubr.msk.bf16.gmra.mxu0 %vm271_vm0, %v1130_v15  ;;  %1094 = vmatmul.mubr.msk.bf16.gmra.mxu1 %vm271_vm0, %v1146_v20 }
  0x27   :  { %1065 = vmatprep.mubr.msk.bf16.mxu0 %vm271_vm0, %v1131_v17  ;;  %1097 = vmatprep.mubr.msk.bf16.mxu1 %vm271_vm0, %v1147_v22 }
  0x2e   :  { %1066 = vmatmul.mubr.msk.bf16.gmra.mxu0 %vm271_vm0, %v1132_v19  ;;  %1098 = vmatmul.mubr.msk.bf16.gmra.mxu1 %vm271_vm0, %v1148_v24 }
  0x2f   :  { %1069 = vmatprep.mubr.msk.bf16.mxu0 %vm271_vm0, %v1133_v21  ;;  %1101 = vmatprep.mubr.msk.bf16.mxu1 %vm271_vm0, %v1149_v26 }
  0x36   :  { %1070 = vmatmul.mubr.msk.bf16.gmra.mxu0 %vm271_vm0, %v1134_v23  ;;  %1102 = vmatmul.mubr.msk.bf16.gmra.mxu1 %vm271_vm0, %v1150_v28 }
  0x37   :  { %1073 = vmatprep.mubr.msk.bf16.mxu0 %vm271_vm0, %v1135_v25  ;;  %1105 = vmatprep.mubr.msk.bf16.mxu1 %vm271_vm0, %v1151_v30 }
  0x3e   :  { %1074 = vmatmul.mubr.msk.bf16.gmra.mxu0 %vm271_vm0, %v1136_v27  ;;  %1106 = vmatmul.mubr.msk.bf16.gmra.mxu1 %vm271_vm0, %v1152_v32 }
  0x3f   :  { %1077 = vmatprep.mubr.msk.bf16.mxu0 %vm271_vm0, %v1137_v29  ;;  %1109 = vmatprep.mubr.msk.bf16.mxu1 %vm271_vm0, %v1153_v33 }
  0x46   :  { %1078 = vmatmul.mubr.msk.bf16.gmra.mxu0 %vm271_vm0, %v1138_v31  ;;  %1110 = vmatmul.mubr.msk.bf16.gmra.mxu1 %vm271_vm0, %v1154_v34 }
  0xce   :  { %v1051_v35 = vpop.f32.mrf.mxu0  ;;  %v1336_v44 = vpop.f32.mrf.mxu1 }
  0xcf   :  { %659 = vst [vmem:[%s1722_s2 + $0x10] sm:$0xff] %v1051_v35  ;;  %v796_v45 = vmul.f32 %v1051_v35, %v1051_v35  ;;  %691 = vst [vmem:[%s1722_s2 + $0x110] sm:$0xff] %v1336_v44 }
  0xd0   :  { %v402_v37 = vpop.f32.mrf.mxu0  ;;  %v1345_v49 = vpop.f32.mrf.mxu1 }
  0xd1   :  { %657 = vst [vmem:[%s1722_s2] sm:$0xff] %v402_v37  ;;  %v794_v40 = vmul.f32 %v402_v37, %v402_v37  ;;  %689 = vst [vmem:[%s1722_s2 + $0x100] sm:$0xff] %v1345_v49 }
  0xd2   :  { %v1052_v38 = vpop.f32.mrf.mxu0  ;;  %v1354_v54 = vpop.f32.mrf.mxu1 }
  0xd3   :  { %660 = vst [vmem:[%s1722_s2 + $0x18] sm:$0xff] %v1052_v38  ;;  %v797_v50 = vmul.f32 %v1052_v38, %v1052_v38  ;;  %692 = vst [vmem:[%s1722_s2 + $0x118] sm:$0xff] %v1354_v54 }
  0xd4   :  { %v405_v39 = vpop.f32.mrf.mxu0  ;;  %v1363_v59 = vpop.f32.mrf.mxu1 }
  0xd5   :  { %658 = vst [vmem:[%s1722_s2 + $0x8] sm:$0xff] %v405_v39  ;;  %v722_v41 = vadd.f32 %v405_v39, %v402_v37  ;;  %v795_v42 = vmul.f32 %v405_v39, %v405_v39  ;;  %690 = vst [vmem:[%s1722_s2 + $0x108] sm:$0xff] %v1363_v59 }
  0xd6   :  { %v1055_v43 = vpop.f32.mrf.mxu0  ;;  %v1372_v0 = vpop.f32.mrf.mxu1 }
  0xd7   :  { %v723_v46 = vadd.f32 %v1051_v35, %v722_v41  ;;  %v858_v47 = vadd.f32 %v795_v42, %v794_v40  ;;  %663 = vst [vmem:[%s1722_s2 + $0x30] sm:$0xff] %v1055_v43  ;;  %v800_v1 = vmul.f32 %v1055_v43, %v1055_v43  ;;  %695 = vst [vmem:[%s1722_s2 + $0x130] sm:$0xff] %v1372_v0 }
  0xd8   :  { %v418_v48 = vpop.f32.mrf.mxu0  ;;  %v1381_v5 = vpop.f32.mrf.mxu1 }
  0xd9   :  { %v859_v51 = vadd.f32 %v858_v47, %v796_v45  ;;  %661 = vst [vmem:[%s1722_s2 + $0x20] sm:$0xff] %v418_v48  ;;  %v724_v52 = vadd.f32 %v1052_v38, %v723_v46  ;;  %v798_v56 = vmul.f32 %v418_v48, %v418_v48  ;;  %693 = vst [vmem:[%s1722_s2 + $0x120] sm:$0xff] %v1381_v5 }
  0xda   :  { %v1056_v53 = vpop.f32.mrf.mxu0  ;;  %v1390_v10 = vpop.f32.mrf.mxu1 }
  0xdb   :  { %v725_v55 = vadd.f32 %v724_v52, %v418_v48  ;;  %v860_v57 = vadd.f32 %v859_v51, %v797_v50  ;;  %664 = vst [vmem:[%s1722_s2 + $0x38] sm:$0xff] %v1056_v53  ;;  %v801_v6 = vmul.f32 %v1056_v53, %v1056_v53  ;;  %696 = vst [vmem:[%s1722_s2 + $0x138] sm:$0xff] %v1390_v10 }
  0xdc   :  { %v421_v58 = vpop.f32.mrf.mxu0  ;;  %v1399_v15 = vpop.f32.mrf.mxu1 }
  0xdd   :  { %v861_v60 = vadd.f32 %v860_v57, %v798_v56  ;;  %662 = vst [vmem:[%s1722_s2 + $0x28] sm:$0xff] %v421_v58  ;;  %v726_v61 = vadd.f32 %v725_v55, %v421_v58  ;;  %v799_v62 = vmul.f32 %v421_v58, %v421_v58  ;;  %694 = vst [vmem:[%s1722_s2 + $0x128] sm:$0xff] %v1399_v15 }
  0xde   :  { %v1059_v63 = vpop.f32.mrf.mxu0  ;;  %v1408_v20 = vpop.f32.mrf.mxu1 }
  0xdf   :  { %v727_v2 = vadd.f32 %v1055_v43, %v726_v61  ;;  %v862_v3 = vadd.f32 %v861_v60, %v799_v62  ;;  %667 = vst [vmem:[%s1722_s2 + $0x50] sm:$0xff] %v1059_v63  ;;  %v804_v21 = vmul.f32 %v1059_v63, %v1059_v63  ;;  %699 = vst [vmem:[%s1722_s2 + $0x150] sm:$0xff] %v1408_v20 }
  0xe0   :  { %v434_v4 = vpop.f32.mrf.mxu0  ;;  %v1417_v25 = vpop.f32.mrf.mxu1 }
  0xe1   :  { %v863_v7 = vadd.f32 %v862_v3, %v800_v1  ;;  %665 = vst [vmem:[%s1722_s2 + $0x40] sm:$0xff] %v434_v4  ;;  %v728_v8 = vadd.f32 %v1056_v53, %v727_v2  ;;  %v802_v12 = vmul.f32 %v434_v4, %v434_v4  ;;  %697 = vst [vmem:[%s1722_s2 + $0x140] sm:$0xff] %v1417_v25 }
  0xe2   :  { %v1060_v9 = vpop.f32.mrf.mxu0  ;;  %v1426_v30 = vpop.f32.mrf.mxu1 }
  0xe3   :  { %v729_v11 = vadd.f32 %v728_v8, %v434_v4  ;;  %v864_v13 = vadd.f32 %v863_v7, %v801_v6  ;;  %668 = vst [vmem:[%s1722_s2 + $0x58] sm:$0xff] %v1060_v9  ;;  %v805_v26 = vmul.f32 %v1060_v9, %v1060_v9  ;;  %700 = vst [vmem:[%s1722_s2 + $0x158] sm:$0xff] %v1426_v30 }
  0xe4   :  { %v437_v14 = vpop.f32.mrf.mxu0  ;;  %v1435_v35 = vpop.f32.mrf.mxu1 }
  0xe5   :  { %v865_v16 = vadd.f32 %v864_v13, %v802_v12  ;;  %666 = vst [vmem:[%s1722_s2 + $0x48] sm:$0xff] %v437_v14  ;;  %v730_v17 = vadd.f32 %v729_v11, %v437_v14  ;;  %v803_v18 = vmul.f32 %v437_v14, %v437_v14  ;;  %698 = vst [vmem:[%s1722_s2 + $0x148] sm:$0xff] %v1435_v35 }
  0xe6   :  { %v1063_v19 = vpop.f32.mrf.mxu0  ;;  %v1444_v40 = vpop.f32.mrf.mxu1 }
  0xe7   :  { %v731_v22 = vadd.f32 %v1059_v63, %v730_v17  ;;  %v866_v23 = vadd.f32 %v865_v16, %v803_v18  ;;  %671 = vst [vmem:[%s1722_s2 + $0x70] sm:$0xff] %v1063_v19  ;;  %v808_v41 = vmul.f32 %v1063_v19, %v1063_v19  ;;  %703 = vst [vmem:[%s1722_s2 + $0x170] sm:$0xff] %v1444_v40 }
  0xe8   :  { %v450_v24 = vpop.f32.mrf.mxu0  ;;  %v1453_v46 = vpop.f32.mrf.mxu1 }
  0xe9   :  { %v867_v27 = vadd.f32 %v866_v23, %v804_v21  ;;  %669 = vst [vmem:[%s1722_s2 + $0x60] sm:$0xff] %v450_v24  ;;  %v732_v28 = vadd.f32 %v1060_v9, %v731_v22  ;;  %v806_v32 = vmul.f32 %v450_v24, %v450_v24  ;;  %701 = vst [vmem:[%s1722_s2 + $0x160] sm:$0xff] %v1453_v46 }
  0xea   :  { %v1064_v29 = vpop.f32.mrf.mxu0  ;;  %v1462_v52 = vpop.f32.mrf.mxu1 }
  0xeb   :  { %v733_v31 = vadd.f32 %v732_v28, %v450_v24  ;;  %v868_v33 = vadd.f32 %v867_v27, %v805_v26  ;;  %672 = vst [vmem:[%s1722_s2 + $0x78] sm:$0xff] %v1064_v29  ;;  %v809_v47 = vmul.f32 %v1064_v29, %v1064_v29  ;;  %704 = vst [vmem:[%s1722_s2 + $0x178] sm:$0xff] %v1462_v52 }
  0xec   :  { %v453_v34 = vpop.f32.mrf.mxu0  ;;  %v1471_v58 = vpop.f32.mrf.mxu1 }
  0xed   :  { %v869_v36 = vadd.f32 %v868_v33, %v806_v32  ;;  %670 = vst [vmem:[%s1722_s2 + $0x68] sm:$0xff] %v453_v34  ;;  %v734_v37 = vadd.f32 %v733_v31, %v453_v34  ;;  %v807_v38 = vmul.f32 %v453_v34, %v453_v34  ;;  %702 = vst [vmem:[%s1722_s2 + $0x168] sm:$0xff] %v1471_v58 }
  0xee   :  { %v1067_v39 = vpop.f32.mrf.mxu0  ;;  %v1480_v1 = vpop.f32.mrf.mxu1 }
  0xef   :  { %v735_v42 = vadd.f32 %v1063_v19, %v734_v37  ;;  %v870_v43 = vadd.f32 %v869_v36, %v807_v38  ;;  %675 = vst [vmem:[%s1722_s2 + $0x90] sm:$0xff] %v1067_v39  ;;  %v812_v2 = vmul.f32 %v1067_v39, %v1067_v39  ;;  %707 = vst [vmem:[%s1722_s2 + $0x190] sm:$0xff] %v1480_v1 }
  0xf0   :  { %v466_v45 = vpop.f32.mrf.mxu0  ;;  %v1489_v7 = vpop.f32.mrf.mxu1 }
  0xf1   :  { %v871_v48 = vadd.f32 %v870_v43, %v808_v41  ;;  %673 = vst [vmem:[%s1722_s2 + $0x80] sm:$0xff] %v466_v45  ;;  %v736_v50 = vadd.f32 %v1064_v29, %v735_v42  ;;  %v810_v55 = vmul.f32 %v466_v45, %v466_v45  ;;  %705 = vst [vmem:[%s1722_s2 + $0x180] sm:$0xff] %v1489_v7 }
  0xf2   :  { %v1068_v51 = vpop.f32.mrf.mxu0  ;;  %v1498_v13 = vpop.f32.mrf.mxu1 }
  0xf3   :  { %v737_v53 = vadd.f32 %v736_v50, %v466_v45  ;;  %v872_v56 = vadd.f32 %v871_v48, %v809_v47  ;;  %676 = vst [vmem:[%s1722_s2 + $0x98] sm:$0xff] %v1068_v51  ;;  %v813_v8 = vmul.f32 %v1068_v51, %v1068_v51  ;;  %708 = vst [vmem:[%s1722_s2 + $0x198] sm:$0xff] %v1498_v13 }
  0xf4   :  { %v469_v57 = vpop.f32.mrf.mxu0  ;;  %v1507_v19 = vpop.f32.mrf.mxu1 }
  0xf5   :  { %v873_v60 = vadd.f32 %v872_v56, %v810_v55  ;;  %674 = vst [vmem:[%s1722_s2 + $0x88] sm:$0xff] %v469_v57  ;;  %v738_v61 = vadd.f32 %v737_v53, %v469_v57  ;;  %v811_v62 = vmul.f32 %v469_v57, %v469_v57  ;;  %706 = vst [vmem:[%s1722_s2 + $0x188] sm:$0xff] %v1507_v19 }
  0xf6   :  { %v1071_v63 = vpop.f32.mrf.mxu0  ;;  %v1516_v26 = vpop.f32.mrf.mxu1 }
  0xf7   :  { %v739_v3 = vadd.f32 %v1067_v39, %v738_v61  ;;  %v874_v4 = vadd.f32 %v873_v60, %v811_v62  ;;  %679 = vst [vmem:[%s1722_s2 + $0xb0] sm:$0xff] %v1071_v63  ;;  %v816_v27 = vmul.f32 %v1071_v63, %v1071_v63  ;;  %711 = vst [vmem:[%s1722_s2 + $0x1b0] sm:$0xff] %v1516_v26 }
  0xf8   :  { %v482_v6 = vpop.f32.mrf.mxu0  ;;  %v1525_v32 = vpop.f32.mrf.mxu1 }
  0xf9   :  { %v875_v9 = vadd.f32 %v874_v4, %v812_v2  ;;  %677 = vst [vmem:[%s1722_s2 + $0xa0] sm:$0xff] %v482_v6  ;;  %v740_v11 = vadd.f32 %v1068_v51, %v739_v3  ;;  %v814_v16 = vmul.f32 %v482_v6, %v482_v6  ;;  %709 = vst [vmem:[%s1722_s2 + $0x1a0] sm:$0xff] %v1525_v32 }
  0xfa   :  { %v1072_v12 = vpop.f32.mrf.mxu0  ;;  %v1534_v38 = vpop.f32.mrf.mxu1 }
  0xfb   :  { %v741_v14 = vadd.f32 %v740_v11, %v482_v6  ;;  %v876_v17 = vadd.f32 %v875_v9, %v813_v8  ;;  %680 = vst [vmem:[%s1722_s2 + $0xb8] sm:$0xff] %v1072_v12  ;;  %v817_v33 = vmul.f32 %v1072_v12, %v1072_v12  ;;  %712 = vst [vmem:[%s1722_s2 + $0x1b8] sm:$0xff] %v1534_v38 }
  0xfc   :  { %v485_v18 = vpop.f32.mrf.mxu0  ;;  %v1543_v45 = vpop.f32.mrf.mxu1 }
  0xfd   :  { %v877_v21 = vadd.f32 %v876_v17, %v814_v16  ;;  %678 = vst [vmem:[%s1722_s2 + $0xa8] sm:$0xff] %v485_v18  ;;  %v742_v22 = vadd.f32 %v741_v14, %v485_v18  ;;  %v815_v23 = vmul.f32 %v485_v18, %v485_v18  ;;  %710 = vst [vmem:[%s1722_s2 + $0x1a8] sm:$0xff] %v1543_v45 }
  0xfe   :  { %v1075_v24 = vpop.f32.mrf.mxu0  ;;  %v1552_v53 = vpop.f32.mrf.mxu1 }
  0xff   :  { %v743_v28 = vadd.f32 %v1071_v63, %v742_v22  ;;  %v878_v29 = vadd.f32 %v877_v21, %v815_v23  ;;  %683 = vst [vmem:[%s1722_s2 + $0xd0] sm:$0xff] %v1075_v24  ;;  %v820_v55 = vmul.f32 %v1075_v24, %v1075_v24  ;;  %715 = vst [vmem:[%s1722_s2 + $0x1d0] sm:$0xff] %v1552_v53 }
 0x100   :  { %v498_v31 = vpop.f32.mrf.mxu0  ;;  %v1561_v61 = vpop.f32.mrf.mxu1 }
 0x101   :  { %v879_v34 = vadd.f32 %v878_v29, %v816_v27  ;;  %681 = vst [vmem:[%s1722_s2 + $0xc0] sm:$0xff] %v498_v31  ;;  %v744_v36 = vadd.f32 %v1072_v12, %v743_v28  ;;  %v818_v41 = vmul.f32 %v498_v31, %v498_v31  ;;  %713 = vst [vmem:[%s1722_s2 + $0x1c0] sm:$0xff] %v1561_v61 }
 0x102   :  { %v1076_v37 = vpop.f32.mrf.mxu0  ;;  %v1570_v4 = vpop.f32.mrf.mxu1 }
 0x103   :  { %v745_v39 = vadd.f32 %v744_v36, %v498_v31  ;;  %v880_v42 = vadd.f32 %v879_v34, %v817_v33  ;;  %684 = vst [vmem:[%s1722_s2 + $0xd8] sm:$0xff] %v1076_v37  ;;  %v821_v62 = vmul.f32 %v1076_v37, %v1076_v37  ;;  %716 = vst [vmem:[%s1722_s2 + $0x1d8] sm:$0xff] %v1570_v4 }
 0x104   :  { %v501_v43 = vpop.f32.mrf.mxu0  ;;  %v1579_v12 = vpop.f32.mrf.mxu1  ;;  %v826_v33 = vmul.f32 %v1345_v49, %v1345_v49 }
 0x105   :  { %v881_v47 = vadd.f32 %v880_v42, %v818_v41  ;;  %682 = vst [vmem:[%s1722_s2 + $0xc8] sm:$0xff] %v501_v43  ;;  %v746_v48 = vadd.f32 %v745_v39, %v501_v43  ;;  %v819_v50 = vmul.f32 %v501_v43, %v501_v43  ;;  %714 = vst [vmem:[%s1722_s2 + $0x1c8] sm:$0xff] %v1579_v12 }
 0x106   :  { %v1079_v51 = vpop.f32.mrf.mxu0  ;;  %v1588_v18 = vpop.f32.mrf.mxu1  ;;  %v827_v41 = vmul.f32 %v1363_v59, %v1363_v59 }
 0x107   :  { %v747_v56 = vadd.f32 %v1075_v24, %v746_v48  ;;  %v882_v57 = vadd.f32 %v881_v47, %v819_v50  ;;  %687 = vst [vmem:[%s1722_s2 + $0xf0] sm:$0xff] %v1079_v51  ;;  %v824_v21 = vmul.f32 %v1079_v51, %v1079_v51  ;;  %719 = vst [vmem:[%s1722_s2 + $0x1f0] sm:$0xff] %v1588_v18 }
 0x108   :  { %v514_v60 = vpop.f32.mrf.mxu0  ;;  %v1594_v24 = vpop.f32.mrf.mxu1  ;;  %v829_v48 = vmul.f32 %v1354_v54, %v1354_v54 }
 0x109   :  { %v883_v63 = vadd.f32 %v882_v57, %v820_v55  ;;  %685 = vst [vmem:[%s1722_s2 + $0xe0] sm:$0xff] %v514_v60  ;;  %v748_v2 = vadd.f32 %v1076_v37, %v747_v56  ;;  %v822_v8 = vmul.f32 %v514_v60, %v514_v60  ;;  %717 = vst [vmem:[%s1722_s2 + $0x1e0] sm:$0xff] %v1594_v24 }
 0x10a   :  { %v1080_v3 = vpop.f32.mrf.mxu0  ;;  %v1600_v31 = vpop.f32.mrf.mxu1  ;;  %v830_v55 = vmul.f32 %v1381_v5, %v1381_v5 }
 0x10b   :  { %v749_v6 = vadd.f32 %v748_v2, %v514_v60  ;;  %v884_v9 = vadd.f32 %v883_v63, %v821_v62  ;;  %688 = vst [vmem:[%s1722_s2 + $0xf8] sm:$0xff] %v1080_v3  ;;  %v825_v27 = vmul.f32 %v1080_v3, %v1080_v3  ;;  %720 = vst [vmem:[%s1722_s2 + $0x1f8] sm:$0xff] %v1600_v31 }
 0x10c   :  { %v517_v11 = vpop.f32.mrf.mxu0  ;;  %v1609_v37 = vpop.f32.mrf.mxu1  ;;  %v831_v62 = vmul.f32 %v1399_v15, %v1399_v15 }
 0x10d   :  { %v885_v14 = vadd.f32 %v884_v9, %v822_v8  ;;  %686 = vst [vmem:[%s1722_s2 + $0xe8] sm:$0xff] %v517_v11  ;;  %v750_v16 = vadd.f32 %v749_v6, %v517_v11  ;;  %v823_v17 = vmul.f32 %v517_v11, %v517_v11  ;;  %718 = vst [vmem:[%s1722_s2 + $0x1e8] sm:$0xff] %v1609_v37 }
 0x10e   :  { %v834_v8 = vmul.f32 %v1417_v25, %v1417_v25 }
 0x10f   :  { %v751_v22 = vadd.f32 %v1079_v51, %v750_v16  ;;  %v886_v23 = vadd.f32 %v885_v14, %v823_v17  ;;  %v835_v14 = vmul.f32 %v1435_v35, %v1435_v35 }
 0x111   :  { %v752_v28 = vadd.f32 %v1080_v3, %v751_v22  ;;  %v887_v29 = vadd.f32 %v886_v23, %v824_v21  ;;  %v838_v23 = vmul.f32 %v1453_v46, %v1453_v46 }
 0x113   :  { %v888_v34 = vadd.f32 %v887_v29, %v825_v27  ;;  %v753_v36 = vadd.f32 %v752_v28, %v1345_v49  ;;  %v828_v49 = vmul.f32 %v1336_v44, %v1336_v44  ;;  %v839_v29 = vmul.f32 %v1471_v58, %v1471_v58 }
 0x115   :  { %v754_v39 = vadd.f32 %v753_v36, %v1363_v59  ;;  %v889_v42 = vadd.f32 %v888_v34, %v826_v33 }
 0x117   :  { %v755_v43 = vadd.f32 %v1336_v44, %v754_v39  ;;  %v890_v47 = vadd.f32 %v889_v42, %v827_v41  ;;  %v832_v44 = vmul.f32 %v1372_v0, %v1372_v0  ;;  %v842_v41 = vmul.f32 %v1489_v7, %v1489_v7 }
 0x119   :  { %v891_v50 = vadd.f32 %v890_v47, %v828_v49  ;;  %v756_v51 = vadd.f32 %v1354_v54, %v755_v43  ;;  %v833_v54 = vmul.f32 %v1390_v10, %v1390_v10  ;;  %v843_v43 = vmul.f32 %v1507_v19, %v1507_v19 }
 0x11b   :  { %v757_v59 = vadd.f32 %v756_v51, %v1381_v5  ;;  %v892_v56 = vadd.f32 %v891_v50, %v829_v48 }
 0x11d   :  { %v893_v57 = vadd.f32 %v892_v56, %v830_v55  ;;  %v758_v60 = vadd.f32 %v757_v59, %v1399_v15  ;;  %v846_v59 = vmul.f32 %v1525_v32, %v1525_v32 }
 0x11f   :  { %v759_v63 = vadd.f32 %v1372_v0, %v758_v60  ;;  %v894_v2 = vadd.f32 %v893_v57, %v831_v62  ;;  %v836_v0 = vmul.f32 %v1408_v20, %v1408_v20  ;;  %v847_v57 = vmul.f32 %v1543_v45, %v1543_v45 }
 0x121   :  { %v895_v3 = vadd.f32 %v894_v2, %v832_v44  ;;  %v760_v6 = vadd.f32 %v1390_v10, %v759_v63  ;;  %v837_v10 = vmul.f32 %v1426_v30, %v1426_v30  ;;  %v850_v2 = vmul.f32 %v1561_v61, %v1561_v61 }
 0x123   :  { %v761_v5 = vadd.f32 %v760_v6, %v1417_v25  ;;  %v896_v9 = vadd.f32 %v895_v3, %v833_v54  ;;  %v851_v6 = vmul.f32 %v1579_v12, %v1579_v12 }
 0x125   :  { %v897_v11 = vadd.f32 %v896_v9, %v834_v8  ;;  %v762_v15 = vadd.f32 %v761_v5, %v1435_v35 }
 0x127   :  { %v763_v16 = vadd.f32 %v1408_v20, %v762_v15  ;;  %v898_v17 = vadd.f32 %v897_v11, %v835_v14  ;;  %v840_v20 = vmul.f32 %v1444_v40, %v1444_v40  ;;  %v854_v15 = vmul.f32 %v1594_v24, %v1594_v24 }
 0x129   :  { %v899_v21 = vadd.f32 %v898_v17, %v836_v0  ;;  %v764_v22 = vadd.f32 %v1426_v30, %v763_v16  ;;  %v841_v30 = vmul.f32 %v1462_v52, %v1462_v52  ;;  %v855_v16 = vmul.f32 %v1609_v37, %v1609_v37 }
 0x12b   :  { %v765_v25 = vadd.f32 %v764_v22, %v1453_v46  ;;  %v900_v27 = vadd.f32 %v899_v21, %v837_v10 }
 0x12d   :  { %v901_v28 = vadd.f32 %v900_v27, %v838_v23  ;;  %v766_v35 = vadd.f32 %v765_v25, %v1471_v58 }
 0x12f   :  { %v767_v33 = vadd.f32 %v1444_v40, %v766_v35  ;;  %v902_v34 = vadd.f32 %v901_v28, %v839_v29  ;;  %v844_v40 = vmul.f32 %v1480_v1, %v1480_v1 }
 0x131   :  { %v903_v36 = vadd.f32 %v902_v34, %v840_v20  ;;  %v768_v39 = vadd.f32 %v1462_v52, %v767_v33  ;;  %v845_v52 = vmul.f32 %v1498_v13, %v1498_v13 }
 0x133   :  { %v769_v46 = vadd.f32 %v768_v39, %v1489_v7  ;;  %v904_v42 = vadd.f32 %v903_v36, %v841_v30 }
 0x135   :  { %v905_v49 = vadd.f32 %v904_v42, %v842_v41  ;;  %v770_v58 = vadd.f32 %v769_v46, %v1507_v19 }
 0x137   :  { %v771_v47 = vadd.f32 %v1480_v1, %v770_v58  ;;  %v906_v48 = vadd.f32 %v905_v49, %v843_v43  ;;  %v848_v1 = vmul.f32 %v1516_v26, %v1516_v26 }
 0x139   :  { %v907_v50 = vadd.f32 %v906_v48, %v844_v40  ;;  %v772_v51 = vadd.f32 %v1498_v13, %v771_v47  ;;  %v849_v13 = vmul.f32 %v1534_v38, %v1534_v38 }
 0x13b   :  { %v773_v7 = vadd.f32 %v772_v51, %v1525_v32  ;;  %v908_v55 = vadd.f32 %v907_v50, %v845_v52 }
 0x13d   :  { %v909_v56 = vadd.f32 %v908_v55, %v846_v59  ;;  %v774_v19 = vadd.f32 %v773_v7, %v1543_v45 }
 0x13f   :  { %v775_v60 = vadd.f32 %v1516_v26, %v774_v19  ;;  %v910_v62 = vadd.f32 %v909_v56, %v847_v57  ;;  %v852_v26 = vmul.f32 %v1552_v53, %v1552_v53 }
 0x141   :  { %v911_v44 = vadd.f32 %v910_v62, %v848_v1  ;;  %v776_v63 = vadd.f32 %v1534_v38, %v775_v60  ;;  %v853_v38 = vmul.f32 %v1570_v4, %v1570_v4 }
 0x143   :  { %v777_v32 = vadd.f32 %v776_v63, %v1561_v61  ;;  %v912_v54 = vadd.f32 %v911_v44, %v849_v13 }
 0x145   :  { %v913_v3 = vadd.f32 %v912_v54, %v850_v2  ;;  %v778_v45 = vadd.f32 %v777_v32, %v1579_v12 }
 0x147   :  { %v779_v5 = vadd.f32 %v1552_v53, %v778_v45  ;;  %v914_v8 = vadd.f32 %v913_v3, %v851_v6  ;;  %v856_v53 = vmul.f32 %v1588_v18, %v1588_v18 }
 0x149   :  { %v915_v9 = vadd.f32 %v914_v8, %v852_v26  ;;  %v780_v11 = vadd.f32 %v1570_v4, %v779_v5  ;;  %v857_v4 = vmul.f32 %v1600_v31, %v1600_v31 }
 0x14b   :  { %v781_v61 = vadd.f32 %v780_v11, %v1594_v24  ;;  %v916_v14 = vadd.f32 %v915_v9, %v853_v38 }
 0x14d   :  { %v917_v0 = vadd.f32 %v916_v14, %v854_v15  ;;  %v782_v12 = vadd.f32 %v781_v61, %v1609_v37 }
 0x14f   :  { %v783_v17 = vadd.f32 %v1588_v18, %v782_v12  ;;  %v918_v10 = vadd.f32 %v917_v0, %v855_v16  ;;  %v721_v18 = vld [vmem:[%s1723_s3] sm:$0x1] }
 0x151   :  { %v784_v21 = vadd.f32 %v1600_v31, %v783_v17  ;;  %v919_v22 = vadd.f32 %v918_v10, %v856_v53  ;;  %v793_v31 = vld [vmem:[%s1724_s4] sm:$0x1] }
 0x153   :  { %v785_v24 = vrot.slane %v784_v21, 4  ;;  %v920_v25 = vadd.f32 %v919_v22, %v857_v4 }
 0x155   :  { %v786_v23 = vadd.f32 %v785_v24, %v784_v21  ;;  %v921_v27 = vrot.slane %v920_v25, 4 }
 0x157   :  { %v787_v28 = vrot.slane %v786_v23, 2  ;;  %v922_v35 = vadd.f32 %v921_v27, %v920_v25 }
 0x159   :  { %v788_v29 = vadd.f32 %v787_v28, %v786_v23  ;;  %v923_v37 = vrot.slane %v922_v35, 2 }
 0x15b   :  { %v789_v20 = vrot.slane %v788_v29, 1  ;;  %v924_v33 = vadd.f32 %v923_v37, %v922_v35 }
 0x15d   :  { %v790_v34 = vadd.f32 %v789_v20, %v788_v29  ;;  %v925_v30 = vrot.slane %v924_v33, 1 }
 0x15f   :  { %v791_v36 = vadd.f32 %v790_v34, %v721_v18  ;;  %v926_v39 = vadd.f32 %v925_v30, %v924_v33 }
 0x161   :  { %792 = vst [vmem:[%s1723_s3] sm:$0x1] %v791_v36  ;;  %v927_v46 = vadd.f32 %v926_v39, %v793_v31 }
 0x163   :  { %928 = vst [vmem:[%s1724_s4] sm:$0x1] %v927_v46 }

// kernel: _lambda_.17
= control target key start
LH: loop header
LB: loop body
LE: loop exit
PB: predicated region body
PF: predicated region fallthrough
CT: control target
= control target key end

     0   :  { %v589_v32 = vmov 0.0   ;;  %s801_s1 = inlined_call_operand.vmem [shape: bf16[1,256,128], index: 1, kind: input, shape index: {}]   ;;  %s802_s0 = inlined_call_operand.vmem [shape: bf16[1,128,256], index: 0, kind: input, shape index: {}]   ;;  %s803_s3 = inlined_call_operand.vmem [shape: f32[1,128], index: 3, kind: output, shape index: {1}]   ;;  %s804_s4 = inlined_call_operand.vmem [shape: f32[1,128], index: 4, kind: output, shape index: {2}]   ;;  %s805_s2 = inlined_call_operand.vmem [shape: f32[1,128,128], index: 2, kind: output, shape index: {0}]  }
   0x1   :  { %v549_v0 = vld [vmem:[%s801_s1 + $0x78] sm:$0xff]   ;;  %v551_v2 = vld [vmem:[%s801_s1 + $0x70] sm:$0xff]   ;;  %v553_v4 = vld [vmem:[%s801_s1 + $0x68] sm:$0xff]   ;;  %21 = vst [vmem:[%s803_s3] sm:$0x1] %v589_v32 }
   0x2   :  { %v550_v1 = vld [vmem:[%s801_s1 + $0x38] sm:$0xff]   ;;  %468 = vmatprep.subr.bf16.mxu0 %v549_v0  ;;  %532 = vmatprep.subr.bf16.mxu1 %v549_v0  ;;  %v552_v3 = vld [vmem:[%s801_s1 + $0x30] sm:$0xff]   ;;  %v554_v5 = vld [vmem:[%s801_s1 + $0x28] sm:$0xff]   ;;  %22 = vst [vmem:[%s804_s4] sm:$0x1] %v589_v32 }
   0x3   :  { %469 = vmatpush3.bf16.msra.mxu0 %v550_v1  ;;  %540 = vmatpush3.bf16.msra.mxu1 %v550_v1  ;;  %v555_v6 = vld [vmem:[%s801_s1 + $0x60] sm:$0xff]   ;;  %v557_v8 = vld [vmem:[%s801_s1 + $0x58] sm:$0xff]   ;;  %v559_v10 = vld [vmem:[%s801_s1 + $0x50] sm:$0xff]  }
   0x4   :  { %470 = vmatprep.subr.bf16.mxu0 %v551_v2  ;;  %533 = vmatprep.subr.bf16.mxu1 %v551_v2  ;;  %v556_v7 = vld [vmem:[%s801_s1 + $0x20] sm:$0xff]   ;;  %v558_v9 = vld [vmem:[%s801_s1 + $0x18] sm:$0xff]   ;;  %v560_v12 = vld [vmem:[%s801_s1 + $0x10] sm:$0xff]  }
   0x5   :  { %v567_v11 = vld [vmem:[%s802_s0 + $0x4] ss:$8 sps:$4 sm:$0xff]   ;;  %v565_v18 = vld [vmem:[%s802_s0] ss:$8 sps:$4 sm:$0xff]   ;;  %v568_v20 = vld [vmem:[%s802_s0 + $0x14] ss:$8 sps:$4 sm:$0xff]  }
   0x6   :  { %v573_v13 = vld [vmem:[%s802_s0 + $0x44] ss:$8 sps:$4 sm:$0xff]   ;;  %279 = vmatprep.mubr.bf16.mxu0 %v567_v11  ;;  %v571_v19 = vld [vmem:[%s802_s0 + $0x40] ss:$8 sps:$4 sm:$0xff]   ;;  %v577_v21 = vld [vmem:[%s802_s0 + $0x54] ss:$8 sps:$4 sm:$0xff]  }
   0x7   :  { %471 = vmatpush3.bf16.msra.mxu0 %v552_v3  ;;  %541 = vmatpush3.bf16.msra.mxu1 %v552_v3  ;;  %v561_v14 = vld [vmem:[%s801_s1 + $0x48] sm:$0xff]   ;;  %v563_v16 = vld [vmem:[%s801_s1 + $0x40] sm:$0xff]   ;;  %v570_v22 = vld [vmem:[%s802_s0 + $0x10] ss:$8 sps:$4 sm:$0xff]  }
   0x8   :  { %472 = vmatprep.subr.bf16.mxu0 %v553_v4  ;;  %534 = vmatprep.subr.bf16.mxu1 %v553_v4  ;;  %v562_v15 = vld [vmem:[%s801_s1 + $0x8] sm:$0xff]   ;;  %v564_v17 = vld [vmem:[%s801_s1] sm:$0xff]   ;;  %v579_v23 = vld [vmem:[%s802_s0 + $0x50] ss:$8 sps:$4 sm:$0xff]  }
   0x9   :  { %311 = vmatprep.mubr.bf16.mxu1 %v573_v13  ;;  %v574_v24 = vld [vmem:[%s802_s0 + $0x24] ss:$8 sps:$4 sm:$0xff]   ;;  %v576_v26 = vld [vmem:[%s802_s0 + $0x20] ss:$8 sps:$4 sm:$0xff]   ;;  %v580_v28 = vld [vmem:[%s802_s0 + $0x34] ss:$8 sps:$4 sm:$0xff]  }
   0xa   :  { %v583_v25 = vld [vmem:[%s802_s0 + $0x64] ss:$8 sps:$4 sm:$0xff]   ;;  %v585_v27 = vld [vmem:[%s802_s0 + $0x60] ss:$8 sps:$4 sm:$0xff]   ;;  %v586_v29 = vld [vmem:[%s802_s0 + $0x74] ss:$8 sps:$4 sm:$0xff]  }
   0xb   :  { %473 = vmatpush3.bf16.msra.mxu0 %v554_v5  ;;  %542 = vmatpush3.bf16.msra.mxu1 %v554_v5  ;;  %v582_v30 = vld [vmem:[%s802_s0 + $0x30] ss:$8 sps:$4 sm:$0xff]  }
   0xc   :  { %474 = vmatprep.subr.bf16.mxu0 %v555_v6  ;;  %535 = vmatprep.subr.bf16.mxu1 %v555_v6  ;;  %v588_v31 = vld [vmem:[%s802_s0 + $0x70] ss:$8 sps:$4 sm:$0xff]  }
   0xf   :  { %475 = vmatpush3.bf16.msra.mxu0 %v556_v7  ;;  %543 = vmatpush3.bf16.msra.mxu1 %v556_v7 }
  0x10   :  { %476 = vmatprep.subr.bf16.mxu0 %v557_v8  ;;  %536 = vmatprep.subr.bf16.mxu1 %v557_v8 }
  0x13   :  { %477 = vmatpush3.bf16.msra.mxu0 %v558_v9  ;;  %544 = vmatpush3.bf16.msra.mxu1 %v558_v9 }
  0x14   :  { %478 = vmatprep.subr.bf16.mxu0 %v559_v10  ;;  %537 = vmatprep.subr.bf16.mxu1 %v559_v10 }
  0x17   :  { %479 = vmatpush3.bf16.msra.mxu0 %v560_v12  ;;  %545 = vmatpush3.bf16.msra.mxu1 %v560_v12 }
  0x18   :  { %480 = vmatprep.subr.bf16.mxu0 %v561_v14  ;;  %538 = vmatprep.subr.bf16.mxu1 %v561_v14 }
  0x1b   :  { %481 = vmatpush3.bf16.msra.mxu0 %v562_v15  ;;  %546 = vmatpush3.bf16.msra.mxu1 %v562_v15 }
  0x1c   :  { %482 = vmatprep.subr.bf16.mxu0 %v563_v16  ;;  %539 = vmatprep.subr.bf16.mxu1 %v563_v16 }
  0x1f   :  { %483 = vmatpush3.bf16.msra.mxu0 %v564_v17  ;;  %547 = vmatpush3.bf16.msra.mxu1 %v564_v17 }
  0x22   :  { %280 = vmatmul.mubr.bf16.vlgmr.msra.gmra.mxu0 %v565_v18  ;;  %312 = vmatmul.mubr.bf16.vlgmr.msra.gmra.mxu1 %v571_v19 }
  0x23   :  { %287 = vmatprep.mubr.bf16.mxu0 %v568_v20  ;;  %319 = vmatprep.mubr.bf16.mxu1 %v577_v21 }
  0x2a   :  { %288 = vmatmul.mubr.bf16.gmra.mxu0 %v570_v22  ;;  %320 = vmatmul.mubr.bf16.gmra.mxu1 %v579_v23 }
  0x2b   :  { %295 = vmatprep.mubr.bf16.mxu0 %v574_v24  ;;  %327 = vmatprep.mubr.bf16.mxu1 %v583_v25 }
  0x32   :  { %296 = vmatmul.mubr.bf16.gmra.mxu0 %v576_v26  ;;  %328 = vmatmul.mubr.bf16.gmra.mxu1 %v585_v27 }
  0x33   :  { %303 = vmatprep.mubr.bf16.mxu0 %v580_v28  ;;  %335 = vmatprep.mubr.bf16.mxu1 %v586_v29 }
  0x3a   :  { %304 = vmatmul.mubr.bf16.gmra.mxu0 %v582_v30  ;;  %336 = vmatmul.mubr.bf16.gmra.mxu1 %v588_v31 }
  0xe2   :  { %v484_v33 = vpop.f32.mrf.mxu0  ;;  %v508_v34 = vpop.f32.mrf.mxu1 }
  0xe4   :  { %v485_v35 = vpop.f32.mrf.mxu0  ;;  %v509_v36 = vpop.f32.mrf.mxu1 }
  0xe5   :  { %v486_v37 = vadd.f32 %v485_v35, %v484_v33  ;;  %v717_v38 = vadd.f32 %v509_v36, %v508_v34 }
  0xe6   :  { %v487_v39 = vpop.f32.mrf.mxu0  ;;  %v511_v40 = vpop.f32.mrf.mxu1 }
  0xe7   :  { %344 = vst [vmem:[%s805_s2] sm:$0xff] %v486_v37  ;;  %352 = vst [vmem:[%s805_s2 + $0x40] sm:$0xff] %v717_v38  ;;  %v385_v0 = vmul.f32 %v486_v37, %v486_v37 }
  0xe8   :  { %v488_v41 = vpop.f32.mrf.mxu0  ;;  %v512_v42 = vpop.f32.mrf.mxu1 }
  0xe9   :  { %v489_v43 = vadd.f32 %v488_v41, %v487_v39  ;;  %v726_v44 = vadd.f32 %v512_v42, %v511_v40  ;;  %v393_v39 = vmul.f32 %v717_v38, %v717_v38 }
  0xea   :  { %v490_v45 = vpop.f32.mrf.mxu0  ;;  %v514_v46 = vpop.f32.mrf.mxu1 }
  0xeb   :  { %345 = vst [vmem:[%s805_s2 + $0x8] sm:$0xff] %v489_v43  ;;  %353 = vst [vmem:[%s805_s2 + $0x48] sm:$0xff] %v726_v44  ;;  %v386_v59 = vmul.f32 %v489_v43, %v489_v43  ;;  %v361_v4 = vadd.f32 %v489_v43, %v486_v37  ;;  %v394_v42 = vmul.f32 %v726_v44, %v726_v44 }
  0xec   :  { %v491_v47 = vpop.f32.mrf.mxu0  ;;  %v515_v48 = vpop.f32.mrf.mxu1 }
  0xed   :  { %v492_v49 = vadd.f32 %v491_v47, %v490_v45  ;;  %v735_v50 = vadd.f32 %v515_v48, %v514_v46  ;;  %v401_v5 = vadd.f32 %v386_v59, %v385_v0 }
  0xee   :  { %v493_v51 = vpop.f32.mrf.mxu0  ;;  %v517_v52 = vpop.f32.mrf.mxu1 }
  0xef   :  { %346 = vst [vmem:[%s805_s2 + $0x10] sm:$0xff] %v492_v49  ;;  %354 = vst [vmem:[%s805_s2 + $0x50] sm:$0xff] %v735_v50  ;;  %v387_v1 = vmul.f32 %v492_v49, %v492_v49  ;;  %v362_v9 = vadd.f32 %v492_v49, %v361_v4  ;;  %v395_v46 = vmul.f32 %v735_v50, %v735_v50 }
  0xf0   :  { %v494_v53 = vpop.f32.mrf.mxu0  ;;  %v518_v54 = vpop.f32.mrf.mxu1 }
  0xf1   :  { %v495_v55 = vadd.f32 %v494_v53, %v493_v51  ;;  %v744_v56 = vadd.f32 %v518_v54, %v517_v52  ;;  %v402_v12 = vadd.f32 %v401_v5, %v387_v1 }
  0xf2   :  { %v496_v57 = vpop.f32.mrf.mxu0  ;;  %v520_v58 = vpop.f32.mrf.mxu1 }
  0xf3   :  { %347 = vst [vmem:[%s805_s2 + $0x18] sm:$0xff] %v495_v55  ;;  %355 = vst [vmem:[%s805_s2 + $0x58] sm:$0xff] %v744_v56  ;;  %v388_v6 = vmul.f32 %v495_v55, %v495_v55  ;;  %v363_v15 = vadd.f32 %v495_v55, %v362_v9  ;;  %v396_v49 = vmul.f32 %v744_v56, %v744_v56 }
  0xf4   :  { %v497_v60 = vpop.f32.mrf.mxu0  ;;  %v521_v61 = vpop.f32.mrf.mxu1 }
  0xf5   :  { %v498_v62 = vadd.f32 %v497_v60, %v496_v57  ;;  %v522_v63 = vadd.f32 %v521_v61, %v520_v58  ;;  %v403_v17 = vadd.f32 %v402_v12, %v388_v6 }
  0xf6   :  { %v499_v2 = vpop.f32.mrf.mxu0  ;;  %v523_v3 = vpop.f32.mrf.mxu1 }
  0xf7   :  { %348 = vst [vmem:[%s805_s2 + $0x20] sm:$0xff] %v498_v62  ;;  %356 = vst [vmem:[%s805_s2 + $0x60] sm:$0xff] %v522_v63  ;;  %v389_v16 = vmul.f32 %v498_v62, %v498_v62  ;;  %v364_v20 = vadd.f32 %v498_v62, %v363_v15 }
  0xf8   :  { %v500_v7 = vpop.f32.mrf.mxu0  ;;  %v524_v8 = vpop.f32.mrf.mxu1 }
  0xf9   :  { %v501_v10 = vadd.f32 %v500_v7, %v499_v2  ;;  %v525_v11 = vadd.f32 %v524_v8, %v523_v3  ;;  %v404_v26 = vadd.f32 %v403_v17, %v389_v16  ;;  %v360_v8 = vld [vmem:[%s803_s3] sm:$0x1] }
  0xfa   :  { %v502_v13 = vpop.f32.mrf.mxu0  ;;  %v526_v14 = vpop.f32.mrf.mxu1 }
  0xfb   :  { %349 = vst [vmem:[%s805_s2 + $0x28] sm:$0xff] %v501_v10  ;;  %357 = vst [vmem:[%s805_s2 + $0x68] sm:$0xff] %v525_v11  ;;  %v390_v21 = vmul.f32 %v501_v10, %v501_v10  ;;  %v365_v27 = vadd.f32 %v501_v10, %v364_v20  ;;  %v398_v57 = vmul.f32 %v525_v11, %v525_v11 }
  0xfc   :  { %v503_v18 = vpop.f32.mrf.mxu0  ;;  %v527_v19 = vpop.f32.mrf.mxu1 }
  0xfd   :  { %v504_v22 = vadd.f32 %v503_v18, %v502_v13  ;;  %v528_v23 = vadd.f32 %v527_v19, %v526_v14  ;;  %v405_v31 = vadd.f32 %v404_v26, %v390_v21 }
  0xfe   :  { %v505_v24 = vpop.f32.mrf.mxu0  ;;  %v529_v25 = vpop.f32.mrf.mxu1 }
  0xff   :  { %350 = vst [vmem:[%s805_s2 + $0x30] sm:$0xff] %v504_v22  ;;  %v391_v28 = vmul.f32 %v504_v22, %v504_v22  ;;  %358 = vst [vmem:[%s805_s2 + $0x70] sm:$0xff] %v528_v23  ;;  %v366_v32 = vadd.f32 %v504_v22, %v365_v27  ;;  %v399_v60 = vmul.f32 %v528_v23, %v528_v23 }
 0x100   :  { %v506_v29 = vpop.f32.mrf.mxu0  ;;  %v530_v30 = vpop.f32.mrf.mxu1 }
 0x101   :  { %v507_v33 = vadd.f32 %v506_v29, %v505_v24  ;;  %v531_v34 = vadd.f32 %v530_v30, %v529_v25  ;;  %v406_v35 = vadd.f32 %v405_v31, %v391_v28 }
 0x103   :  { %351 = vst [vmem:[%s805_s2 + $0x38] sm:$0xff] %v507_v33  ;;  %v367_v36 = vadd.f32 %v507_v33, %v366_v32  ;;  %v392_v37 = vmul.f32 %v507_v33, %v507_v33  ;;  %359 = vst [vmem:[%s805_s2 + $0x78] sm:$0xff] %v531_v34  ;;  %v400_v0 = vmul.f32 %v531_v34, %v531_v34 }
 0x105   :  { %v368_v40 = vadd.f32 %v717_v38, %v367_v36  ;;  %v407_v41 = vadd.f32 %v406_v35, %v392_v37  ;;  %v397_v38 = vmul.f32 %v522_v63, %v522_v63 }
 0x107   :  { %v369_v43 = vadd.f32 %v726_v44, %v368_v40  ;;  %v408_v45 = vadd.f32 %v407_v41, %v393_v39 }
 0x109   :  { %v409_v47 = vadd.f32 %v408_v45, %v394_v42  ;;  %v370_v48 = vadd.f32 %v735_v50, %v369_v43 }
 0x10b   :  { %v371_v51 = vadd.f32 %v744_v56, %v370_v48  ;;  %v410_v52 = vadd.f32 %v409_v47, %v395_v46 }
 0x10d   :  { %v372_v53 = vadd.f32 %v522_v63, %v371_v51  ;;  %v411_v54 = vadd.f32 %v410_v52, %v396_v49 }
 0x10f   :  { %v373_v55 = vadd.f32 %v525_v11, %v372_v53  ;;  %v412_v58 = vadd.f32 %v411_v54, %v397_v38  ;;  %v384_v11 = vld [vmem:[%s804_s4] sm:$0x1] }
 0x111   :  { %v413_v44 = vadd.f32 %v412_v58, %v398_v57  ;;  %v374_v59 = vadd.f32 %v528_v23, %v373_v55 }
 0x113   :  { %v414_v61 = vadd.f32 %v413_v44, %v399_v60  ;;  %v375_v62 = vadd.f32 %v531_v34, %v374_v59 }
 0x115   :  { %v376_v1 = vrot.slane %v375_v62, 4  ;;  %v415_v50 = vadd.f32 %v414_v61, %v400_v0 }
 0x117   :  { %v377_v2 = vadd.f32 %v376_v1, %v375_v62  ;;  %v416_v3 = vrot.slane %v415_v50, 4 }
 0x119   :  { %v378_v4 = vrot.slane %v377_v2, 2  ;;  %v417_v5 = vadd.f32 %v416_v3, %v415_v50 }
 0x11b   :  { %v379_v56 = vadd.f32 %v378_v4, %v377_v2  ;;  %v418_v6 = vrot.slane %v417_v5, 2 }
 0x11d   :  { %v380_v7 = vrot.slane %v379_v56, 1  ;;  %v419_v63 = vadd.f32 %v418_v6, %v417_v5 }
 0x11f   :  { %v381_v9 = vadd.f32 %v380_v7, %v379_v56  ;;  %v420_v10 = vrot.slane %v419_v63, 1 }
 0x121   :  { %v382_v12 = vadd.f32 %v381_v9, %v360_v8  ;;  %v421_v13 = vadd.f32 %v420_v10, %v419_v63 }
 0x123   :  { %383 = vst [vmem:[%s803_s3] sm:$0x1] %v382_v12  ;;  %v422_v14 = vadd.f32 %v421_v13, %v384_v11 }
 0x125   :  { %423 = vst [vmem:[%s804_s4] sm:$0x1] %v422_v14 }

// kernel: _lambda_.18
= control target key start
LH: loop header
LB: loop body
LE: loop exit
PB: predicated region body
PF: predicated region fallthrough
CT: control target
= control target key end

     0   :  { %s391_s0 = inlined_call_operand.vmem [shape: f32[128,128], index: 0, kind: input, shape index: {}]   ;;  %s392_s1 = inlined_call_operand.vmem [shape: f32[1,128], index: 1, kind: input, shape index: {}]   ;;  %s393_s2 = inlined_call_operand.vmem [shape: f32[1,128], index: 2, kind: input, shape index: {}]   ;;  %s394_s3 = inlined_call_operand.vmem [shape: bf16[128,128], index: 3, kind: output, shape index: {}]  }
   0x1   :  { %v14_v0 = vld [vmem:[%s391_s0] sm:$0xff]  ;;  %v15_v1 = vld [vmem:[%s391_s0 + $0x8] sm:$0xff]  ;;  %v16_v6 = vld [vmem:[%s391_s0 + $0x10] sm:$0xff] }
   0x2   :  { %v286_v2 = vld [vmem:[%s392_s1] ss:$0 sm:$0xff]  ;;  %v17_v7 = vld [vmem:[%s391_s0 + $0x18] sm:$0xff]  ;;  %v19_v11 = vld [vmem:[%s391_s0 + $0x28] sm:$0xff] }
   0x3   :  { %v37_v3 = vmul.f32 %v286_v2, %v14_v0  ;;  %v38_v4 = vmul.f32 %v286_v2, %v15_v1  ;;  %v293_v5 = vld [vmem:[%s393_s2] ss:$0 sm:$0xff]  ;;  %v39_v8 = vmul.f32 %v286_v2, %v16_v6  ;;  %v40_v9 = vmul.f32 %v286_v2, %v17_v7  ;;  %v20_v12 = vld [vmem:[%s391_s0 + $0x30] sm:$0xff]  ;;  %v21_v17 = vld [vmem:[%s391_s0 + $0x38] sm:$0xff] }
   0x4   :  { %v18_v10 = vld [vmem:[%s391_s0 + $0x20] sm:$0xff]  ;;  %v42_v16 = vmul.f32 %v286_v2, %v19_v11  ;;  %v43_v20 = vmul.f32 %v286_v2, %v20_v12  ;;  %v44_v21 = vmul.f32 %v286_v2, %v21_v17  ;;  %v23_v27 = vld [vmem:[%s391_s0 + $0x48] sm:$0xff]  ;;  %v24_v32 = vld [vmem:[%s391_s0 + $0x50] sm:$0xff] }
   0x5   :  { %v60_v13 = vadd.f32 %v293_v5, %v37_v3  ;;  %v61_v14 = vadd.f32 %v293_v5, %v38_v4  ;;  %v41_v15 = vmul.f32 %v286_v2, %v18_v10  ;;  %v62_v18 = vadd.f32 %v293_v5, %v39_v8  ;;  %v22_v22 = vld [vmem:[%s391_s0 + $0x40] sm:$0xff]  ;;  %v25_v33 = vld [vmem:[%s391_s0 + $0x58] sm:$0xff]  ;;  %v27_v39 = vld [vmem:[%s391_s0 + $0x68] sm:$0xff] }
   0x6   :  { %v63_v19 = vadd.f32 %v293_v5, %v40_v9  ;;  %v65_v26 = vadd.f32 %v293_v5, %v42_v16  ;;  %v66_v30 = vadd.f32 %v293_v5, %v43_v20  ;;  %v67_v31 = vadd.f32 %v293_v5, %v44_v21  ;;  %v26_v38 = vld [vmem:[%s391_s0 + $0x60] sm:$0xff]  ;;  %v28_v44 = vld [vmem:[%s391_s0 + $0x70] sm:$0xff]  ;;  %v29_v49 = vld [vmem:[%s391_s0 + $0x78] sm:$0xff] }
   0x7   :  { %v76_v23 = vmax.f32 %v60_v13, 0.0  ;;  %v77_v24 = vmax.f32 %v61_v14, 0.0  ;;  %v64_v25 = vadd.f32 %v293_v5, %v41_v15  ;;  %v78_v28 = vmax.f32 %v62_v18, 0.0 }
   0x8   :  { %v79_v29 = vmax.f32 %v63_v19, 0.0  ;;  %v81_v36 = vmax.f32 %v65_v26, 0.0  ;;  %v45_v37 = vmul.f32 %v286_v2, %v22_v22  ;;  %v82_v41 = vmax.f32 %v66_v30, 0.0 }
   0x9   :  { %v213_v34 = vpack.c.bf16 %v77_v24, %v76_v23  ;;  %v80_v35 = vmax.f32 %v64_v25, 0.0  ;;  %v83_v42 = vmax.f32 %v67_v31, 0.0  ;;  %v46_v43 = vmul.f32 %v286_v2, %v23_v27 }
   0xa   :  { %v218_v40 = vpack.c.bf16 %v79_v29, %v78_v28  ;;  %v68_v46 = vadd.f32 %v293_v5, %v45_v37  ;;  %v47_v47 = vmul.f32 %v286_v2, %v24_v32  ;;  %v48_v48 = vmul.f32 %v286_v2, %v25_v33 }
   0xb   :  { %214 = vst [vmem:[%s394_s3] sm:$0xff] %v213_v34   ;;  %v223_v45 = vpack.c.bf16 %v81_v36, %v80_v35  ;;  %v228_v50 = vpack.c.bf16 %v83_v42, %v82_v41  ;;  %v69_v51 = vadd.f32 %v293_v5, %v46_v43  ;;  %v49_v52 = vmul.f32 %v286_v2, %v26_v38 }
   0xc   :  { %250 = vst [vmem:[%s394_s3 + $0x8] sm:$0xff] %v218_v40   ;;  %v50_v53 = vmul.f32 %v286_v2, %v27_v39  ;;  %v84_v54 = vmax.f32 %v68_v46, 0.0  ;;  %v70_v55 = vadd.f32 %v293_v5, %v47_v47  ;;  %v71_v56 = vadd.f32 %v293_v5, %v48_v48 }
   0xd   :  { %251 = vst [vmem:[%s394_s3 + $0x10] sm:$0xff] %v223_v45   ;;  %v51_v57 = vmul.f32 %v286_v2, %v28_v44  ;;  %252 = vst [vmem:[%s394_s3 + $0x18] sm:$0xff] %v228_v50   ;;  %v85_v58 = vmax.f32 %v69_v51, 0.0  ;;  %v72_v59 = vadd.f32 %v293_v5, %v49_v52  ;;  %v52_v61 = vmul.f32 %v286_v2, %v29_v49 }
   0xe   :  { %v73_v60 = vadd.f32 %v293_v5, %v50_v53  ;;  %v86_v62 = vmax.f32 %v70_v55, 0.0  ;;  %v87_v63 = vmax.f32 %v71_v56, 0.0 }
   0xf   :  { %v74_v0 = vadd.f32 %v293_v5, %v51_v57  ;;  %v233_v1 = vpack.c.bf16 %v85_v58, %v84_v54  ;;  %v88_v3 = vmax.f32 %v72_v59, 0.0  ;;  %v75_v6 = vadd.f32 %v293_v5, %v52_v61 }
  0x10   :  { %v89_v4 = vmax.f32 %v73_v60, 0.0  ;;  %v238_v7 = vpack.c.bf16 %v87_v63, %v86_v62 }
  0x11   :  { %v90_v8 = vmax.f32 %v74_v0, 0.0  ;;  %253 = vst [vmem:[%s394_s3 + $0x20] sm:$0xff] %v233_v1   ;;  %v91_v10 = vmax.f32 %v75_v6, 0.0 }
  0x12   :  { %v243_v9 = vpack.c.bf16 %v89_v4, %v88_v3  ;;  %254 = vst [vmem:[%s394_s3 + $0x28] sm:$0xff] %v238_v7  }
  0x13   :  { %v248_v2 = vpack.c.bf16 %v91_v10, %v90_v8 }
  0x14   :  { %255 = vst [vmem:[%s394_s3 + $0x30] sm:$0xff] %v243_v9  }
  0x15   :  { %256 = vst [vmem:[%s394_s3 + $0x38] sm:$0xff] %v248_v2  }

// kernel: _lambda_.20
= control target key start
LH: loop header
LB: loop body
LE: loop exit
PB: predicated region body
PF: predicated region fallthrough
CT: control target
= control target key end

     0   :  { %s133_s0 = inlined_call_operand.vmem [shape: f32[32,128], index: 0, kind: input, shape index: {}]   ;;  %s134_s1 = inlined_call_operand.vmem [shape: f32[1,128], index: 1, kind: input, shape index: {}]   ;;  %s135_s2 = inlined_call_operand.vmem [shape: f32[1,128], index: 2, kind: input, shape index: {}]   ;;  %s136_s3 = inlined_call_operand.vmem [shape: bf16[32,128], index: 3, kind: output, shape index: {}]  }
   0x1   :  { %v14_v0 = vld [vmem:[%s133_s0] sm:$0xff]  ;;  %v15_v1 = vld [vmem:[%s133_s0 + $0x8] sm:$0xff]  ;;  %v16_v6 = vld [vmem:[%s133_s0 + $0x10] sm:$0xff] }
   0x2   :  { %v68_v2 = vld [vmem:[%s134_s1] ss:$0 sm:$0xff]  ;;  %v17_v7 = vld [vmem:[%s133_s0 + $0x18] sm:$0xff] }
   0x3   :  { %v25_v3 = vmul.f32 %v68_v2, %v14_v0  ;;  %v26_v4 = vmul.f32 %v68_v2, %v15_v1  ;;  %v69_v5 = vld [vmem:[%s135_s2] ss:$0 sm:$0xff]  ;;  %v27_v8 = vmul.f32 %v68_v2, %v16_v6  ;;  %v28_v9 = vmul.f32 %v68_v2, %v17_v7 }
   0x5   :  { %v36_v10 = vadd.f32 %v69_v5, %v25_v3  ;;  %v37_v11 = vadd.f32 %v69_v5, %v26_v4  ;;  %v38_v12 = vadd.f32 %v69_v5, %v27_v8  ;;  %v39_v13 = vadd.f32 %v69_v5, %v28_v9 }
   0x7   :  { %v40_v14 = vmax.f32 %v36_v10, 0.0  ;;  %v41_v15 = vmax.f32 %v37_v11, 0.0  ;;  %v42_v16 = vmax.f32 %v38_v12, 0.0  ;;  %v43_v17 = vmax.f32 %v39_v13, 0.0 }
   0x9   :  { %v81_v18 = vpack.c.bf16 %v41_v15, %v40_v14  ;;  %v86_v19 = vpack.c.bf16 %v43_v17, %v42_v16 }
   0xb   :  { %82 = vst [vmem:[%s136_s3] sm:$0xff] %v81_v18   ;;  %88 = vst [vmem:[%s136_s3 + $0x8] sm:$0xff] %v86_v19  }

// kernel: _lambda_.19
= control target key start
LH: loop header
LB: loop body
LE: loop exit
PB: predicated region body
PF: predicated region fallthrough
CT: control target
= control target key end

     0   :  { %v610_v40 = vmov 0.0   ;;  %s786_s1 = inlined_call_operand.vmem [shape: bf16[1,512,128], index: 1, kind: input, shape index: {}]   ;;  %s787_s0 = inlined_call_operand.vmem [shape: bf16[1,32,512], index: 0, kind: input, shape index: {}]   ;;  %s788_s3 = inlined_call_operand.vmem [shape: f32[1,128], index: 3, kind: output, shape index: {1}]   ;;  %s789_s4 = inlined_call_operand.vmem [shape: f32[1,128], index: 4, kind: output, shape index: {2}]   ;;  %s790_s2 = inlined_call_operand.vmem [shape: f32[1,32,128], index: 2, kind: output, shape index: {0}]  }
   0x1   :  { %v566_v0 = vld [vmem:[%s786_s1 + $0x78] sm:$0xff]   ;;  %v570_v4 = vld [vmem:[%s786_s1 + $0x70] sm:$0xff]   ;;  %v574_v8 = vld [vmem:[%s786_s1 + $0x68] sm:$0xff]   ;;  %21 = vst [vmem:[%s788_s3] sm:$0x1] %v610_v40 }
   0x2   :  { %v567_v1 = vld [vmem:[%s786_s1 + $0xf8] sm:$0xff]   ;;  %509 = vmatprep.subr.bf16.mxu0 %v566_v0  ;;  %v571_v5 = vld [vmem:[%s786_s1 + $0xf0] sm:$0xff]   ;;  %v575_v9 = vld [vmem:[%s786_s1 + $0xe8] sm:$0xff]   ;;  %22 = vst [vmem:[%s789_s4] sm:$0x1] %v610_v40 }
   0x3   :  { %v568_v2 = vld [vmem:[%s786_s1 + $0x38] sm:$0xff]   ;;  %537 = vmatprep.subr.bf16.mxu1 %v567_v1  ;;  %v572_v6 = vld [vmem:[%s786_s1 + $0x30] sm:$0xff]   ;;  %v576_v10 = vld [vmem:[%s786_s1 + $0x28] sm:$0xff]  }
   0x4   :  { %v569_v3 = vld [vmem:[%s786_s1 + $0xb8] sm:$0xff]   ;;  %510 = vmatpush3.bf16.msra.mxu0 %v568_v2  ;;  %v573_v7 = vld [vmem:[%s786_s1 + $0xb0] sm:$0xff]   ;;  %v577_v11 = vld [vmem:[%s786_s1 + $0xa8] sm:$0xff]  }
   0x5   :  { %538 = vmatpush3.bf16.msra.mxu1 %v569_v3  ;;  %511 = vmatprep.subr.bf16.mxu0 %v570_v4  ;;  %v578_v12 = vld [vmem:[%s786_s1 + $0x60] sm:$0xff]   ;;  %v582_v16 = vld [vmem:[%s786_s1 + $0x58] sm:$0xff]   ;;  %v586_v20 = vld [vmem:[%s786_s1 + $0x50] sm:$0xff]  }
   0x6   :  { %539 = vmatprep.subr.bf16.mxu1 %v571_v5  ;;  %v579_v13 = vld [vmem:[%s786_s1 + $0xe0] sm:$0xff]   ;;  %v583_v17 = vld [vmem:[%s786_s1 + $0xd8] sm:$0xff]   ;;  %v587_v21 = vld [vmem:[%s786_s1 + $0xd0] sm:$0xff]  }
   0x7   :  { %v580_v14 = vld [vmem:[%s786_s1 + $0x20] sm:$0xff]   ;;  %v584_v18 = vld [vmem:[%s786_s1 + $0x18] sm:$0xff]   ;;  %v588_v22 = vld [vmem:[%s786_s1 + $0x10] sm:$0xff]  }
   0x8   :  { %512 = vmatpush3.bf16.msra.mxu0 %v572_v6  ;;  %v581_v15 = vld [vmem:[%s786_s1 + $0xa0] sm:$0xff]   ;;  %v585_v19 = vld [vmem:[%s786_s1 + $0x98] sm:$0xff]   ;;  %v589_v23 = vld [vmem:[%s786_s1 + $0x90] sm:$0xff]  }
   0x9   :  { %540 = vmatpush3.bf16.msra.mxu1 %v573_v7  ;;  %513 = vmatprep.subr.bf16.mxu0 %v574_v8  ;;  %v590_v24 = vld [vmem:[%s786_s1 + $0x48] sm:$0xff]   ;;  %v594_v28 = vld [vmem:[%s786_s1 + $0x40] sm:$0xff]  }
   0xa   :  { %541 = vmatprep.subr.bf16.mxu1 %v575_v9  ;;  %v591_v25 = vld [vmem:[%s786_s1 + $0xc8] sm:$0xff]   ;;  %v595_v29 = vld [vmem:[%s786_s1 + $0xc0] sm:$0xff]  }
   0xb   :  { %v592_v26 = vld [vmem:[%s786_s1 + $0x8] sm:$0xff]   ;;  %v596_v30 = vld [vmem:[%s786_s1] sm:$0xff]  }
   0xc   :  { %514 = vmatpush3.bf16.msra.mxu0 %v576_v10  ;;  %v593_v27 = vld [vmem:[%s786_s1 + $0x88] sm:$0xff]   ;;  %v597_v31 = vld [vmem:[%s786_s1 + $0x80] sm:$0xff]  }
   0xd   :  { %542 = vmatpush3.bf16.msra.mxu1 %v577_v11  ;;  %515 = vmatprep.subr.bf16.mxu0 %v578_v12  ;;  %v598_v32 = vld [vmem:[%s787_s0] ss:$16 sps:$4 sm:$0xff]   ;;  %v600_v33 = vld [vmem:[%s787_s0 + $0x4] ss:$16 sps:$4 sm:$0xff]   ;;  %v601_v34 = vld [vmem:[%s787_s0 + $0x8] ss:$16 sps:$4 sm:$0xff]  }
   0xe   :  { %543 = vmatprep.subr.bf16.mxu1 %v579_v13  ;;  %v603_v35 = vld [vmem:[%s787_s0 + $0xc] ss:$16 sps:$4 sm:$0xff]   ;;  %359 = vmatprep.mubr.bf16.mxu0 %v600_v33  ;;  %v604_v36 = vld [vmem:[%s787_s0 + $0x24] ss:$16 sps:$4 sm:$0xff]   ;;  %v608_v38 = vld [vmem:[%s787_s0 + $0x20] ss:$16 sps:$4 sm:$0xff]  }
   0xf   :  { %408 = vmatprep.mubr.bf16.mxu1 %v603_v35  ;;  %v606_v37 = vld [vmem:[%s787_s0 + $0x2c] ss:$16 sps:$4 sm:$0xff]   ;;  %v609_v39 = vld [vmem:[%s787_s0 + $0x28] ss:$16 sps:$4 sm:$0xff]  }
  0x10   :  { %516 = vmatpush3.bf16.msra.mxu0 %v580_v14 }
  0x11   :  { %544 = vmatpush3.bf16.msra.mxu1 %v581_v15  ;;  %517 = vmatprep.subr.bf16.mxu0 %v582_v16 }
  0x12   :  { %545 = vmatprep.subr.bf16.mxu1 %v583_v17 }
  0x14   :  { %518 = vmatpush3.bf16.msra.mxu0 %v584_v18 }
  0x15   :  { %546 = vmatpush3.bf16.msra.mxu1 %v585_v19  ;;  %519 = vmatprep.subr.bf16.mxu0 %v586_v20 }
  0x16   :  { %547 = vmatprep.subr.bf16.mxu1 %v587_v21 }
  0x18   :  { %520 = vmatpush3.bf16.msra.mxu0 %v588_v22 }
  0x19   :  { %548 = vmatpush3.bf16.msra.mxu1 %v589_v23  ;;  %521 = vmatprep.subr.bf16.mxu0 %v590_v24  ;;  %v429_v24 = vld [vmem:[%s788_s3] sm:$0x1] }
  0x1a   :  { %549 = vmatprep.subr.bf16.mxu1 %v591_v25 }
  0x1c   :  { %522 = vmatpush3.bf16.msra.mxu0 %v592_v26 }
  0x1d   :  { %550 = vmatpush3.bf16.msra.mxu1 %v593_v27  ;;  %523 = vmatprep.subr.bf16.mxu0 %v594_v28  ;;  %v441_v27 = vld [vmem:[%s789_s4] sm:$0x1] }
  0x1e   :  { %551 = vmatprep.subr.bf16.mxu1 %v595_v29 }
  0x20   :  { %524 = vmatpush3.bf16.msra.mxu0 %v596_v30 }
  0x21   :  { %552 = vmatpush3.bf16.msra.mxu1 %v597_v31 }
  0x23   :  { %360 = vmatmul.mubr.bf16.vlgmr.msra.gmra.mxu0 %v598_v32 }
  0x24   :  { %409 = vmatmul.mubr.bf16.vlgmr.msra.gmra.mxu1 %v601_v34  ;;  %367 = vmatprep.mubr.bf16.mxu0 %v604_v36 }
  0x25   :  { %416 = vmatprep.mubr.bf16.mxu1 %v606_v37 }
  0x2b   :  { %368 = vmatmul.mubr.bf16.gmra.mxu0 %v608_v38 }
  0x2c   :  { %417 = vmatmul.mubr.bf16.gmra.mxu1 %v609_v39 }
  0xe3   :  { %v525_v41 = vpop.f32.mrf.mxu0 }
  0xe4   :  { %v553_v42 = vpop.f32.mrf.mxu1 }
  0xe5   :  { %v526_v43 = vpop.f32.mrf.mxu0 }
  0xe6   :  { %v527_v44 = vadd.f32 %v526_v43, %v525_v41  ;;  %v554_v45 = vpop.f32.mrf.mxu1 }
  0xe7   :  { %v555_v46 = vadd.f32 %v554_v45, %v553_v42  ;;  %v528_v47 = vpop.f32.mrf.mxu0 }
  0xe8   :  { %v556_v48 = vpop.f32.mrf.mxu1 }
  0xe9   :  { %v411_v49 = vadd.f32 %v555_v46, %v527_v44  ;;  %v529_v50 = vpop.f32.mrf.mxu0 }
  0xea   :  { %v530_v51 = vadd.f32 %v529_v50, %v528_v47  ;;  %v557_v52 = vpop.f32.mrf.mxu1 }
  0xeb   :  { %425 = vst [vmem:[%s790_s2] sm:$0xff] %v411_v49  ;;  %v558_v53 = vadd.f32 %v557_v52, %v556_v48  ;;  %v531_v54 = vpop.f32.mrf.mxu0  ;;  %v442_v4 = vmul.f32 %v411_v49, %v411_v49 }
  0xec   :  { %v559_v55 = vpop.f32.mrf.mxu1 }
  0xed   :  { %v414_v56 = vadd.f32 %v558_v53, %v530_v51  ;;  %v532_v57 = vpop.f32.mrf.mxu0 }
  0xee   :  { %v533_v58 = vadd.f32 %v532_v57, %v531_v54  ;;  %v560_v59 = vpop.f32.mrf.mxu1 }
  0xef   :  { %426 = vst [vmem:[%s790_s2 + $0x8] sm:$0xff] %v414_v56  ;;  %v561_v60 = vadd.f32 %v560_v59, %v559_v55  ;;  %v534_v61 = vpop.f32.mrf.mxu0  ;;  %v443_v63 = vmul.f32 %v414_v56, %v414_v56  ;;  %v430_v5 = vadd.f32 %v414_v56, %v411_v49 }
  0xf0   :  { %v562_v62 = vpop.f32.mrf.mxu1 }
  0xf1   :  { %v419_v0 = vadd.f32 %v561_v60, %v533_v58  ;;  %v535_v1 = vpop.f32.mrf.mxu0  ;;  %v446_v8 = vadd.f32 %v443_v63, %v442_v4 }
  0xf2   :  { %v536_v2 = vadd.f32 %v535_v1, %v534_v61  ;;  %v563_v3 = vpop.f32.mrf.mxu1 }
  0xf3   :  { %427 = vst [vmem:[%s790_s2 + $0x10] sm:$0xff] %v419_v0  ;;  %v444_v6 = vmul.f32 %v419_v0, %v419_v0  ;;  %v564_v7 = vadd.f32 %v563_v3, %v562_v62  ;;  %v431_v9 = vadd.f32 %v430_v5, %v419_v0 }
  0xf5   :  { %v422_v10 = vadd.f32 %v564_v7, %v536_v2  ;;  %v447_v11 = vadd.f32 %v446_v8, %v444_v6 }
  0xf7   :  { %428 = vst [vmem:[%s790_s2 + $0x18] sm:$0xff] %v422_v10  ;;  %v432_v12 = vadd.f32 %v431_v9, %v422_v10  ;;  %v445_v13 = vmul.f32 %v422_v10, %v422_v10 }
  0xf9   :  { %v433_v14 = vrot.slane %v432_v12, 4  ;;  %v448_v15 = vadd.f32 %v447_v11, %v445_v13 }
  0xfb   :  { %v434_v16 = vadd.f32 %v433_v14, %v432_v12  ;;  %v449_v17 = vrot.slane %v448_v15, 4 }
  0xfd   :  { %v435_v18 = vrot.slane %v434_v16, 2  ;;  %v450_v19 = vadd.f32 %v449_v17, %v448_v15 }
  0xff   :  { %v436_v20 = vadd.f32 %v435_v18, %v434_v16  ;;  %v451_v21 = vrot.slane %v450_v19, 2 }
 0x101   :  { %v437_v22 = vrot.slane %v436_v20, 1  ;;  %v452_v23 = vadd.f32 %v451_v21, %v450_v19 }
 0x103   :  { %v438_v25 = vadd.f32 %v437_v22, %v436_v20  ;;  %v453_v26 = vrot.slane %v452_v23, 1 }
 0x105   :  { %v439_v28 = vadd.f32 %v438_v25, %v429_v24  ;;  %v454_v29 = vadd.f32 %v453_v26, %v452_v23 }
 0x107   :  { %440 = vst [vmem:[%s788_s3] sm:$0x1] %v439_v28  ;;  %v455_v30 = vadd.f32 %v454_v29, %v441_v27 }
 0x109   :  { %456 = vst [vmem:[%s789_s4] sm:$0x1] %v455_v30 }

// kernel: _lambda_.22
= control target key start
LH: loop header
LB: loop body
LE: loop exit
PB: predicated region body
PF: predicated region fallthrough
CT: control target
= control target key end

     0   :  { %s72_s0 = inlined_call_operand.vmem [shape: f32[8,128], index: 0, kind: input, shape index: {}]   ;;  %s73_s1 = inlined_call_operand.vmem [shape: f32[1,128], index: 1, kind: input, shape index: {}]   ;;  %s74_s2 = inlined_call_operand.vmem [shape: f32[1,128], index: 2, kind: input, shape index: {}]   ;;  %s75_s3 = inlined_call_operand.vmem [shape: bf16[8,128], index: 3, kind: output, shape index: {}]  }
   0x1   :  { %v14_v0 = vld [vmem:[%s72_s0] sm:$0xff] }
   0x2   :  { %v38_v1 = vld [vmem:[%s73_s1] ss:$0 sm:$0xff] }
   0x3   :  { %v39_v2 = vld [vmem:[%s74_s2] ss:$0 sm:$0xff]  ;;  %v22_v3 = vmul.f32 %v38_v1, %v14_v0 }
   0x5   :  { %v30_v4 = vadd.f32 %v39_v2, %v22_v3 }
   0x7   :  { %v31_v5 = vmax.f32 %v30_v4, 0.0 }
   0x9   :  { %v32_v6 = vpack.c.bf16 %v31_v5, %v31_v5 }
   0xb   :  { %33 = vst [vmem:[%s75_s3] sm:$0xf] %v32_v6 }

// kernel: _lambda_.24
= control target key start
LH: loop header
LB: loop body
LE: loop exit
PB: predicated region body
PF: predicated region fallthrough
CT: control target
= control target key end

     0   :  { %s262_s12 = smov 0   ;;  %s298_s0 = inlined_call_operand.vmem [shape: f32[32,128], index: 0, kind: input, shape index: {}]   ;;  %s299_s1 = inlined_call_operand.vmem [shape: f32[1,128], index: 1, kind: input, shape index: {}]   ;;  %s300_s2 = inlined_call_operand.vmem [shape: f32[1,128], index: 2, kind: input, shape index: {}]   ;;  %s301_s3 = inlined_call_operand.vmem [shape: bf16[32,128], index: 3, kind: output, shape index: {}]  }
   0x1 LB: > { %s239_s13 = sadd.s32 4294967295, %s264_s12   ;;  %p243_p0 = scmp.ge.s32.totalorder %s264_s12, 1  ;;  %s264_s12 = sphi %s262_s12, %s13_s12  }
   0x2   : > { %p136_p1 = scmp.lt.s32.totalorder %s264_s12, 5 }
   0x4   : > { %p137_p2 = pnand %p243_p0, %p136_p1 }
   0x5   : > { %p158_p3 = scmp.lt.s32.totalorder (!%p137_p2), %s239_s13, 3 }
   0x6   : > { %140 = sbr.rel (%p137_p2) target bundleno = 24 (0x18), region = 32 }
   0xb   : > { %s303_s13 = smov (!%p158_p3, %s239_s13), 3  ;;  %v246_v0 = vld [vmem:[%s299_s1] ss:$0 sm:$0xff] }
   0xc   : > { %s244_s14 = sshll.u32 %s303_s13, 3  ;;  %v247_v2 = vld [vmem:[%s300_s2] ss:$0 sm:$0xff]  ;;  %s245_s22 = sshll.u32 %s303_s13, 2 }
   0xd   : > { %s161_s19 = scalar_lea.vmem %s298_s0, %s244_s14  ;;  %s165_s25 = scalar_lea.vmem %s301_s3, %s245_s22 }
   0xe   : > { %v166_v1 = vld [vmem:[%s161_s19] sm:$0xff] }
   0xf   : > { %v174_v3 = vmul.f32 %v246_v0, %v166_v1 }
  0x11   : > { %v182_v4 = vadd.f32 %v247_v2, %v174_v3 }
  0x13   : > { %v183_v5 = vmax.f32 %v182_v4, 0.0 }
  0x15   : > { %v184_v6 = vpack.c.bf16 %v183_v5, %v183_v5 }
  0x17   : > { %185 = vst [vmem:[%s165_s25] sm:$0xf] %v184_v6 }
  0x18 PF: > { %s13_s12 = sadd.s32 1, %s264_s12  }
  0x19   : > { %p10_p4 = scmp.ge.s32.totalorder %s13_s12, 6  }
  0x1b   :  { %12 = sbr.rel (!%p10_p4) target bundleno = 1 (0x1), region = 62 }

// kernel: _lambda_.23
= control target key start
LH: loop header
LB: loop body
LE: loop exit
PB: predicated region body
PF: predicated region fallthrough
CT: control target
= control target key end

     0   :  { %s937_s15 = smov 0   ;;  %s939_s16 = smov 0   ;;  %s1032_s0 = inlined_call_operand.vmem [shape: bf16[4,8,512], index: 0, kind: input, shape index: {}]   ;;  %s1033_s1 = inlined_call_operand.vmem [shape: bf16[4,512,128], index: 1, kind: input, shape index: {}]   ;;  %s1034_s2 = inlined_call_operand.vmem [shape: f32[4,8,128], index: 2, kind: output, shape index: {0}]   ;;  %s1035_s3 = inlined_call_operand.vmem [shape: f32[1,128], index: 3, kind: output, shape index: {1}]   ;;  %s1036_s4 = inlined_call_operand.vmem [shape: f32[1,128], index: 4, kind: output, shape index: {2}]  }
   0x1   :  { %s941_s17 = smov 0  }
   0x2 LB: > { %s27_s18 = sadd.s32 1, %s905_s16  ;;  %p734_p0 = scmp.ge.s32.totalorder %s909_s17, 1  ;;  %s909_s17 = sphi %s941_s17, %s15_s17   ;;  %s905_s16 = sphi %s939_s16, %s1038_s16   ;;  %s901_s15 = sphi %s937_s15, %s1037_s15  }
   0x3   : > { %p29_p1 = scmp.ge.s32.totalorder %s27_s18, 4  ;;  %p187_p2 = scmp.lt.s32.totalorder %s909_s17, 5 }
   0x5   : > { %s1040_s18 = smov (%p29_p1, %s27_s18), 0  ;;  %p188_p3 = pnand %p734_p0, %p187_p2 }
   0x6   : > { %p224_p4 = scmp.lt.s32.totalorder (!%p188_p3), %s901_s15, 3  ;;  %p246_p5 = scmp.eq.s32.totalorder (!%p188_p3), %s901_s15, 0 }
   0x7   : > { %191 = sbr.rel (%p188_p3) target bundleno = 268 (0x10c), region = 28 }
   0xc   : > { %s1042_s15 = smov (!%p224_p4, %s901_s15), 3  ;;  %251 = sbr.rel (!%p246_p5) target bundleno = 17 (0x11), region = 32  ;;  %v911_v0 = vmov (%p246_p5), 0.0  }
   0xd   : > { %s779_s19 = sshll.u32 %s1042_s15, 4  ;;  %s780_s20 = sshll.u32 %s1042_s15, 8  ;;  %252 = vst [vmem:[%s1035_s3] sm:$0x1] (%p246_p5), %v911_v0  ;;  %253 = vst [vmem:[%s1036_s4] sm:$0x1] (%p246_p5), %v911_v0 }
   0xe   : > { %s958_s23 = scalar_lea.vmem %s1032_s0, %s779_s19  ;;  %s963_s26 = scalar_lea.vmem %s1033_s1, %s780_s20 }
   0xf   : > { %s739_s27 = sshll.u32 %s1042_s15, 3 }
  0x10   : > { %s968_s30 = scalar_lea.vmem %s1034_s2, %s739_s27 }
  0x11 PF: > { %v851_v1 = vld [vmem:[%s963_s26 + $0x78] sm:$0xff]   ;;  %v855_v5 = vld [vmem:[%s963_s26 + $0x70] sm:$0xff]   ;;  %v859_v9 = vld [vmem:[%s963_s26 + $0x68] sm:$0xff]  }
  0x12   : > { %v852_v2 = vld [vmem:[%s963_s26 + $0xf8] sm:$0xff]   ;;  %782 = vmatprep.subr.bf16.mxu0 %v851_v1  ;;  %v856_v6 = vld [vmem:[%s963_s26 + $0xf0] sm:$0xff]   ;;  %v860_v10 = vld [vmem:[%s963_s26 + $0xe8] sm:$0xff]  }
  0x13   : > { %v853_v3 = vld [vmem:[%s963_s26 + $0x38] sm:$0xff]   ;;  %804 = vmatprep.subr.bf16.mxu1 %v852_v2  ;;  %v857_v7 = vld [vmem:[%s963_s26 + $0x30] sm:$0xff]   ;;  %v861_v11 = vld [vmem:[%s963_s26 + $0x28] sm:$0xff]  }
  0x14   : > { %v854_v4 = vld [vmem:[%s963_s26 + $0xb8] sm:$0xff]   ;;  %783 = vmatpush3.bf16.msra.mxu0 %v853_v3  ;;  %v858_v8 = vld [vmem:[%s963_s26 + $0xb0] sm:$0xff]   ;;  %v862_v12 = vld [vmem:[%s963_s26 + $0xa8] sm:$0xff]  }
  0x15   : > { %805 = vmatpush3.bf16.msra.mxu1 %v854_v4  ;;  %784 = vmatprep.subr.bf16.mxu0 %v855_v5  ;;  %v863_v13 = vld [vmem:[%s963_s26 + $0x60] sm:$0xff]   ;;  %v867_v17 = vld [vmem:[%s963_s26 + $0x58] sm:$0xff]   ;;  %v871_v21 = vld [vmem:[%s963_s26 + $0x50] sm:$0xff]  }
  0x16   : > { %806 = vmatprep.subr.bf16.mxu1 %v856_v6  ;;  %v864_v14 = vld [vmem:[%s963_s26 + $0xe0] sm:$0xff]   ;;  %v868_v18 = vld [vmem:[%s963_s26 + $0xd8] sm:$0xff]   ;;  %v872_v22 = vld [vmem:[%s963_s26 + $0xd0] sm:$0xff]  }
  0x17   : > { %v865_v15 = vld [vmem:[%s963_s26 + $0x20] sm:$0xff]   ;;  %v869_v19 = vld [vmem:[%s963_s26 + $0x18] sm:$0xff]   ;;  %v873_v23 = vld [vmem:[%s963_s26 + $0x10] sm:$0xff]  }
  0x18   : > { %785 = vmatpush3.bf16.msra.mxu0 %v857_v7  ;;  %v866_v16 = vld [vmem:[%s963_s26 + $0xa0] sm:$0xff]   ;;  %v870_v20 = vld [vmem:[%s963_s26 + $0x98] sm:$0xff]   ;;  %v874_v24 = vld [vmem:[%s963_s26 + $0x90] sm:$0xff]  }
  0x19   : > { %807 = vmatpush3.bf16.msra.mxu1 %v858_v8  ;;  %786 = vmatprep.subr.bf16.mxu0 %v859_v9  ;;  %v875_v25 = vld [vmem:[%s963_s26 + $0x48] sm:$0xff]   ;;  %v879_v29 = vld [vmem:[%s963_s26 + $0x40] sm:$0xff]  }
  0x1a   : > { %808 = vmatprep.subr.bf16.mxu1 %v860_v10  ;;  %v876_v26 = vld [vmem:[%s963_s26 + $0xc8] sm:$0xff]   ;;  %v880_v30 = vld [vmem:[%s963_s26 + $0xc0] sm:$0xff]  }
  0x1b   : > { %v877_v27 = vld [vmem:[%s963_s26 + $0x8] sm:$0xff]   ;;  %v881_v31 = vld [vmem:[%s963_s26] sm:$0xff]  }
  0x1c   : > { %787 = vmatpush3.bf16.msra.mxu0 %v861_v11  ;;  %v878_v28 = vld [vmem:[%s963_s26 + $0x88] sm:$0xff]   ;;  %v882_v32 = vld [vmem:[%s963_s26 + $0x80] sm:$0xff]  }
  0x1d   : > { %809 = vmatpush3.bf16.msra.mxu1 %v862_v12  ;;  %788 = vmatprep.subr.bf16.mxu0 %v863_v13  ;;  %v254_v33 = vld [vmem:[%s958_s23] sm:$0xff]  ;;  %v255_v34 = vld [vmem:[%s958_s23 + $0x8] sm:$0xff] }
  0x1e   : > { %810 = vmatprep.subr.bf16.mxu1 %v864_v14  ;;  %v741_v35 = vcombine.low %v254_v33, %v254_v33  ;;  %v742_v36 = vcombine.high %v254_v33, %v254_v33  ;;  %v743_v37 = vcombine.low %v255_v34, %v255_v34  ;;  %v744_v38 = vcombine.high %v255_v34, %v255_v34  ;;  %v607_v60 = vld [vmem:[%s1035_s3] sm:$0x1] }
  0x1f   : > { %v616_v63 = vld [vmem:[%s1036_s4] sm:$0x1] }
  0x20   : > { %789 = vmatpush3.bf16.msra.mxu0 %v865_v15  ;;  %558 = vmatprep.mubr.bf16.mxu0 %v742_v36 }
  0x21   : > { %811 = vmatpush3.bf16.msra.mxu1 %v866_v16  ;;  %790 = vmatprep.subr.bf16.mxu0 %v867_v17 }
  0x22   : > { %812 = vmatprep.subr.bf16.mxu1 %v868_v18  ;;  %598 = vmatprep.mubr.bf16.mxu1 %v744_v38 }
  0x24   : > { %791 = vmatpush3.bf16.msra.mxu0 %v869_v19 }
  0x25   : > { %813 = vmatpush3.bf16.msra.mxu1 %v870_v20  ;;  %792 = vmatprep.subr.bf16.mxu0 %v871_v21 }
  0x26   : > { %814 = vmatprep.subr.bf16.mxu1 %v872_v22 }
  0x28   : > { %793 = vmatpush3.bf16.msra.mxu0 %v873_v23 }
  0x29   : > { %815 = vmatpush3.bf16.msra.mxu1 %v874_v24  ;;  %794 = vmatprep.subr.bf16.mxu0 %v875_v25 }
  0x2a   : > { %816 = vmatprep.subr.bf16.mxu1 %v876_v26 }
  0x2c   : > { %795 = vmatpush3.bf16.msra.mxu0 %v877_v27 }
  0x2d   : > { %817 = vmatpush3.bf16.msra.mxu1 %v878_v28  ;;  %796 = vmatprep.subr.bf16.mxu0 %v879_v29 }
  0x2e   : > { %818 = vmatprep.subr.bf16.mxu1 %v880_v30 }
  0x30   : > { %797 = vmatpush3.bf16.msra.mxu0 %v881_v31 }
  0x31   : > { %819 = vmatpush3.bf16.msra.mxu1 %v882_v32 }
  0x33   : > { %559 = vmatmul.mubr.bf16.vlgmr.msra.gmra.mxu0 %v741_v35 }
  0x34   : > { %599 = vmatmul.mubr.bf16.vlgmr.msra.gmra.mxu1 %v743_v37 }
  0xf3   : > { %v798_v39 = vpop.f32.mrf.mxu0 }
  0xf4   : > { %v820_v40 = vpop.f32.mrf.mxu1 }
  0xf5   : > { %v799_v41 = vpop.f32.mrf.mxu0 }
  0xf6   : > { %v821_v42 = vpop.f32.mrf.mxu1  ;;  %v800_v43 = vadd.f32 %v799_v41, %v798_v39 }
  0xf7   : > { %v822_v44 = vadd.f32 %v821_v42, %v820_v40  ;;  %v801_v45 = vpop.f32.mrf.mxu0 }
  0xf8   : > { %v823_v46 = vpop.f32.mrf.mxu1 }
  0xf9   : > { %v601_v47 = vadd.f32 %v822_v44, %v800_v43  ;;  %v802_v48 = vpop.f32.mrf.mxu0 }
  0xfa   : > { %v824_v49 = vpop.f32.mrf.mxu1 }
  0xfb   : > { %606 = vst [vmem:[%s968_s30] sm:$0xff] %v601_v47  ;;  %v608_v50 = vrot.slane %v601_v47, 4  ;;  %v617_v51 = vmul.f32 %v601_v47, %v601_v47 }
  0xfd   : > { %v609_v52 = vadd.f32 %v608_v50, %v601_v47  ;;  %v618_v53 = vrot.slane %v617_v51, 4 }
  0xff   : > { %v610_v54 = vrot.slane %v609_v52, 2  ;;  %v619_v55 = vadd.f32 %v618_v53, %v617_v51 }
 0x101   : > { %v611_v56 = vadd.f32 %v610_v54, %v609_v52  ;;  %v620_v57 = vrot.slane %v619_v55, 2 }
 0x103   : > { %v612_v58 = vrot.slane %v611_v56, 1  ;;  %v621_v59 = vadd.f32 %v620_v57, %v619_v55 }
 0x105   : > { %v613_v61 = vadd.f32 %v612_v58, %v611_v56  ;;  %v622_v62 = vrot.slane %v621_v59, 1 }
 0x107   : > { %v614_v0 = vadd.f32 %v613_v61, %v607_v60  ;;  %v623_v1 = vadd.f32 %v622_v62, %v621_v59 }
 0x109   : > { %615 = vst [vmem:[%s1035_s3] sm:$0x1] %v614_v0  ;;  %v624_v2 = vadd.f32 %v623_v1, %v616_v63 }
 0x10b   : > { %625 = vst [vmem:[%s1036_s4] sm:$0x1] %v624_v2 }
 0x10c PF: > { %s15_s17 = sadd.s32 1, %s909_s17   ;;  %s1037_s15 = smov %s905_s16 }
 0x10d   : > { %p12_p6 = scmp.ge.s32.totalorder %s15_s17, 6   ;;  %s1038_s16 = smov %s1040_s18 }
 0x10f   :  { %14 = sbr.rel (!%p12_p6) target bundleno = 2 (0x2), region = 81 }

// kernel: _lambda_.21
= control target key start
LH: loop header
LB: loop body
LE: loop exit
PB: predicated region body
PF: predicated region fallthrough
CT: control target
= control target key end

     0   :  { %s1243_s1 = inlined_call_operand.vmem [shape: bf16[1,1024,128], index: 1, kind: input, shape index: {}]   ;;  %s1244_s0 = inlined_call_operand.vmem [shape: bf16[1,8,1024], index: 0, kind: input, shape index: {}]   ;;  %s1245_s3 = inlined_call_operand.vmem [shape: f32[1,128], index: 3, kind: output, shape index: {1}]   ;;  %s1246_s4 = inlined_call_operand.vmem [shape: f32[1,128], index: 4, kind: output, shape index: {2}]   ;;  %s1247_s2 = inlined_call_operand.vmem [shape: f32[1,8,128], index: 2, kind: output, shape index: {0}]  }
   0x1   :  { %v920_v0 = vld [vmem:[%s1243_s1 + $0x78] sm:$0xff]   ;;  %v924_v4 = vld [vmem:[%s1243_s1 + $0x70] sm:$0xff]   ;;  %v928_v8 = vld [vmem:[%s1243_s1 + $0x68] sm:$0xff]  }
   0x2   :  { %v921_v1 = vld [vmem:[%s1243_s1 + $0xf8] sm:$0xff]   ;;  %831 = vmatprep.subr.bf16.mxu0 %v920_v0  ;;  %v925_v5 = vld [vmem:[%s1243_s1 + $0xf0] sm:$0xff]   ;;  %v929_v9 = vld [vmem:[%s1243_s1 + $0xe8] sm:$0xff]  }
   0x3   :  { %v922_v2 = vld [vmem:[%s1243_s1 + $0x38] sm:$0xff]   ;;  %853 = vmatprep.subr.bf16.mxu1 %v921_v1  ;;  %v926_v6 = vld [vmem:[%s1243_s1 + $0x30] sm:$0xff]   ;;  %v930_v10 = vld [vmem:[%s1243_s1 + $0x28] sm:$0xff]  }
   0x4   :  { %v923_v3 = vld [vmem:[%s1243_s1 + $0xb8] sm:$0xff]   ;;  %832 = vmatpush3.bf16.msra.mxu0 %v922_v2  ;;  %v927_v7 = vld [vmem:[%s1243_s1 + $0xb0] sm:$0xff]   ;;  %v931_v11 = vld [vmem:[%s1243_s1 + $0xa8] sm:$0xff]  }
   0x5   :  { %854 = vmatpush3.bf16.msra.mxu1 %v923_v3  ;;  %833 = vmatprep.subr.bf16.mxu0 %v924_v4  ;;  %v932_v12 = vld [vmem:[%s1243_s1 + $0x60] sm:$0xff]   ;;  %v936_v16 = vld [vmem:[%s1243_s1 + $0x58] sm:$0xff]   ;;  %v940_v20 = vld [vmem:[%s1243_s1 + $0x50] sm:$0xff]  }
   0x6   :  { %855 = vmatprep.subr.bf16.mxu1 %v925_v5  ;;  %v933_v13 = vld [vmem:[%s1243_s1 + $0xe0] sm:$0xff]   ;;  %v937_v17 = vld [vmem:[%s1243_s1 + $0xd8] sm:$0xff]   ;;  %v941_v21 = vld [vmem:[%s1243_s1 + $0xd0] sm:$0xff]  }
   0x7   :  { %v934_v14 = vld [vmem:[%s1243_s1 + $0x20] sm:$0xff]   ;;  %v938_v18 = vld [vmem:[%s1243_s1 + $0x18] sm:$0xff]   ;;  %v942_v22 = vld [vmem:[%s1243_s1 + $0x10] sm:$0xff]  }
   0x8   :  { %834 = vmatpush3.bf16.msra.mxu0 %v926_v6  ;;  %v935_v15 = vld [vmem:[%s1243_s1 + $0xa0] sm:$0xff]   ;;  %v939_v19 = vld [vmem:[%s1243_s1 + $0x98] sm:$0xff]   ;;  %v943_v23 = vld [vmem:[%s1243_s1 + $0x90] sm:$0xff]  }
   0x9   :  { %856 = vmatpush3.bf16.msra.mxu1 %v927_v7  ;;  %835 = vmatprep.subr.bf16.mxu0 %v928_v8  ;;  %v944_v24 = vld [vmem:[%s1243_s1 + $0x48] sm:$0xff]   ;;  %v948_v28 = vld [vmem:[%s1243_s1 + $0x40] sm:$0xff]   ;;  %v956_v38 = vld [vmem:[%s1243_s1 + $0x178] sm:$0xff]  }
   0xa   :  { %857 = vmatprep.subr.bf16.mxu1 %v929_v9  ;;  %v945_v25 = vld [vmem:[%s1243_s1 + $0xc8] sm:$0xff]   ;;  %v949_v29 = vld [vmem:[%s1243_s1 + $0xc0] sm:$0xff]   ;;  %v957_v39 = vld [vmem:[%s1243_s1 + $0x1f8] sm:$0xff]  }
   0xb   :  { %v946_v26 = vld [vmem:[%s1243_s1 + $0x8] sm:$0xff]   ;;  %v950_v30 = vld [vmem:[%s1243_s1] sm:$0xff]   ;;  %v958_v40 = vld [vmem:[%s1243_s1 + $0x138] sm:$0xff]  }
   0xc   :  { %836 = vmatpush3.bf16.msra.mxu0 %v930_v10  ;;  %v947_v27 = vld [vmem:[%s1243_s1 + $0x88] sm:$0xff]   ;;  %v951_v31 = vld [vmem:[%s1243_s1 + $0x80] sm:$0xff]   ;;  %v959_v41 = vld [vmem:[%s1243_s1 + $0x1b8] sm:$0xff]  }
   0xd   :  { %858 = vmatpush3.bf16.msra.mxu1 %v931_v11  ;;  %837 = vmatprep.subr.bf16.mxu0 %v932_v12  ;;  %v23_v32 = vld [vmem:[%s1244_s0] sm:$0xff]  ;;  %v24_v33 = vld [vmem:[%s1244_s0 + $0x8] sm:$0xff]  ;;  %v960_v42 = vld [vmem:[%s1243_s1 + $0x170] sm:$0xff]   ;;  %v992_v12 = vmov 0.0  }
   0xe   :  { %859 = vmatprep.subr.bf16.mxu1 %v933_v13  ;;  %v759_v34 = vcombine.low %v23_v32, %v23_v32  ;;  %v760_v35 = vcombine.high %v23_v32, %v23_v32  ;;  %v761_v36 = vcombine.low %v24_v33, %v24_v33  ;;  %v762_v37 = vcombine.high %v24_v33, %v24_v33  ;;  %v961_v43 = vld [vmem:[%s1243_s1 + $0x1f0] sm:$0xff]   ;;  %v964_v46 = vld [vmem:[%s1243_s1 + $0x168] sm:$0xff]   ;;  %v968_v50 = vld [vmem:[%s1243_s1 + $0x160] sm:$0xff]  }
   0xf   :  { %v962_v44 = vld [vmem:[%s1243_s1 + $0x130] sm:$0xff]   ;;  %v965_v47 = vld [vmem:[%s1243_s1 + $0x1e8] sm:$0xff]   ;;  %v969_v51 = vld [vmem:[%s1243_s1 + $0x1e0] sm:$0xff]   ;;  %21 = vst [vmem:[%s1245_s3] sm:$0x1] %v992_v12 }
  0x10   :  { %838 = vmatpush3.bf16.msra.mxu0 %v934_v14  ;;  %599 = vmatprep.mubr.bf16.mxu0 %v760_v35  ;;  %v963_v45 = vld [vmem:[%s1243_s1 + $0x1b0] sm:$0xff]   ;;  %v966_v48 = vld [vmem:[%s1243_s1 + $0x128] sm:$0xff]   ;;  %v970_v52 = vld [vmem:[%s1243_s1 + $0x120] sm:$0xff]   ;;  %22 = vst [vmem:[%s1246_s4] sm:$0x1] %v992_v12 }
  0x11   :  { %860 = vmatpush3.bf16.msra.mxu1 %v935_v15  ;;  %839 = vmatprep.subr.bf16.mxu0 %v936_v16  ;;  %v967_v49 = vld [vmem:[%s1243_s1 + $0x1a8] sm:$0xff]   ;;  %v971_v53 = vld [vmem:[%s1243_s1 + $0x1a0] sm:$0xff]   ;;  %v972_v54 = vld [vmem:[%s1243_s1 + $0x158] sm:$0xff]  }
  0x12   :  { %861 = vmatprep.subr.bf16.mxu1 %v937_v17  ;;  %639 = vmatprep.mubr.bf16.mxu1 %v762_v37  ;;  %v973_v55 = vld [vmem:[%s1243_s1 + $0x1d8] sm:$0xff]   ;;  %v976_v58 = vld [vmem:[%s1243_s1 + $0x150] sm:$0xff]   ;;  %v980_v62 = vld [vmem:[%s1243_s1 + $0x148] sm:$0xff]  }
  0x13   :  { %v974_v56 = vld [vmem:[%s1243_s1 + $0x118] sm:$0xff]   ;;  %v977_v59 = vld [vmem:[%s1243_s1 + $0x1d0] sm:$0xff]   ;;  %v981_v63 = vld [vmem:[%s1243_s1 + $0x1c8] sm:$0xff]  }
  0x14   :  { %840 = vmatpush3.bf16.msra.mxu0 %v938_v18  ;;  %v975_v57 = vld [vmem:[%s1243_s1 + $0x198] sm:$0xff]   ;;  %v978_v60 = vld [vmem:[%s1243_s1 + $0x110] sm:$0xff]   ;;  %v982_v0 = vld [vmem:[%s1243_s1 + $0x108] sm:$0xff]  }
  0x15   :  { %862 = vmatpush3.bf16.msra.mxu1 %v939_v19  ;;  %841 = vmatprep.subr.bf16.mxu0 %v940_v20  ;;  %v979_v61 = vld [vmem:[%s1243_s1 + $0x190] sm:$0xff]   ;;  %v983_v1 = vld [vmem:[%s1243_s1 + $0x188] sm:$0xff]   ;;  %v984_v2 = vld [vmem:[%s1243_s1 + $0x140] sm:$0xff]  }
  0x16   :  { %863 = vmatprep.subr.bf16.mxu1 %v941_v21  ;;  %v985_v3 = vld [vmem:[%s1243_s1 + $0x1c0] sm:$0xff]   ;;  %v25_v6 = vld [vmem:[%s1244_s0 + $0x10] sm:$0xff]  ;;  %v26_v9 = vld [vmem:[%s1244_s0 + $0x18] sm:$0xff] }
  0x17   :  { %v986_v4 = vld [vmem:[%s1243_s1 + $0x100] sm:$0xff]   ;;  %v763_v7 = vcombine.low %v25_v6, %v25_v6  ;;  %v764_v8 = vcombine.high %v25_v6, %v25_v6  ;;  %v765_v10 = vcombine.low %v26_v9, %v26_v9  ;;  %v766_v11 = vcombine.high %v26_v9, %v26_v9 }
  0x18   :  { %842 = vmatpush3.bf16.msra.mxu0 %v942_v22  ;;  %v987_v5 = vld [vmem:[%s1243_s1 + $0x180] sm:$0xff]  }
  0x19   :  { %864 = vmatpush3.bf16.msra.mxu1 %v943_v23  ;;  %843 = vmatprep.subr.bf16.mxu0 %v944_v24 }
  0x1a   :  { %865 = vmatprep.subr.bf16.mxu1 %v945_v25 }
  0x1c   :  { %844 = vmatpush3.bf16.msra.mxu0 %v946_v26 }
  0x1d   :  { %866 = vmatpush3.bf16.msra.mxu1 %v947_v27  ;;  %845 = vmatprep.subr.bf16.mxu0 %v948_v28 }
  0x1e   :  { %867 = vmatprep.subr.bf16.mxu1 %v949_v29 }
  0x20   :  { %846 = vmatpush3.bf16.msra.mxu0 %v950_v30 }
  0x21   :  { %868 = vmatpush3.bf16.msra.mxu1 %v951_v31  ;;  %875 = vmatprep.subr.bf16.mxu0 %v956_v38 }
  0x22   :  { %897 = vmatprep.subr.bf16.mxu1 %v957_v39 }
  0x23   :  { %600 = vmatmul.mubr.bf16.vlgmr.msra.gmra.mxu0 %v759_v34 }
  0x24   :  { %640 = vmatmul.mubr.bf16.vlgmr.msra.gmra.mxu1 %v761_v36  ;;  %876 = vmatpush3.bf16.msra.mxu0 %v958_v40 }
  0x25   :  { %898 = vmatpush3.bf16.msra.mxu1 %v959_v41  ;;  %877 = vmatprep.subr.bf16.mxu0 %v960_v42 }
  0x26   :  { %899 = vmatprep.subr.bf16.mxu1 %v961_v43  ;;  %679 = vmatprep.mubr.bf16.mxu0 %v764_v8 }
  0x27   :  { %719 = vmatprep.mubr.bf16.mxu1 %v766_v11 }
  0x28   :  { %878 = vmatpush3.bf16.msra.mxu0 %v962_v44 }
  0x29   :  { %900 = vmatpush3.bf16.msra.mxu1 %v963_v45  ;;  %879 = vmatprep.subr.bf16.mxu0 %v964_v46  ;;  %v728_v46 = vld [vmem:[%s1245_s3] sm:$0x1] }
  0x2a   :  { %901 = vmatprep.subr.bf16.mxu1 %v965_v47 }
  0x2c   :  { %880 = vmatpush3.bf16.msra.mxu0 %v966_v48 }
  0x2d   :  { %902 = vmatpush3.bf16.msra.mxu1 %v967_v49  ;;  %881 = vmatprep.subr.bf16.mxu0 %v968_v50  ;;  %v737_v49 = vld [vmem:[%s1246_s4] sm:$0x1] }
  0x2e   :  { %903 = vmatprep.subr.bf16.mxu1 %v969_v51 }
  0x30   :  { %882 = vmatpush3.bf16.msra.mxu0 %v970_v52 }
  0x31   :  { %904 = vmatpush3.bf16.msra.mxu1 %v971_v53  ;;  %883 = vmatprep.subr.bf16.mxu0 %v972_v54 }
  0x32   :  { %905 = vmatprep.subr.bf16.mxu1 %v973_v55 }
  0x34   :  { %884 = vmatpush3.bf16.msra.mxu0 %v974_v56 }
  0x35   :  { %906 = vmatpush3.bf16.msra.mxu1 %v975_v57  ;;  %885 = vmatprep.subr.bf16.mxu0 %v976_v58 }
  0x36   :  { %907 = vmatprep.subr.bf16.mxu1 %v977_v59 }
  0x38   :  { %886 = vmatpush3.bf16.msra.mxu0 %v978_v60 }
  0x39   :  { %908 = vmatpush3.bf16.msra.mxu1 %v979_v61  ;;  %887 = vmatprep.subr.bf16.mxu0 %v980_v62 }
  0x3a   :  { %909 = vmatprep.subr.bf16.mxu1 %v981_v63 }
  0x3c   :  { %888 = vmatpush3.bf16.msra.mxu0 %v982_v0 }
  0x3d   :  { %910 = vmatpush3.bf16.msra.mxu1 %v983_v1  ;;  %889 = vmatprep.subr.bf16.mxu0 %v984_v2 }
  0x3e   :  { %911 = vmatprep.subr.bf16.mxu1 %v985_v3 }
  0x40   :  { %890 = vmatpush3.bf16.msra.mxu0 %v986_v4 }
  0x41   :  { %912 = vmatpush3.bf16.msra.mxu1 %v987_v5 }
  0x43   :  { %680 = vmatmul.mubr.bf16.vlgmr.msra.gmra.mxu0 %v763_v7 }
  0x44   :  { %720 = vmatmul.mubr.bf16.vlgmr.msra.gmra.mxu1 %v765_v10 }
  0xe3   :  { %v847_v13 = vpop.f32.mrf.mxu0 }
  0xe4   :  { %v869_v14 = vpop.f32.mrf.mxu1 }
  0xe5   :  { %v848_v15 = vpop.f32.mrf.mxu0 }
  0xe6   :  { %v870_v16 = vpop.f32.mrf.mxu1  ;;  %v849_v21 = vadd.f32 %v848_v15, %v847_v13 }
  0xe7   :  { %v850_v17 = vpop.f32.mrf.mxu0  ;;  %v871_v22 = vadd.f32 %v870_v16, %v869_v14 }
  0xe8   :  { %v872_v18 = vpop.f32.mrf.mxu1 }
  0xe9   :  { %v851_v19 = vpop.f32.mrf.mxu0  ;;  %v642_v27 = vadd.f32 %v871_v22, %v849_v21 }
  0xea   :  { %v873_v20 = vpop.f32.mrf.mxu1 }
 0x103   :  { %v891_v23 = vpop.f32.mrf.mxu0 }
 0x104   :  { %v913_v24 = vpop.f32.mrf.mxu1 }
 0x105   :  { %v892_v25 = vpop.f32.mrf.mxu0 }
 0x106   :  { %v914_v26 = vpop.f32.mrf.mxu1  ;;  %v893_v28 = vadd.f32 %v892_v25, %v891_v23 }
 0x107   :  { %v894_v29 = vpop.f32.mrf.mxu0  ;;  %v915_v32 = vadd.f32 %v914_v26, %v913_v24 }
 0x108   :  { %v916_v30 = vpop.f32.mrf.mxu1  ;;  %v682_v31 = vadd.f32 %v893_v28, %v642_v27 }
 0x109   :  { %v895_v33 = vpop.f32.mrf.mxu0 }
 0x10a   :  { %v917_v34 = vpop.f32.mrf.mxu1  ;;  %v722_v35 = vadd.f32 %v915_v32, %v682_v31 }
 0x10c   :  { %727 = vst [vmem:[%s1247_s2] sm:$0xff] %v722_v35  ;;  %v729_v36 = vrot.slane %v722_v35, 4  ;;  %v738_v37 = vmul.f32 %v722_v35, %v722_v35 }
 0x10e   :  { %v730_v38 = vadd.f32 %v729_v36, %v722_v35  ;;  %v739_v39 = vrot.slane %v738_v37, 4 }
 0x110   :  { %v731_v40 = vrot.slane %v730_v38, 2  ;;  %v740_v41 = vadd.f32 %v739_v39, %v738_v37 }
 0x112   :  { %v732_v42 = vadd.f32 %v731_v40, %v730_v38  ;;  %v741_v43 = vrot.slane %v740_v41, 2 }
 0x114   :  { %v733_v44 = vrot.slane %v732_v42, 1  ;;  %v742_v45 = vadd.f32 %v741_v43, %v740_v41 }
 0x116   :  { %v734_v47 = vadd.f32 %v733_v44, %v732_v42  ;;  %v743_v48 = vrot.slane %v742_v45, 1 }
 0x118   :  { %v735_v50 = vadd.f32 %v734_v47, %v728_v46  ;;  %v744_v51 = vadd.f32 %v743_v48, %v742_v45 }
 0x11a   :  { %736 = vst [vmem:[%s1245_s3] sm:$0x1] %v735_v50  ;;  %v745_v52 = vadd.f32 %v744_v51, %v737_v49 }
 0x11c   :  { %746 = vst [vmem:[%s1246_s4] sm:$0x1] %v745_v52 }

// kernel: _lambda_.25
= control target key start
LH: loop header
LB: loop body
LE: loop exit
PB: predicated region body
PF: predicated region fallthrough
CT: control target
= control target key end

     0   :  { %s790_s15 = smov 0   ;;  %s792_s16 = smov 0   ;;  %s874_s0 = inlined_call_operand.vmem [shape: bf16[4,32,256], index: 0, kind: input, shape index: {}]   ;;  %s875_s1 = inlined_call_operand.vmem [shape: bf16[4,256,128], index: 1, kind: input, shape index: {}]   ;;  %s876_s2 = inlined_call_operand.vmem [shape: f32[4,32,128], index: 2, kind: output, shape index: {0}]   ;;  %s877_s3 = inlined_call_operand.vmem [shape: f32[1,128], index: 3, kind: output, shape index: {1}]   ;;  %s878_s4 = inlined_call_operand.vmem [shape: f32[1,128], index: 4, kind: output, shape index: {2}]  }
   0x1   :  { %s794_s17 = smov 0  }
   0x2 LB: > { %s27_s18 = sadd.s32 1, %s758_s16  ;;  %p615_p0 = scmp.ge.s32.totalorder %s762_s17, 1  ;;  %s762_s17 = sphi %s794_s17, %s15_s17   ;;  %s758_s16 = sphi %s792_s16, %s880_s16   ;;  %s754_s15 = sphi %s790_s15, %s879_s15  }
   0x3   : > { %p29_p1 = scmp.ge.s32.totalorder %s27_s18, 4  ;;  %p189_p2 = scmp.lt.s32.totalorder %s762_s17, 5 }
   0x5   : > { %s882_s18 = smov (%p29_p1, %s27_s18), 0  ;;  %p190_p3 = pnand %p615_p0, %p189_p2 }
   0x6   : > { %p230_p4 = scmp.lt.s32.totalorder (!%p190_p3), %s754_s15, 3  ;;  %p256_p5 = scmp.eq.s32.totalorder (!%p190_p3), %s754_s15, 0 }
   0x7   : > { %193 = sbr.rel (%p190_p3) target bundleno = 274 (0x112), region = 28 }
   0xc   : > { %s884_s15 = smov (!%p230_p4, %s754_s15), 3  ;;  %261 = sbr.rel (!%p256_p5) target bundleno = 17 (0x11), region = 32  ;;  %v764_v0 = vmov (%p256_p5), 0.0  }
   0xd   : > { %s645_s19 = sshll.u32 %s884_s15, 5  ;;  %s646_s20 = sshll.u32 %s884_s15, 7  ;;  %262 = vst [vmem:[%s877_s3] sm:$0x1] (%p256_p5), %v764_v0  ;;  %263 = vst [vmem:[%s878_s4] sm:$0x1] (%p256_p5), %v764_v0 }
   0xe   : > { %s811_s23 = scalar_lea.vmem %s874_s0, %s645_s19  ;;  %s816_s26 = scalar_lea.vmem %s875_s1, %s646_s20 }
   0xf   : > { %s821_s29 = scalar_lea.vmem %s876_s2, %s645_s19 }
  0x11 PF: > { %v718_v1 = vld [vmem:[%s816_s26 + $0x78] sm:$0xff]   ;;  %v720_v3 = vld [vmem:[%s816_s26 + $0x70] sm:$0xff]   ;;  %v722_v5 = vld [vmem:[%s816_s26 + $0x68] sm:$0xff]  }
  0x12   : > { %v719_v2 = vld [vmem:[%s816_s26 + $0x38] sm:$0xff]   ;;  %649 = vmatprep.subr.bf16.mxu0 %v718_v1  ;;  %677 = vmatprep.subr.bf16.mxu1 %v718_v1  ;;  %v721_v4 = vld [vmem:[%s816_s26 + $0x30] sm:$0xff]   ;;  %v723_v6 = vld [vmem:[%s816_s26 + $0x28] sm:$0xff]  }
  0x13   : > { %650 = vmatpush3.bf16.msra.mxu0 %v719_v2  ;;  %685 = vmatpush3.bf16.msra.mxu1 %v719_v2  ;;  %v724_v7 = vld [vmem:[%s816_s26 + $0x60] sm:$0xff]   ;;  %v726_v9 = vld [vmem:[%s816_s26 + $0x58] sm:$0xff]   ;;  %v728_v11 = vld [vmem:[%s816_s26 + $0x50] sm:$0xff]  }
  0x14   : > { %651 = vmatprep.subr.bf16.mxu0 %v720_v3  ;;  %678 = vmatprep.subr.bf16.mxu1 %v720_v3  ;;  %v725_v8 = vld [vmem:[%s816_s26 + $0x20] sm:$0xff]   ;;  %v727_v10 = vld [vmem:[%s816_s26 + $0x18] sm:$0xff]   ;;  %v729_v14 = vld [vmem:[%s816_s26 + $0x10] sm:$0xff]  }
  0x15   : > { %v736_v12 = vld [vmem:[%s811_s23 + $0x4] ss:$8 sps:$4 sm:$0xff]   ;;  %v739_v13 = vld [vmem:[%s811_s23 + $0x14] ss:$8 sps:$4 sm:$0xff]   ;;  %v734_v19 = vld [vmem:[%s811_s23] ss:$8 sps:$4 sm:$0xff]  }
  0x16   : > { %v730_v15 = vld [vmem:[%s816_s26 + $0x48] sm:$0xff]   ;;  %448 = vmatprep.mubr.bf16.mxu0 %v736_v12  ;;  %456 = vmatprep.mubr.bf16.mxu1 %v739_v13  ;;  %v732_v17 = vld [vmem:[%s816_s26 + $0x40] sm:$0xff]   ;;  %v737_v20 = vld [vmem:[%s811_s23 + $0x10] ss:$8 sps:$4 sm:$0xff]  }
  0x17   : > { %652 = vmatpush3.bf16.msra.mxu0 %v721_v4  ;;  %686 = vmatpush3.bf16.msra.mxu1 %v721_v4  ;;  %v731_v16 = vld [vmem:[%s816_s26 + $0x8] sm:$0xff]   ;;  %v733_v18 = vld [vmem:[%s816_s26] sm:$0xff]  }
  0x18   : > { %653 = vmatprep.subr.bf16.mxu0 %v722_v5  ;;  %679 = vmatprep.subr.bf16.mxu1 %v722_v5  ;;  %v469_v52 = vld [vmem:[%s877_s3] sm:$0x1] }
  0x19   : > { %v481_v55 = vld [vmem:[%s878_s4] sm:$0x1] }
  0x1b   : > { %654 = vmatpush3.bf16.msra.mxu0 %v723_v6  ;;  %687 = vmatpush3.bf16.msra.mxu1 %v723_v6 }
  0x1c   : > { %655 = vmatprep.subr.bf16.mxu0 %v724_v7  ;;  %680 = vmatprep.subr.bf16.mxu1 %v724_v7 }
  0x1f   : > { %656 = vmatpush3.bf16.msra.mxu0 %v725_v8  ;;  %688 = vmatpush3.bf16.msra.mxu1 %v725_v8 }
  0x20   : > { %657 = vmatprep.subr.bf16.mxu0 %v726_v9  ;;  %681 = vmatprep.subr.bf16.mxu1 %v726_v9 }
  0x23   : > { %658 = vmatpush3.bf16.msra.mxu0 %v727_v10  ;;  %689 = vmatpush3.bf16.msra.mxu1 %v727_v10 }
  0x24   : > { %659 = vmatprep.subr.bf16.mxu0 %v728_v11  ;;  %682 = vmatprep.subr.bf16.mxu1 %v728_v11 }
  0x27   : > { %660 = vmatpush3.bf16.msra.mxu0 %v729_v14  ;;  %690 = vmatpush3.bf16.msra.mxu1 %v729_v14 }
  0x28   : > { %661 = vmatprep.subr.bf16.mxu0 %v730_v15  ;;  %683 = vmatprep.subr.bf16.mxu1 %v730_v15 }
  0x2b   : > { %662 = vmatpush3.bf16.msra.mxu0 %v731_v16  ;;  %691 = vmatpush3.bf16.msra.mxu1 %v731_v16 }
  0x2c   : > { %663 = vmatprep.subr.bf16.mxu0 %v732_v17  ;;  %684 = vmatprep.subr.bf16.mxu1 %v732_v17 }
  0x2f   : > { %664 = vmatpush3.bf16.msra.mxu0 %v733_v18  ;;  %692 = vmatpush3.bf16.msra.mxu1 %v733_v18 }
  0x32   : > { %449 = vmatmul.mubr.bf16.vlgmr.msra.gmra.mxu0 %v734_v19  ;;  %457 = vmatmul.mubr.bf16.vlgmr.msra.gmra.mxu1 %v737_v20 }
  0xf2   : > { %v665_v21 = vpop.f32.mrf.mxu0  ;;  %v671_v22 = vpop.f32.mrf.mxu1 }
  0xf4   : > { %v666_v23 = vpop.f32.mrf.mxu0  ;;  %v672_v24 = vpop.f32.mrf.mxu1 }
  0xf5   : > { %v667_v25 = vadd.f32 %v666_v23, %v665_v21  ;;  %v673_v26 = vadd.f32 %v672_v24, %v671_v22 }
  0xf6   : > { %v668_v27 = vpop.f32.mrf.mxu0  ;;  %v674_v28 = vpop.f32.mrf.mxu1 }
  0xf7   : > { %465 = vst [vmem:[%s821_s29] sm:$0xff] %v667_v25  ;;  %467 = vst [vmem:[%s821_s29 + $0x10] sm:$0xff] %v673_v26  ;;  %v482_v33 = vmul.f32 %v667_v25, %v667_v25  ;;  %v484_v36 = vmul.f32 %v673_v26, %v673_v26 }
  0xf8   : > { %v669_v29 = vpop.f32.mrf.mxu0  ;;  %v675_v30 = vpop.f32.mrf.mxu1 }
  0xf9   : > { %v670_v31 = vadd.f32 %v669_v29, %v668_v27  ;;  %v676_v32 = vadd.f32 %v675_v30, %v674_v28 }
  0xfb   : > { %466 = vst [vmem:[%s821_s29 + $0x8] sm:$0xff] %v670_v31  ;;  %v470_v34 = vadd.f32 %v670_v31, %v667_v25  ;;  %v483_v35 = vmul.f32 %v670_v31, %v670_v31  ;;  %468 = vst [vmem:[%s821_s29 + $0x18] sm:$0xff] %v676_v32  ;;  %v485_v40 = vmul.f32 %v676_v32, %v676_v32 }
  0xfd   : > { %v486_v37 = vadd.f32 %v483_v35, %v482_v33  ;;  %v471_v38 = vadd.f32 %v673_v26, %v470_v34 }
  0xff   : > { %v472_v39 = vadd.f32 %v676_v32, %v471_v38  ;;  %v487_v41 = vadd.f32 %v486_v37, %v484_v36 }
 0x101   : > { %v473_v42 = vrot.slane %v472_v39, 4  ;;  %v488_v43 = vadd.f32 %v487_v41, %v485_v40 }
 0x103   : > { %v474_v44 = vadd.f32 %v473_v42, %v472_v39  ;;  %v489_v45 = vrot.slane %v488_v43, 4 }
 0x105   : > { %v475_v46 = vrot.slane %v474_v44, 2  ;;  %v490_v47 = vadd.f32 %v489_v45, %v488_v43 }
 0x107   : > { %v476_v48 = vadd.f32 %v475_v46, %v474_v44  ;;  %v491_v49 = vrot.slane %v490_v47, 2 }
 0x109   : > { %v477_v50 = vrot.slane %v476_v48, 1  ;;  %v492_v51 = vadd.f32 %v491_v49, %v490_v47 }
 0x10b   : > { %v478_v53 = vadd.f32 %v477_v50, %v476_v48  ;;  %v493_v54 = vrot.slane %v492_v51, 1 }
 0x10d   : > { %v479_v56 = vadd.f32 %v478_v53, %v469_v52  ;;  %v494_v57 = vadd.f32 %v493_v54, %v492_v51 }
 0x10f   : > { %480 = vst [vmem:[%s877_s3] sm:$0x1] %v479_v56  ;;  %v495_v58 = vadd.f32 %v494_v57, %v481_v55 }
 0x111   : > { %496 = vst [vmem:[%s878_s4] sm:$0x1] %v495_v58 }
 0x112 PF: > { %s15_s17 = sadd.s32 1, %s762_s17   ;;  %s879_s15 = smov %s758_s16 }
 0x113   : > { %p12_p6 = scmp.ge.s32.totalorder %s15_s17, 6   ;;  %s880_s16 = smov %s882_s18 }
 0x115   :  { %14 = sbr.rel (!%p12_p6) target bundleno = 2 (0x2), region = 81 }

// kernel: _lambda_.26
= control target key start
LH: loop header
LB: loop body
LE: loop exit
PB: predicated region body
PF: predicated region fallthrough
CT: control target
= control target key end

     0   :  { %s348_s12 = smov 0   ;;  %s371_s0 = inlined_call_operand.vmem [shape: f32[128,128], index: 0, kind: input, shape index: {}]   ;;  %s372_s1 = inlined_call_operand.vmem [shape: f32[1,128], index: 1, kind: input, shape index: {}]   ;;  %s373_s2 = inlined_call_operand.vmem [shape: f32[1,128], index: 2, kind: input, shape index: {}]   ;;  %s374_s3 = inlined_call_operand.vmem [shape: bf16[128,128], index: 3, kind: output, shape index: {}]  }
   0x1 LB: > { %s280_s13 = sadd.s32 4294967295, %s326_s12   ;;  %p284_p0 = scmp.ge.s32.totalorder %s326_s12, 1  ;;  %s326_s12 = sphi %s348_s12, %s13_s12  }
   0x2   : > { %p138_p1 = scmp.lt.s32.totalorder %s326_s12, 5 }
   0x4   : > { %p139_p2 = pnand %p284_p0, %p138_p1 }
   0x5   : > { %s285_s14 = sshll.u32 (!%p139_p2), %s280_s13, 2 }
   0x6   : > { %142 = sbr.rel (%p139_p2) target bundleno = 25 (0x19), region = 32  ;;  %p163_p3 = scmp.lt.s32.totalorder (!%p139_p2), %s285_s14, 15 }
   0xb   : > { %s376_s14 = smov (!%p163_p3, %s285_s14), 15  ;;  %v289_v0 = vld [vmem:[%s372_s1] ss:$0 sm:$0xff] }
   0xc   : > { %s286_s15 = sshll.u32 %s376_s14, 3  ;;  %v290_v1 = vld [vmem:[%s373_s2] ss:$0 sm:$0xff]  ;;  %s288_s23 = sshll.u32 %s376_s14, 2 }
   0xd   : > { %s166_s20 = scalar_lea.vmem %s371_s0, %s286_s15  ;;  %s172_s26 = scalar_lea.vmem %s374_s3, %s288_s23 }
   0xe   : > { %v174_v2 = vld [vmem:[%s166_s20] sm:$0xff]  ;;  %v175_v3 = vld [vmem:[%s166_s20 + $0x8] sm:$0xff]  ;;  %v176_v4 = vld [vmem:[%s166_s20 + $0x10] sm:$0xff] }
   0xf   : > { %v185_v5 = vmul.f32 %v289_v0, %v174_v2  ;;  %v186_v6 = vmul.f32 %v289_v0, %v175_v3  ;;  %v177_v7 = vld [vmem:[%s166_s20 + $0x18] sm:$0xff]  ;;  %v187_v8 = vmul.f32 %v289_v0, %v176_v4 }
  0x10   : > { %v188_v9 = vmul.f32 %v289_v0, %v177_v7 }
  0x11   : > { %v196_v10 = vadd.f32 %v290_v1, %v185_v5  ;;  %v197_v11 = vadd.f32 %v290_v1, %v186_v6  ;;  %v198_v12 = vadd.f32 %v290_v1, %v187_v8 }
  0x12   : > { %v199_v13 = vadd.f32 %v290_v1, %v188_v9 }
  0x13   : > { %v200_v14 = vmax.f32 %v196_v10, 0.0  ;;  %v201_v15 = vmax.f32 %v197_v11, 0.0  ;;  %v202_v16 = vmax.f32 %v198_v12, 0.0 }
  0x14   : > { %v203_v17 = vmax.f32 %v199_v13, 0.0 }
  0x15   : > { %v304_v18 = vpack.c.bf16 %v201_v15, %v200_v14 }
  0x16   : > { %v309_v19 = vpack.c.bf16 %v203_v17, %v202_v16 }
  0x17   : > { %305 = vst [vmem:[%s172_s26] sm:$0xff] %v304_v18  }
  0x18   : > { %311 = vst [vmem:[%s172_s26 + $0x8] sm:$0xff] %v309_v19  }
  0x19 PF: > { %s13_s12 = sadd.s32 1, %s326_s12  }
  0x1a   : > { %p10_p4 = scmp.ge.s32.totalorder %s13_s12, 6  }
  0x1c   :  { %12 = sbr.rel (!%p10_p4) target bundleno = 1 (0x1), region = 62 }

// kernel: _lambda_.28
= control target key start
LH: loop header
LB: loop body
LE: loop exit
PB: predicated region body
PF: predicated region fallthrough
CT: control target
= control target key end

     0   :  { %s516_s12 = smov 0   ;;  %s607_s0 = inlined_call_operand.vmem [shape: f32[512,128], index: 0, kind: input, shape index: {}]   ;;  %s608_s1 = inlined_call_operand.vmem [shape: f32[1,128], index: 1, kind: input, shape index: {}]   ;;  %s609_s2 = inlined_call_operand.vmem [shape: f32[1,128], index: 2, kind: input, shape index: {}]   ;;  %s610_s3 = inlined_call_operand.vmem [shape: bf16[512,128], index: 3, kind: output, shape index: {}]  }
   0x1 LB: > { %s388_s13 = sadd.s32 4294967295, %s494_s12   ;;  %p392_p0 = scmp.ge.s32.totalorder %s494_s12, 1  ;;  %s494_s12 = sphi %s516_s12, %s13_s12  }
   0x2   : > { %p138_p1 = scmp.lt.s32.totalorder %s494_s12, 5 }
   0x4   : > { %p139_p2 = pnand %p392_p0, %p138_p1 }
   0x5   : > { %s393_s14 = sshll.u32 (!%p139_p2), %s388_s13, 4 }
   0x6   : > { %142 = sbr.rel (%p139_p2) target bundleno = 35 (0x23), region = 32  ;;  %p163_p3 = scmp.lt.s32.totalorder (!%p139_p2), %s393_s14, 63 }
   0xb   : > { %s612_s14 = smov (!%p163_p3, %s393_s14), 63  ;;  %v530_v0 = vld [vmem:[%s608_s1] ss:$0 sm:$0xff] }
   0xc   : > { %s394_s15 = sshll.u32 %s612_s14, 3  ;;  %v540_v1 = vld [vmem:[%s609_s2] ss:$0 sm:$0xff]  ;;  %s396_s23 = sshll.u32 %s612_s14, 2 }
   0xd   : > { %s535_s20 = scalar_lea.vmem %s607_s0, %s394_s15  ;;  %s572_s26 = scalar_lea.vmem %s610_s3, %s396_s23 }
   0xe   : > { %v174_v2 = vld [vmem:[%s535_s20] sm:$0xff]  ;;  %v175_v3 = vld [vmem:[%s535_s20 + $0x8] sm:$0xff]  ;;  %v176_v4 = vld [vmem:[%s535_s20 + $0x10] sm:$0xff] }
   0xf   : > { %v197_v5 = vmul.f32 %v530_v0, %v174_v2  ;;  %v198_v6 = vmul.f32 %v530_v0, %v175_v3  ;;  %v177_v7 = vld [vmem:[%s535_s20 + $0x18] sm:$0xff]  ;;  %v199_v8 = vmul.f32 %v530_v0, %v176_v4  ;;  %v178_v9 = vld [vmem:[%s535_s20 + $0x20] sm:$0xff]  ;;  %v179_v10 = vld [vmem:[%s535_s20 + $0x28] sm:$0xff] }
  0x10   : > { %v200_v11 = vmul.f32 %v530_v0, %v177_v7  ;;  %v201_v12 = vmul.f32 %v530_v0, %v178_v9  ;;  %v202_v13 = vmul.f32 %v530_v0, %v179_v10  ;;  %v180_v14 = vld [vmem:[%s535_s20 + $0x30] sm:$0xff]  ;;  %v181_v15 = vld [vmem:[%s535_s20 + $0x38] sm:$0xff]  ;;  %v182_v24 = vld [vmem:[%s535_s20 + $0x40] sm:$0xff] }
  0x11   : > { %v220_v16 = vadd.f32 %v540_v1, %v197_v5  ;;  %v221_v17 = vadd.f32 %v540_v1, %v198_v6  ;;  %v222_v18 = vadd.f32 %v540_v1, %v199_v8  ;;  %v203_v19 = vmul.f32 %v530_v0, %v180_v14  ;;  %v183_v25 = vld [vmem:[%s535_s20 + $0x48] sm:$0xff]  ;;  %v184_v30 = vld [vmem:[%s535_s20 + $0x50] sm:$0xff]  ;;  %v185_v35 = vld [vmem:[%s535_s20 + $0x58] sm:$0xff] }
  0x12   : > { %v223_v20 = vadd.f32 %v540_v1, %v200_v11  ;;  %v224_v21 = vadd.f32 %v540_v1, %v201_v12  ;;  %v225_v22 = vadd.f32 %v540_v1, %v202_v13  ;;  %v204_v23 = vmul.f32 %v530_v0, %v181_v15  ;;  %v186_v36 = vld [vmem:[%s535_s20 + $0x60] sm:$0xff]  ;;  %v187_v41 = vld [vmem:[%s535_s20 + $0x68] sm:$0xff]  ;;  %v188_v42 = vld [vmem:[%s535_s20 + $0x70] sm:$0xff] }
  0x13   : > { %v236_v26 = vmax.f32 %v220_v16, 0.0  ;;  %v237_v27 = vmax.f32 %v221_v17, 0.0  ;;  %v238_v28 = vmax.f32 %v222_v18, 0.0  ;;  %v226_v29 = vadd.f32 %v540_v1, %v203_v19  ;;  %v189_v51 = vld [vmem:[%s535_s20 + $0x78] sm:$0xff] }
  0x14   : > { %v239_v31 = vmax.f32 %v223_v20, 0.0  ;;  %v240_v32 = vmax.f32 %v224_v21, 0.0  ;;  %v241_v33 = vmax.f32 %v225_v22, 0.0  ;;  %v227_v34 = vadd.f32 %v540_v1, %v204_v23 }
  0x15   : > { %v436_v37 = vpack.c.bf16 %v237_v27, %v236_v26  ;;  %v242_v38 = vmax.f32 %v226_v29, 0.0  ;;  %v205_v39 = vmul.f32 %v530_v0, %v182_v24  ;;  %v206_v40 = vmul.f32 %v530_v0, %v183_v25 }
  0x16   : > { %v441_v43 = vpack.c.bf16 %v239_v31, %v238_v28  ;;  %v446_v44 = vpack.c.bf16 %v241_v33, %v240_v32  ;;  %v243_v45 = vmax.f32 %v227_v34, 0.0  ;;  %v207_v46 = vmul.f32 %v530_v0, %v184_v30 }
  0x17   : > { %437 = vst [vmem:[%s572_s26] sm:$0xff] %v436_v37   ;;  %v228_v47 = vadd.f32 %v540_v1, %v205_v39  ;;  %v229_v48 = vadd.f32 %v540_v1, %v206_v40  ;;  %v208_v49 = vmul.f32 %v530_v0, %v185_v35  ;;  %v209_v50 = vmul.f32 %v530_v0, %v186_v36 }
  0x18   : > { %473 = vst [vmem:[%s572_s26 + $0x8] sm:$0xff] %v441_v43   ;;  %474 = vst [vmem:[%s572_s26 + $0x10] sm:$0xff] %v446_v44   ;;  %v451_v52 = vpack.c.bf16 %v243_v45, %v242_v38  ;;  %v230_v53 = vadd.f32 %v540_v1, %v207_v46  ;;  %v210_v54 = vmul.f32 %v530_v0, %v187_v41 }
  0x19   : > { %v211_v55 = vmul.f32 %v530_v0, %v188_v42  ;;  %v244_v56 = vmax.f32 %v228_v47, 0.0  ;;  %v245_v57 = vmax.f32 %v229_v48, 0.0  ;;  %v231_v58 = vadd.f32 %v540_v1, %v208_v49 }
  0x1a   : > { %v232_v59 = vadd.f32 %v540_v1, %v209_v50  ;;  %475 = vst [vmem:[%s572_s26 + $0x18] sm:$0xff] %v451_v52   ;;  %v246_v60 = vmax.f32 %v230_v53, 0.0  ;;  %v233_v61 = vadd.f32 %v540_v1, %v210_v54  ;;  %v212_v62 = vmul.f32 %v530_v0, %v189_v51 }
  0x1b   : > { %v234_v63 = vadd.f32 %v540_v1, %v211_v55  ;;  %v456_v2 = vpack.c.bf16 %v245_v57, %v244_v56  ;;  %v247_v3 = vmax.f32 %v231_v58, 0.0 }
  0x1c   : > { %v248_v4 = vmax.f32 %v232_v59, 0.0  ;;  %v249_v5 = vmax.f32 %v233_v61, 0.0  ;;  %v235_v6 = vadd.f32 %v540_v1, %v212_v62 }
  0x1d   : > { %v250_v7 = vmax.f32 %v234_v63, 0.0  ;;  %476 = vst [vmem:[%s572_s26 + $0x20] sm:$0xff] %v456_v2   ;;  %v461_v8 = vpack.c.bf16 %v247_v3, %v246_v60 }
  0x1e   : > { %v466_v9 = vpack.c.bf16 %v249_v5, %v248_v4  ;;  %v251_v10 = vmax.f32 %v235_v6, 0.0 }
  0x1f   : > { %477 = vst [vmem:[%s572_s26 + $0x28] sm:$0xff] %v461_v8  }
  0x20   : > { %478 = vst [vmem:[%s572_s26 + $0x30] sm:$0xff] %v466_v9   ;;  %v471_v11 = vpack.c.bf16 %v251_v10, %v250_v7 }
  0x22   : > { %479 = vst [vmem:[%s572_s26 + $0x38] sm:$0xff] %v471_v11  }
  0x23 PF: > { %s13_s12 = sadd.s32 1, %s494_s12  }
  0x24   : > { %p10_p4 = scmp.ge.s32.totalorder %s13_s12, 6  }
  0x26   :  { %12 = sbr.rel (!%p10_p4) target bundleno = 1 (0x1), region = 62 }

// kernel: _lambda_.27
= control target key start
LH: loop header
LB: loop body
LE: loop exit
PB: predicated region body
PF: predicated region fallthrough
CT: control target
= control target key end

     0   :  { %s866_s15 = smov 0   ;;  %s868_s16 = smov 0   ;;  %s958_s0 = inlined_call_operand.vmem [shape: bf16[4,128,128], index: 0, kind: input, shape index: {}]   ;;  %s959_s1 = inlined_call_operand.vmem [shape: bf16[4,128,128], index: 1, kind: input, shape index: {}]   ;;  %s960_s2 = inlined_call_operand.vmem [shape: f32[4,128,128], index: 2, kind: output, shape index: {0}]   ;;  %s961_s3 = inlined_call_operand.vmem [shape: f32[1,128], index: 3, kind: output, shape index: {1}]   ;;  %s962_s4 = inlined_call_operand.vmem [shape: f32[1,128], index: 4, kind: output, shape index: {2}]  }
   0x1   :  { %s870_s17 = smov 0  }
   0x2 LB: > { %s27_s18 = sadd.s32 1, %s834_s16  ;;  %p681_p0 = scmp.ge.s32.totalorder %s838_s17, 1  ;;  %s838_s17 = sphi %s870_s17, %s15_s17   ;;  %s834_s16 = sphi %s868_s16, %s964_s16   ;;  %s830_s15 = sphi %s866_s15, %s963_s15  }
   0x3   : > { %p29_p1 = scmp.ge.s32.totalorder %s27_s18, 4  ;;  %p188_p2 = scmp.lt.s32.totalorder %s838_s17, 5 }
   0x5   : > { %s966_s18 = smov (%p29_p1, %s27_s18), 0  ;;  %p189_p3 = pnand %p681_p0, %p188_p2 }
   0x6   : > { %p228_p4 = scmp.lt.s32.totalorder (!%p189_p3), %s830_s15, 3  ;;  %p253_p5 = scmp.eq.s32.totalorder (!%p189_p3), %s830_s15, 0 }
   0x7   : > { %192 = sbr.rel (%p189_p3) target bundleno = 296 (0x128), region = 28 }
   0xc   : > { %s968_s15 = smov (!%p228_p4, %s830_s15), 3  ;;  %258 = sbr.rel (!%p253_p5) target bundleno = 17 (0x11), region = 32  ;;  %v840_v0 = vmov (%p253_p5), 0.0  }
   0xd   : > { %s707_s19 = sshll.u32 %s968_s15, 6  ;;  %s709_s20 = sshll.u32 %s968_s15, 7  ;;  %259 = vst [vmem:[%s961_s3] sm:$0x1] (%p253_p5), %v840_v0  ;;  %260 = vst [vmem:[%s962_s4] sm:$0x1] (%p253_p5), %v840_v0 }
   0xe   : > { %s887_s23 = scalar_lea.vmem %s958_s0, %s707_s19  ;;  %s892_s26 = scalar_lea.vmem %s959_s1, %s707_s19 }
   0xf   : > { %s897_s29 = scalar_lea.vmem %s960_s2, %s709_s20 }
  0x11 PF: > { %v800_v1 = vld [vmem:[%s892_s26 + $0x38] sm:$0xff]   ;;  %v801_v2 = vld [vmem:[%s892_s26 + $0x30] sm:$0xff]   ;;  %v802_v3 = vld [vmem:[%s892_s26 + $0x28] sm:$0xff]  }
  0x12   : > { %727 = vmatprep.subr.bf16.mxu0 %v800_v1  ;;  %759 = vmatprep.subr.bf16.mxu1 %v800_v1  ;;  %v803_v4 = vld [vmem:[%s892_s26 + $0x20] sm:$0xff]   ;;  %v804_v6 = vld [vmem:[%s892_s26 + $0x18] sm:$0xff]   ;;  %v805_v8 = vld [vmem:[%s892_s26 + $0x10] sm:$0xff]  }
  0x13   : > { %728 = vmatpush3.bf16.msra.mxu0 %v800_v1  ;;  %767 = vmatpush3.bf16.msra.mxu1 %v800_v1  ;;  %v808_v5 = vld [vmem:[%s887_s23] sm:$0xff]   ;;  %v806_v9 = vld [vmem:[%s892_s26 + $0x8] sm:$0xff]   ;;  %v810_v13 = vld [vmem:[%s887_s23 + $0x10] sm:$0xff]  }
  0x14   : > { %729 = vmatprep.subr.bf16.mxu0 %v801_v2  ;;  %760 = vmatprep.subr.bf16.mxu1 %v801_v2  ;;  %v812_v7 = vld [vmem:[%s887_s23 + $0x20] sm:$0xff]   ;;  %v809_v11 = vld [vmem:[%s887_s23 + $0x8] sm:$0xff]   ;;  %v814_v14 = vld [vmem:[%s887_s23 + $0x30] sm:$0xff]  }
  0x15   : > { %743 = vmatprep.mubr.bf16.mxu0 %v808_v5  ;;  %751 = vmatprep.mubr.bf16.mxu1 %v812_v7  ;;  %v807_v10 = vld [vmem:[%s892_s26] sm:$0xff]   ;;  %v813_v12 = vld [vmem:[%s887_s23 + $0x28] sm:$0xff]   ;;  %v811_v15 = vld [vmem:[%s887_s23 + $0x18] sm:$0xff]  }
  0x16   : > { %v815_v16 = vld [vmem:[%s887_s23 + $0x38] sm:$0xff]  }
  0x17   : > { %730 = vmatpush3.bf16.msra.mxu0 %v801_v2  ;;  %768 = vmatpush3.bf16.msra.mxu1 %v801_v2 }
  0x18   : > { %731 = vmatprep.subr.bf16.mxu0 %v802_v3  ;;  %761 = vmatprep.subr.bf16.mxu1 %v802_v3 }
  0x1b   : > { %732 = vmatpush3.bf16.msra.mxu0 %v802_v3  ;;  %769 = vmatpush3.bf16.msra.mxu1 %v802_v3 }
  0x1c   : > { %733 = vmatprep.subr.bf16.mxu0 %v803_v4  ;;  %762 = vmatprep.subr.bf16.mxu1 %v803_v4 }
  0x1f   : > { %734 = vmatpush3.bf16.msra.mxu0 %v803_v4  ;;  %770 = vmatpush3.bf16.msra.mxu1 %v803_v4 }
  0x20   : > { %735 = vmatprep.subr.bf16.mxu0 %v804_v6  ;;  %763 = vmatprep.subr.bf16.mxu1 %v804_v6 }
  0x23   : > { %736 = vmatpush3.bf16.msra.mxu0 %v804_v6  ;;  %771 = vmatpush3.bf16.msra.mxu1 %v804_v6 }
  0x24   : > { %737 = vmatprep.subr.bf16.mxu0 %v805_v8  ;;  %764 = vmatprep.subr.bf16.mxu1 %v805_v8 }
  0x27   : > { %738 = vmatpush3.bf16.msra.mxu0 %v805_v8  ;;  %772 = vmatpush3.bf16.msra.mxu1 %v805_v8 }
  0x28   : > { %739 = vmatprep.subr.bf16.mxu0 %v806_v9  ;;  %765 = vmatprep.subr.bf16.mxu1 %v806_v9 }
  0x2b   : > { %740 = vmatpush3.bf16.msra.mxu0 %v806_v9  ;;  %773 = vmatpush3.bf16.msra.mxu1 %v806_v9 }
  0x2c   : > { %741 = vmatprep.subr.bf16.mxu0 %v807_v10  ;;  %766 = vmatprep.subr.bf16.mxu1 %v807_v10 }
  0x2f   : > { %742 = vmatpush3.bf16.msra.mxu0 %v807_v10  ;;  %774 = vmatpush3.bf16.msra.mxu1 %v807_v10 }
  0x32   : > { %744 = vmatmul.mubr.bf16.vlgmr.msra.gmra.mxu0 %v809_v11  ;;  %752 = vmatmul.mubr.bf16.vlgmr.msra.gmra.mxu1 %v813_v12 }
  0x33   : > { %747 = vmatprep.mubr.bf16.mxu0 %v810_v13  ;;  %755 = vmatprep.mubr.bf16.mxu1 %v814_v14 }
  0x3a   : > { %748 = vmatmul.mubr.bf16.gmra.mxu0 %v811_v15  ;;  %756 = vmatmul.mubr.bf16.gmra.mxu1 %v815_v16 }
  0xf2   : > { %v745_v17 = vpop.f32.mrf.mxu0  ;;  %v753_v18 = vpop.f32.mrf.mxu1 }
  0xf3   : > { %488 = vst [vmem:[%s897_s29 + $0x10] sm:$0xff] %v745_v17  ;;  %496 = vst [vmem:[%s897_s29 + $0x50] sm:$0xff] %v753_v18  ;;  %v529_v30 = vmul.f32 %v745_v17, %v745_v17  ;;  %v537_v60 = vmul.f32 %v753_v18, %v753_v18 }
  0xf4   : > { %v423_v19 = vpop.f32.mrf.mxu0  ;;  %v455_v20 = vpop.f32.mrf.mxu1 }
  0xf5   : > { %486 = vst [vmem:[%s897_s29] sm:$0xff] %v423_v19  ;;  %494 = vst [vmem:[%s897_s29 + $0x40] sm:$0xff] %v455_v20  ;;  %v527_v25 = vmul.f32 %v423_v19, %v423_v19  ;;  %v535_v54 = vmul.f32 %v455_v20, %v455_v20 }
  0xf6   : > { %v746_v21 = vpop.f32.mrf.mxu0  ;;  %v754_v22 = vpop.f32.mrf.mxu1 }
  0xf7   : > { %489 = vst [vmem:[%s897_s29 + $0x18] sm:$0xff] %v746_v21  ;;  %497 = vst [vmem:[%s897_s29 + $0x58] sm:$0xff] %v754_v22  ;;  %v530_v35 = vmul.f32 %v746_v21, %v746_v21  ;;  %v538_v63 = vmul.f32 %v754_v22, %v754_v22 }
  0xf8   : > { %v426_v23 = vpop.f32.mrf.mxu0  ;;  %v458_v24 = vpop.f32.mrf.mxu1 }
  0xf9   : > { %487 = vst [vmem:[%s897_s29 + $0x8] sm:$0xff] %v426_v23  ;;  %v503_v26 = vadd.f32 %v426_v23, %v423_v19  ;;  %v528_v27 = vmul.f32 %v426_v23, %v426_v23  ;;  %495 = vst [vmem:[%s897_s29 + $0x48] sm:$0xff] %v458_v24  ;;  %v536_v58 = vmul.f32 %v458_v24, %v458_v24 }
  0xfa   : > { %v749_v28 = vpop.f32.mrf.mxu0  ;;  %v757_v29 = vpop.f32.mrf.mxu1 }
  0xfb   : > { %v504_v31 = vadd.f32 %v745_v17, %v503_v26  ;;  %v543_v32 = vadd.f32 %v528_v27, %v527_v25  ;;  %492 = vst [vmem:[%s897_s29 + $0x30] sm:$0xff] %v749_v28  ;;  %500 = vst [vmem:[%s897_s29 + $0x70] sm:$0xff] %v757_v29  ;;  %v533_v48 = vmul.f32 %v749_v28, %v749_v28  ;;  %v526_v27 = vld [vmem:[%s962_s4] sm:$0x1] }
  0xfc   : > { %v439_v33 = vpop.f32.mrf.mxu0  ;;  %v471_v34 = vpop.f32.mrf.mxu1  ;;  %v541_v8 = vmul.f32 %v757_v29, %v757_v29 }
  0xfd   : > { %v544_v36 = vadd.f32 %v543_v32, %v529_v30  ;;  %490 = vst [vmem:[%s897_s29 + $0x20] sm:$0xff] %v439_v33  ;;  %v505_v37 = vadd.f32 %v746_v21, %v504_v31  ;;  %498 = vst [vmem:[%s897_s29 + $0x60] sm:$0xff] %v471_v34  ;;  %v531_v41 = vmul.f32 %v439_v33, %v439_v33 }
  0xfe   : > { %v750_v38 = vpop.f32.mrf.mxu0  ;;  %v758_v39 = vpop.f32.mrf.mxu1  ;;  %v539_v3 = vmul.f32 %v471_v34, %v471_v34 }
  0xff   : > { %v506_v40 = vadd.f32 %v505_v37, %v439_v33  ;;  %v545_v42 = vadd.f32 %v544_v36, %v530_v35  ;;  %493 = vst [vmem:[%s897_s29 + $0x38] sm:$0xff] %v750_v38  ;;  %501 = vst [vmem:[%s897_s29 + $0x78] sm:$0xff] %v758_v39  ;;  %v534_v51 = vmul.f32 %v750_v38, %v750_v38 }
 0x100   : > { %v442_v43 = vpop.f32.mrf.mxu0  ;;  %v474_v44 = vpop.f32.mrf.mxu1  ;;  %v542_v11 = vmul.f32 %v758_v39, %v758_v39 }
 0x101   : > { %v546_v45 = vadd.f32 %v545_v42, %v531_v41  ;;  %491 = vst [vmem:[%s897_s29 + $0x28] sm:$0xff] %v442_v43  ;;  %v507_v46 = vadd.f32 %v506_v40, %v442_v43  ;;  %v532_v47 = vmul.f32 %v442_v43, %v442_v43  ;;  %499 = vst [vmem:[%s897_s29 + $0x68] sm:$0xff] %v474_v44 }
 0x102   : > { %v540_v7 = vmul.f32 %v474_v44, %v474_v44 }
 0x103   : > { %v508_v49 = vadd.f32 %v749_v28, %v507_v46  ;;  %v547_v50 = vadd.f32 %v546_v45, %v532_v47 }
 0x105   : > { %v509_v52 = vadd.f32 %v750_v38, %v508_v49  ;;  %v548_v53 = vadd.f32 %v547_v50, %v533_v48 }
 0x107   : > { %v549_v55 = vadd.f32 %v548_v53, %v534_v51  ;;  %v510_v56 = vadd.f32 %v509_v52, %v455_v20 }
 0x109   : > { %v511_v57 = vadd.f32 %v510_v56, %v458_v24  ;;  %v550_v59 = vadd.f32 %v549_v55, %v535_v54  ;;  %v502_v24 = vld [vmem:[%s961_s3] sm:$0x1] }
 0x10b   : > { %v512_v61 = vadd.f32 %v753_v18, %v511_v57  ;;  %v551_v62 = vadd.f32 %v550_v59, %v536_v58 }
 0x10d   : > { %v552_v0 = vadd.f32 %v551_v62, %v537_v60  ;;  %v513_v1 = vadd.f32 %v754_v22, %v512_v61 }
 0x10f   : > { %v514_v2 = vadd.f32 %v513_v1, %v471_v34  ;;  %v553_v4 = vadd.f32 %v552_v0, %v538_v63 }
 0x111   : > { %v554_v5 = vadd.f32 %v553_v4, %v539_v3  ;;  %v515_v6 = vadd.f32 %v514_v2, %v474_v44 }
 0x113   : > { %v516_v9 = vadd.f32 %v757_v29, %v515_v6  ;;  %v555_v10 = vadd.f32 %v554_v5, %v540_v7 }
 0x115   : > { %v517_v12 = vadd.f32 %v758_v39, %v516_v9  ;;  %v556_v13 = vadd.f32 %v555_v10, %v541_v8 }
 0x117   : > { %v518_v14 = vrot.slane %v517_v12, 4  ;;  %v557_v15 = vadd.f32 %v556_v13, %v542_v11 }
 0x119   : > { %v519_v16 = vadd.f32 %v518_v14, %v517_v12  ;;  %v558_v17 = vrot.slane %v557_v15, 4 }
 0x11b   : > { %v520_v18 = vrot.slane %v519_v16, 2  ;;  %v559_v19 = vadd.f32 %v558_v17, %v557_v15 }
 0x11d   : > { %v521_v20 = vadd.f32 %v520_v18, %v519_v16  ;;  %v560_v21 = vrot.slane %v559_v19, 2 }
 0x11f   : > { %v522_v22 = vrot.slane %v521_v20, 1  ;;  %v561_v23 = vadd.f32 %v560_v21, %v559_v19 }
 0x121   : > { %v523_v25 = vadd.f32 %v522_v22, %v521_v20  ;;  %v562_v26 = vrot.slane %v561_v23, 1 }
 0x123   : > { %v524_v28 = vadd.f32 %v523_v25, %v502_v24  ;;  %v563_v29 = vadd.f32 %v562_v26, %v561_v23 }
 0x125   : > { %525 = vst [vmem:[%s961_s3] sm:$0x1] %v524_v28  ;;  %v564_v30 = vadd.f32 %v563_v29, %v526_v27 }
 0x127   : > { %565 = vst [vmem:[%s962_s4] sm:$0x1] %v564_v30 }
 0x128 PF: > { %s15_s17 = sadd.s32 1, %s838_s17   ;;  %s963_s15 = smov %s834_s16 }
 0x129   : > { %p12_p6 = scmp.ge.s32.totalorder %s15_s17, 6   ;;  %s964_s16 = smov %s966_s18 }
 0x12b   :  { %14 = sbr.rel (!%p12_p6) target bundleno = 2 (0x2), region = 81 }

// kernel: _lambda_.29
= control target key start
LH: loop header
LB: loop body
LE: loop exit
PB: predicated region body
PF: predicated region fallthrough
CT: control target
= control target key end

     0   :  { %s1540_s12 = smov 0   ;;  %s1542_s13 = smov 0   ;;  %s1782_s0 = inlined_call_operand.vmem [shape: bf16[4,512,64], index: 0, kind: input, shape index: {}]   ;;  %s1783_s1 = inlined_call_operand.vmem [shape: bf16[4,64,128], index: 1, kind: input, shape index: {}]   ;;  %s1784_s2 = inlined_call_operand.vmem [shape: f32[1,128], index: 2, kind: input, shape index: {}]   ;;  %s1785_s3 = inlined_call_operand.vmem [shape: f32[4,512,128], index: 3, kind: output, shape index: {}]  }
   0x1   :  { %s1544_s14 = smov 0  }
   0x2 LB: > { %s25_s15 = sadd.s32 1, %s1514_s13  ;;  %p1111_p0 = scmp.ge.s32.totalorder %s1518_s14, 1  ;;  %s1518_s14 = sphi %s1544_s14, %s13_s14   ;;  %s1514_s13 = sphi %s1542_s13, %s1787_s13   ;;  %s1510_s12 = sphi %s1540_s12, %s1786_s12  }
   0x3   : > { %p27_p1 = scmp.ge.s32.totalorder %s25_s15, 4  ;;  %p168_p2 = scmp.lt.s32.totalorder %s1518_s14, 5 }
   0x5   : > { %s1789_s15 = smov (%p27_p1, %s25_s15), 0  ;;  %p169_p3 = pnand %p1111_p0, %p168_p2 }
   0x6   : > { %p206_p4 = scmp.lt.s32.totalorder (!%p169_p3), %s1510_s12, 3 }
   0x7   : > { %172 = sbr.rel (%p169_p3) target bundleno = 305 (0x131), region = 32 }
   0xc   : > { %s1791_s12 = smov (!%p206_p4, %s1510_s12), 3  ;;  %vm494_vm0 = vcmask 523264   ;;  %v1637_v36 = vld [vmem:[%s1784_s2] ss:$0 sm:$0xff] }
   0xd   : > { %s1189_s16 = sshll.u32 %s1791_s12, 8  ;;  %s1190_s17 = sshll.u32 %s1791_s12, 5 }
   0xe   : > { %s219_s20 = scalar_lea.vmem %s1783_s1, %s1190_s17  ;;  %s1568_s23 = scalar_lea.vmem %s1782_s0, %s1189_s16 }
   0xf   : > { %v1332_v0 = vld [vmem:[%s219_s20 + $0x18] sm:$0xff]   ;;  %v1333_v1 = vld [vmem:[%s219_s20 + $0x10] sm:$0xff]   ;;  %v1334_v2 = vld [vmem:[%s219_s20 + $0x8] sm:$0xff]   ;;  %s1191_s26 = sshll.u32 %s1791_s12, 9 }
  0x10   : > { %1228 = vmatprep.subr.bf16.mxu0 %v1332_v0  ;;  %1300 = vmatprep.subr.bf16.mxu1 %v1332_v0  ;;  %v1336_v3 = vld [vmem:[%s1568_s23] sm:$0xff]   ;;  %v1338_v6 = vld [vmem:[%s1568_s23 + $0x8] sm:$0xff]   ;;  %v1340_v8 = vld [vmem:[%s1568_s23 + $0x10] sm:$0xff]   ;;  %s1657_s29 = scalar_lea.vmem %s1785_s3, %s1191_s26 }
  0x11   : > { %1229 = vmatpush3.bf16.msra.mxu0 %v1332_v0  ;;  %1304 = vmatpush3.bf16.msra.mxu1 %v1332_v0  ;;  %v1337_v4 = vld [vmem:[%s1568_s23 + $0x80] sm:$0xff]   ;;  %v1339_v7 = vld [vmem:[%s1568_s23 + $0x88] sm:$0xff]   ;;  %v1341_v9 = vld [vmem:[%s1568_s23 + $0x90] sm:$0xff]  }
  0x12   : > { %1230 = vmatprep.subr.bf16.mxu0 %v1333_v1  ;;  %1301 = vmatprep.subr.bf16.mxu1 %v1333_v1  ;;  %v1335_v5 = vld [vmem:[%s219_s20] sm:$0xff]   ;;  %v1342_v10 = vld [vmem:[%s1568_s23 + $0x18] sm:$0xff]   ;;  %v1346_v14 = vld [vmem:[%s1568_s23 + $0x28] sm:$0xff]  }
  0x13   : > { %1236 = vmatprep.mubr.msk.bf16.mxu0 %vm494_vm0, %v1336_v3  ;;  %1268 = vmatprep.mubr.msk.bf16.mxu1 %vm494_vm0, %v1337_v4  ;;  %v1343_v11 = vld [vmem:[%s1568_s23 + $0x98] sm:$0xff]   ;;  %v1344_v12 = vld [vmem:[%s1568_s23 + $0x20] sm:$0xff]   ;;  %v1347_v15 = vld [vmem:[%s1568_s23 + $0xa8] sm:$0xff]  }
  0x14   : > { %v1345_v13 = vld [vmem:[%s1568_s23 + $0xa0] sm:$0xff]   ;;  %v1348_v16 = vld [vmem:[%s1568_s23 + $0x30] sm:$0xff]   ;;  %v1350_v18 = vld [vmem:[%s1568_s23 + $0x38] sm:$0xff]  }
  0x15   : > { %1231 = vmatpush3.bf16.msra.mxu0 %v1333_v1  ;;  %1305 = vmatpush3.bf16.msra.mxu1 %v1333_v1  ;;  %v1349_v17 = vld [vmem:[%s1568_s23 + $0xb0] sm:$0xff]   ;;  %v1351_v19 = vld [vmem:[%s1568_s23 + $0xb8] sm:$0xff]   ;;  %v1352_v20 = vld [vmem:[%s1568_s23 + $0x40] sm:$0xff]  }
  0x16   : > { %1232 = vmatprep.subr.bf16.mxu0 %v1334_v2  ;;  %1302 = vmatprep.subr.bf16.mxu1 %v1334_v2  ;;  %v1353_v21 = vld [vmem:[%s1568_s23 + $0xc0] sm:$0xff]   ;;  %v1354_v22 = vld [vmem:[%s1568_s23 + $0x48] sm:$0xff]   ;;  %v1356_v24 = vld [vmem:[%s1568_s23 + $0x50] sm:$0xff]  }
  0x17   : > { %v1355_v23 = vld [vmem:[%s1568_s23 + $0xc8] sm:$0xff]   ;;  %v1357_v25 = vld [vmem:[%s1568_s23 + $0xd0] sm:$0xff]   ;;  %v1358_v26 = vld [vmem:[%s1568_s23 + $0x58] sm:$0xff]  }
  0x18   : > { %v1359_v27 = vld [vmem:[%s1568_s23 + $0xd8] sm:$0xff]   ;;  %v1360_v28 = vld [vmem:[%s1568_s23 + $0x60] sm:$0xff]   ;;  %v1362_v30 = vld [vmem:[%s1568_s23 + $0x68] sm:$0xff]  }
  0x19   : > { %1233 = vmatpush3.bf16.msra.mxu0 %v1334_v2  ;;  %1306 = vmatpush3.bf16.msra.mxu1 %v1334_v2  ;;  %v1361_v29 = vld [vmem:[%s1568_s23 + $0xe0] sm:$0xff]   ;;  %v1363_v31 = vld [vmem:[%s1568_s23 + $0xe8] sm:$0xff]   ;;  %v1364_v32 = vld [vmem:[%s1568_s23 + $0x70] sm:$0xff]  }
  0x1a   : > { %1234 = vmatprep.subr.bf16.mxu0 %v1335_v5  ;;  %1303 = vmatprep.subr.bf16.mxu1 %v1335_v5  ;;  %v1365_v33 = vld [vmem:[%s1568_s23 + $0xf0] sm:$0xff]   ;;  %v1366_v34 = vld [vmem:[%s1568_s23 + $0x78] sm:$0xff]  }
  0x1b   : > { %v1367_v35 = vld [vmem:[%s1568_s23 + $0xf8] sm:$0xff]  }
  0x1d   : > { %1235 = vmatpush3.bf16.msra.mxu0 %v1335_v5  ;;  %1307 = vmatpush3.bf16.msra.mxu1 %v1335_v5 }
  0x20   : > { %1237 = vmatmul.mubr.msk.bf16.vlgmr.msra.gmra.mxu0 %vm494_vm0, %v1338_v6  ;;  %1269 = vmatmul.mubr.msk.bf16.vlgmr.msra.gmra.mxu1 %vm494_vm0, %v1339_v7 }
  0x21   : > { %1240 = vmatprep.mubr.msk.bf16.mxu0 %vm494_vm0, %v1340_v8  ;;  %1272 = vmatprep.mubr.msk.bf16.mxu1 %vm494_vm0, %v1341_v9 }
  0x28   : > { %1241 = vmatmul.mubr.msk.bf16.gmra.mxu0 %vm494_vm0, %v1342_v10  ;;  %1273 = vmatmul.mubr.msk.bf16.gmra.mxu1 %vm494_vm0, %v1343_v11 }
  0x29   : > { %1244 = vmatprep.mubr.msk.bf16.mxu0 %vm494_vm0, %v1344_v12  ;;  %1276 = vmatprep.mubr.msk.bf16.mxu1 %vm494_vm0, %v1345_v13 }
  0x30   : > { %1245 = vmatmul.mubr.msk.bf16.gmra.mxu0 %vm494_vm0, %v1346_v14  ;;  %1277 = vmatmul.mubr.msk.bf16.gmra.mxu1 %vm494_vm0, %v1347_v15 }
  0x31   : > { %1248 = vmatprep.mubr.msk.bf16.mxu0 %vm494_vm0, %v1348_v16  ;;  %1280 = vmatprep.mubr.msk.bf16.mxu1 %vm494_vm0, %v1349_v17 }
  0x38   : > { %1249 = vmatmul.mubr.msk.bf16.gmra.mxu0 %vm494_vm0, %v1350_v18  ;;  %1281 = vmatmul.mubr.msk.bf16.gmra.mxu1 %vm494_vm0, %v1351_v19 }
  0x39   : > { %1252 = vmatprep.mubr.msk.bf16.mxu0 %vm494_vm0, %v1352_v20  ;;  %1284 = vmatprep.mubr.msk.bf16.mxu1 %vm494_vm0, %v1353_v21 }
  0x40   : > { %1253 = vmatmul.mubr.msk.bf16.gmra.mxu0 %vm494_vm0, %v1354_v22  ;;  %1285 = vmatmul.mubr.msk.bf16.gmra.mxu1 %vm494_vm0, %v1355_v23 }
  0x41   : > { %1256 = vmatprep.mubr.msk.bf16.mxu0 %vm494_vm0, %v1356_v24  ;;  %1288 = vmatprep.mubr.msk.bf16.mxu1 %vm494_vm0, %v1357_v25 }
  0x48   : > { %1257 = vmatmul.mubr.msk.bf16.gmra.mxu0 %vm494_vm0, %v1358_v26  ;;  %1289 = vmatmul.mubr.msk.bf16.gmra.mxu1 %vm494_vm0, %v1359_v27 }
  0x49   : > { %1260 = vmatprep.mubr.msk.bf16.mxu0 %vm494_vm0, %v1360_v28  ;;  %1292 = vmatprep.mubr.msk.bf16.mxu1 %vm494_vm0, %v1361_v29 }
  0x50   : > { %1261 = vmatmul.mubr.msk.bf16.gmra.mxu0 %vm494_vm0, %v1362_v30  ;;  %1293 = vmatmul.mubr.msk.bf16.gmra.mxu1 %vm494_vm0, %v1363_v31 }
  0x51   : > { %1264 = vmatprep.mubr.msk.bf16.mxu0 %vm494_vm0, %v1364_v32  ;;  %1296 = vmatprep.mubr.msk.bf16.mxu1 %vm494_vm0, %v1365_v33 }
  0x58   : > { %1265 = vmatmul.mubr.msk.bf16.gmra.mxu0 %vm494_vm0, %v1366_v34  ;;  %1297 = vmatmul.mubr.msk.bf16.gmra.mxu1 %vm494_vm0, %v1367_v35 }
  0xe0   : > { %v1238_v37 = vpop.f32.mrf.mxu0  ;;  %v1270_v38 = vpop.f32.mrf.mxu1 }
  0xe1   : > { %v634_v39 = vadd.f32 %v1238_v37, %v1637_v36  ;;  %v762_v40 = vadd.f32 %v1270_v38, %v1637_v36 }
  0xe2   : > { %v625_v41 = vpop.f32.mrf.mxu0  ;;  %v753_v42 = vpop.f32.mrf.mxu1 }
  0xe3   : > { %1368 = vtanh.f32 %v634_v39  ;;  %v626_v43 = vadd.f32 %v1637_v36, %v625_v41  ;;  %v754_v44 = vadd.f32 %v1637_v36, %v753_v42 }
  0xe4   : > { %1370 = vtanh.f32 %v762_v40  ;;  %v1239_v45 = vpop.f32.mrf.mxu0  ;;  %v1271_v46 = vpop.f32.mrf.mxu1 }
  0xe5   : > { %1372 = vtanh.f32 %v626_v43  ;;  %v637_v47 = vadd.f32 %v1239_v45, %v1637_v36  ;;  %v765_v48 = vadd.f32 %v1271_v46, %v1637_v36 }
  0xe6   : > { %1374 = vtanh.f32 %v754_v44  ;;  %v628_v49 = vpop.f32.mrf.mxu0  ;;  %v756_v50 = vpop.f32.mrf.mxu1 }
  0xe7   : > { %1376 = vtanh.f32 %v637_v47  ;;  %v629_v51 = vadd.f32 %v1637_v36, %v628_v49  ;;  %v757_v52 = vadd.f32 %v1637_v36, %v756_v50 }
  0xe8   : > { %1378 = vtanh.f32 %v765_v48  ;;  %v1242_v53 = vpop.f32.mrf.mxu0  ;;  %v1274_v54 = vpop.f32.mrf.mxu1 }
  0xe9   : > { %1380 = vtanh.f32 %v629_v51  ;;  %v650_v55 = vadd.f32 %v1242_v53, %v1637_v36  ;;  %v778_v56 = vadd.f32 %v1274_v54, %v1637_v36 }
  0xea   : > { %1382 = vtanh.f32 %v757_v52  ;;  %v641_v57 = vpop.f32.mrf.mxu0  ;;  %v769_v58 = vpop.f32.mrf.mxu1 }
  0xeb   : > { %1384 = vtanh.f32 %v650_v55  ;;  %v642_v59 = vadd.f32 %v1637_v36, %v641_v57  ;;  %v770_v60 = vadd.f32 %v1637_v36, %v769_v58 }
  0xec   : > { %1386 = vtanh.f32 %v778_v56  ;;  %v1243_v61 = vpop.f32.mrf.mxu0  ;;  %v1275_v62 = vpop.f32.mrf.mxu1 }
  0xed   : > { %1388 = vtanh.f32 %v642_v59  ;;  %v653_v63 = vadd.f32 %v1243_v61, %v1637_v36  ;;  %v781_v0 = vadd.f32 %v1275_v62, %v1637_v36 }
  0xee   : > { %1390 = vtanh.f32 %v770_v60  ;;  %v644_v1 = vpop.f32.mrf.mxu0  ;;  %v772_v2 = vpop.f32.mrf.mxu1 }
  0xef   : > { %1392 = vtanh.f32 %v653_v63  ;;  %v645_v3 = vadd.f32 %v1637_v36, %v644_v1  ;;  %v773_v4 = vadd.f32 %v1637_v36, %v772_v2 }
  0xf0   : > { %v1369_v5 = vpop.eup %1368  ;;  %1394 = vtanh.f32 %v781_v0  ;;  %v1246_v6 = vpop.f32.mrf.mxu0 }
  0xf1   : > { %v1278_v7 = vpop.f32.mrf.mxu1  ;;  %v1371_v8 = vpop.eup %1370  ;;  %946 = vst [vmem:[%s1657_s29 + $0x10] sm:$0xff] %v1369_v5  ;;  %1396 = vtanh.f32 %v645_v3  ;;  %v666_v9 = vadd.f32 %v1246_v6, %v1637_v36 }
  0xf2   : > { %v794_v10 = vadd.f32 %v1278_v7, %v1637_v36  ;;  %v1373_v11 = vpop.eup %1372  ;;  %978 = vst [vmem:[%s1657_s29 + $0x110] sm:$0xff] %v1371_v8  ;;  %1398 = vtanh.f32 %v773_v4  ;;  %v657_v12 = vpop.f32.mrf.mxu0 }
  0xf3   : > { %v785_v13 = vpop.f32.mrf.mxu1  ;;  %v1375_v14 = vpop.eup %1374  ;;  %944 = vst [vmem:[%s1657_s29] sm:$0xff] %v1373_v11  ;;  %1400 = vtanh.f32 %v666_v9  ;;  %v658_v15 = vadd.f32 %v1637_v36, %v657_v12 }
  0xf4   : > { %v786_v16 = vadd.f32 %v1637_v36, %v785_v13  ;;  %v1377_v17 = vpop.eup %1376  ;;  %976 = vst [vmem:[%s1657_s29 + $0x100] sm:$0xff] %v1375_v14  ;;  %1402 = vtanh.f32 %v794_v10  ;;  %v1247_v18 = vpop.f32.mrf.mxu0 }
  0xf5   : > { %v1279_v19 = vpop.f32.mrf.mxu1  ;;  %v1379_v20 = vpop.eup %1378  ;;  %947 = vst [vmem:[%s1657_s29 + $0x18] sm:$0xff] %v1377_v17  ;;  %1404 = vtanh.f32 %v658_v15  ;;  %v669_v21 = vadd.f32 %v1247_v18, %v1637_v36 }
  0xf6   : > { %v797_v22 = vadd.f32 %v1279_v19, %v1637_v36  ;;  %v1381_v23 = vpop.eup %1380  ;;  %979 = vst [vmem:[%s1657_s29 + $0x118] sm:$0xff] %v1379_v20  ;;  %1406 = vtanh.f32 %v786_v16  ;;  %v660_v24 = vpop.f32.mrf.mxu0 }
  0xf7   : > { %v788_v25 = vpop.f32.mrf.mxu1  ;;  %v1383_v26 = vpop.eup %1382  ;;  %945 = vst [vmem:[%s1657_s29 + $0x8] sm:$0xff] %v1381_v23  ;;  %1408 = vtanh.f32 %v669_v21  ;;  %v661_v27 = vadd.f32 %v1637_v36, %v660_v24 }
  0xf8   : > { %v789_v28 = vadd.f32 %v1637_v36, %v788_v25  ;;  %v1385_v29 = vpop.eup %1384  ;;  %977 = vst [vmem:[%s1657_s29 + $0x108] sm:$0xff] %v1383_v26  ;;  %1410 = vtanh.f32 %v797_v22  ;;  %v1250_v30 = vpop.f32.mrf.mxu0 }
  0xf9   : > { %v1282_v31 = vpop.f32.mrf.mxu1  ;;  %v1387_v32 = vpop.eup %1386  ;;  %950 = vst [vmem:[%s1657_s29 + $0x30] sm:$0xff] %v1385_v29  ;;  %1412 = vtanh.f32 %v661_v27  ;;  %v682_v33 = vadd.f32 %v1250_v30, %v1637_v36 }
  0xfa   : > { %v810_v34 = vadd.f32 %v1282_v31, %v1637_v36  ;;  %v1389_v35 = vpop.eup %1388  ;;  %982 = vst [vmem:[%s1657_s29 + $0x130] sm:$0xff] %v1387_v32  ;;  %1414 = vtanh.f32 %v789_v28  ;;  %v673_v37 = vpop.f32.mrf.mxu0 }
  0xfb   : > { %v801_v38 = vpop.f32.mrf.mxu1  ;;  %v1391_v39 = vpop.eup %1390  ;;  %948 = vst [vmem:[%s1657_s29 + $0x20] sm:$0xff] %v1389_v35  ;;  %1416 = vtanh.f32 %v682_v33  ;;  %v674_v40 = vadd.f32 %v1637_v36, %v673_v37 }
  0xfc   : > { %v802_v41 = vadd.f32 %v1637_v36, %v801_v38  ;;  %v1393_v42 = vpop.eup %1392  ;;  %980 = vst [vmem:[%s1657_s29 + $0x120] sm:$0xff] %v1391_v39  ;;  %1418 = vtanh.f32 %v810_v34  ;;  %v1251_v43 = vpop.f32.mrf.mxu0 }
  0xfd   : > { %v1283_v44 = vpop.f32.mrf.mxu1  ;;  %v1395_v45 = vpop.eup %1394  ;;  %951 = vst [vmem:[%s1657_s29 + $0x38] sm:$0xff] %v1393_v42  ;;  %1420 = vtanh.f32 %v674_v40  ;;  %v685_v46 = vadd.f32 %v1251_v43, %v1637_v36 }
  0xfe   : > { %v813_v47 = vadd.f32 %v1283_v44, %v1637_v36  ;;  %v1397_v48 = vpop.eup %1396  ;;  %983 = vst [vmem:[%s1657_s29 + $0x138] sm:$0xff] %v1395_v45  ;;  %1422 = vtanh.f32 %v802_v41  ;;  %v676_v49 = vpop.f32.mrf.mxu0 }
  0xff   : > { %v804_v50 = vpop.f32.mrf.mxu1  ;;  %v1399_v51 = vpop.eup %1398  ;;  %949 = vst [vmem:[%s1657_s29 + $0x28] sm:$0xff] %v1397_v48  ;;  %1424 = vtanh.f32 %v685_v46  ;;  %v677_v52 = vadd.f32 %v1637_v36, %v676_v49 }
 0x100   : > { %v805_v53 = vadd.f32 %v1637_v36, %v804_v50  ;;  %v1401_v54 = vpop.eup %1400  ;;  %981 = vst [vmem:[%s1657_s29 + $0x128] sm:$0xff] %v1399_v51  ;;  %1426 = vtanh.f32 %v813_v47  ;;  %v1254_v55 = vpop.f32.mrf.mxu0 }
 0x101   : > { %v1286_v56 = vpop.f32.mrf.mxu1  ;;  %v1403_v57 = vpop.eup %1402  ;;  %954 = vst [vmem:[%s1657_s29 + $0x50] sm:$0xff] %v1401_v54  ;;  %1428 = vtanh.f32 %v677_v52  ;;  %v698_v58 = vadd.f32 %v1254_v55, %v1637_v36 }
 0x102   : > { %v826_v59 = vadd.f32 %v1286_v56, %v1637_v36  ;;  %v1405_v60 = vpop.eup %1404  ;;  %986 = vst [vmem:[%s1657_s29 + $0x150] sm:$0xff] %v1403_v57  ;;  %1430 = vtanh.f32 %v805_v53  ;;  %v689_v61 = vpop.f32.mrf.mxu0 }
 0x103   : > { %v817_v62 = vpop.f32.mrf.mxu1  ;;  %v1407_v63 = vpop.eup %1406  ;;  %952 = vst [vmem:[%s1657_s29 + $0x40] sm:$0xff] %v1405_v60  ;;  %1432 = vtanh.f32 %v698_v58  ;;  %v690_v0 = vadd.f32 %v1637_v36, %v689_v61 }
 0x104   : > { %v818_v1 = vadd.f32 %v1637_v36, %v817_v62  ;;  %v1409_v2 = vpop.eup %1408  ;;  %984 = vst [vmem:[%s1657_s29 + $0x140] sm:$0xff] %v1407_v63  ;;  %1434 = vtanh.f32 %v826_v59  ;;  %v1255_v3 = vpop.f32.mrf.mxu0 }
 0x105   : > { %v1287_v4 = vpop.f32.mrf.mxu1  ;;  %v1411_v5 = vpop.eup %1410  ;;  %955 = vst [vmem:[%s1657_s29 + $0x58] sm:$0xff] %v1409_v2  ;;  %1436 = vtanh.f32 %v690_v0  ;;  %v701_v6 = vadd.f32 %v1255_v3, %v1637_v36 }
 0x106   : > { %v829_v7 = vadd.f32 %v1287_v4, %v1637_v36  ;;  %v1413_v8 = vpop.eup %1412  ;;  %987 = vst [vmem:[%s1657_s29 + $0x158] sm:$0xff] %v1411_v5  ;;  %1438 = vtanh.f32 %v818_v1  ;;  %v692_v9 = vpop.f32.mrf.mxu0 }
 0x107   : > { %v820_v10 = vpop.f32.mrf.mxu1  ;;  %v1415_v11 = vpop.eup %1414  ;;  %953 = vst [vmem:[%s1657_s29 + $0x48] sm:$0xff] %v1413_v8  ;;  %1440 = vtanh.f32 %v701_v6  ;;  %v693_v12 = vadd.f32 %v1637_v36, %v692_v9 }
 0x108   : > { %v821_v13 = vadd.f32 %v1637_v36, %v820_v10  ;;  %v1417_v14 = vpop.eup %1416  ;;  %985 = vst [vmem:[%s1657_s29 + $0x148] sm:$0xff] %v1415_v11  ;;  %1442 = vtanh.f32 %v829_v7  ;;  %v1258_v15 = vpop.f32.mrf.mxu0 }
 0x109   : > { %v1290_v16 = vpop.f32.mrf.mxu1  ;;  %v1419_v17 = vpop.eup %1418  ;;  %958 = vst [vmem:[%s1657_s29 + $0x70] sm:$0xff] %v1417_v14  ;;  %1444 = vtanh.f32 %v693_v12  ;;  %v714_v18 = vadd.f32 %v1258_v15, %v1637_v36 }
 0x10a   : > { %v842_v19 = vadd.f32 %v1290_v16, %v1637_v36  ;;  %v1421_v20 = vpop.eup %1420  ;;  %990 = vst [vmem:[%s1657_s29 + $0x170] sm:$0xff] %v1419_v17  ;;  %1446 = vtanh.f32 %v821_v13  ;;  %v705_v21 = vpop.f32.mrf.mxu0 }
 0x10b   : > { %v833_v22 = vpop.f32.mrf.mxu1  ;;  %v1423_v23 = vpop.eup %1422  ;;  %956 = vst [vmem:[%s1657_s29 + $0x60] sm:$0xff] %v1421_v20  ;;  %1448 = vtanh.f32 %v714_v18  ;;  %v706_v24 = vadd.f32 %v1637_v36, %v705_v21 }
 0x10c   : > { %v834_v25 = vadd.f32 %v1637_v36, %v833_v22  ;;  %v1425_v26 = vpop.eup %1424  ;;  %988 = vst [vmem:[%s1657_s29 + $0x160] sm:$0xff] %v1423_v23  ;;  %1450 = vtanh.f32 %v842_v19  ;;  %v1259_v27 = vpop.f32.mrf.mxu0 }
 0x10d   : > { %v1291_v28 = vpop.f32.mrf.mxu1  ;;  %v1427_v29 = vpop.eup %1426  ;;  %959 = vst [vmem:[%s1657_s29 + $0x78] sm:$0xff] %v1425_v26  ;;  %1452 = vtanh.f32 %v706_v24  ;;  %v717_v30 = vadd.f32 %v1259_v27, %v1637_v36 }
 0x10e   : > { %v845_v31 = vadd.f32 %v1291_v28, %v1637_v36  ;;  %v1429_v32 = vpop.eup %1428  ;;  %991 = vst [vmem:[%s1657_s29 + $0x178] sm:$0xff] %v1427_v29  ;;  %1454 = vtanh.f32 %v834_v25  ;;  %v708_v33 = vpop.f32.mrf.mxu0 }
 0x10f   : > { %v836_v34 = vpop.f32.mrf.mxu1  ;;  %v1431_v35 = vpop.eup %1430  ;;  %957 = vst [vmem:[%s1657_s29 + $0x68] sm:$0xff] %v1429_v32  ;;  %1456 = vtanh.f32 %v717_v30  ;;  %v709_v37 = vadd.f32 %v1637_v36, %v708_v33 }
 0x110   : > { %v837_v38 = vadd.f32 %v1637_v36, %v836_v34  ;;  %v1433_v39 = vpop.eup %1432  ;;  %989 = vst [vmem:[%s1657_s29 + $0x168] sm:$0xff] %v1431_v35  ;;  %1458 = vtanh.f32 %v845_v31  ;;  %v1262_v40 = vpop.f32.mrf.mxu0 }
 0x111   : > { %v1294_v41 = vpop.f32.mrf.mxu1  ;;  %v1435_v42 = vpop.eup %1434  ;;  %962 = vst [vmem:[%s1657_s29 + $0x90] sm:$0xff] %v1433_v39  ;;  %1460 = vtanh.f32 %v709_v37  ;;  %v730_v43 = vadd.f32 %v1262_v40, %v1637_v36 }
 0x112   : > { %v858_v44 = vadd.f32 %v1294_v41, %v1637_v36  ;;  %v1437_v45 = vpop.eup %1436  ;;  %994 = vst [vmem:[%s1657_s29 + $0x190] sm:$0xff] %v1435_v42  ;;  %1462 = vtanh.f32 %v837_v38  ;;  %v721_v46 = vpop.f32.mrf.mxu0 }
 0x113   : > { %v849_v47 = vpop.f32.mrf.mxu1  ;;  %v1439_v48 = vpop.eup %1438  ;;  %960 = vst [vmem:[%s1657_s29 + $0x80] sm:$0xff] %v1437_v45  ;;  %1464 = vtanh.f32 %v730_v43  ;;  %v722_v49 = vadd.f32 %v1637_v36, %v721_v46 }
 0x114   : > { %v850_v50 = vadd.f32 %v1637_v36, %v849_v47  ;;  %v1441_v51 = vpop.eup %1440  ;;  %992 = vst [vmem:[%s1657_s29 + $0x180] sm:$0xff] %v1439_v48  ;;  %1466 = vtanh.f32 %v858_v44  ;;  %v1263_v52 = vpop.f32.mrf.mxu0 }
 0x115   : > { %v1295_v53 = vpop.f32.mrf.mxu1  ;;  %v1443_v54 = vpop.eup %1442  ;;  %963 = vst [vmem:[%s1657_s29 + $0x98] sm:$0xff] %v1441_v51  ;;  %1468 = vtanh.f32 %v722_v49  ;;  %v733_v55 = vadd.f32 %v1263_v52, %v1637_v36 }
 0x116   : > { %v861_v56 = vadd.f32 %v1295_v53, %v1637_v36  ;;  %v1445_v57 = vpop.eup %1444  ;;  %995 = vst [vmem:[%s1657_s29 + $0x198] sm:$0xff] %v1443_v54  ;;  %1470 = vtanh.f32 %v850_v50  ;;  %v724_v58 = vpop.f32.mrf.mxu0 }
 0x117   : > { %v852_v59 = vpop.f32.mrf.mxu1  ;;  %v1447_v60 = vpop.eup %1446  ;;  %961 = vst [vmem:[%s1657_s29 + $0x88] sm:$0xff] %v1445_v57  ;;  %1472 = vtanh.f32 %v733_v55  ;;  %v725_v61 = vadd.f32 %v1637_v36, %v724_v58 }
 0x118   : > { %v853_v62 = vadd.f32 %v1637_v36, %v852_v59  ;;  %v1449_v63 = vpop.eup %1448  ;;  %993 = vst [vmem:[%s1657_s29 + $0x188] sm:$0xff] %v1447_v60  ;;  %1474 = vtanh.f32 %v861_v56  ;;  %v1266_v0 = vpop.f32.mrf.mxu0 }
 0x119   : > { %v1298_v1 = vpop.f32.mrf.mxu1  ;;  %v1451_v2 = vpop.eup %1450  ;;  %966 = vst [vmem:[%s1657_s29 + $0xb0] sm:$0xff] %v1449_v63  ;;  %1476 = vtanh.f32 %v725_v61  ;;  %v746_v3 = vadd.f32 %v1266_v0, %v1637_v36 }
 0x11a   : > { %v874_v4 = vadd.f32 %v1298_v1, %v1637_v36  ;;  %v1453_v5 = vpop.eup %1452  ;;  %998 = vst [vmem:[%s1657_s29 + $0x1b0] sm:$0xff] %v1451_v2  ;;  %1478 = vtanh.f32 %v853_v62  ;;  %v737_v6 = vpop.f32.mrf.mxu0 }
 0x11b   : > { %v865_v7 = vpop.f32.mrf.mxu1  ;;  %v1455_v8 = vpop.eup %1454  ;;  %964 = vst [vmem:[%s1657_s29 + $0xa0] sm:$0xff] %v1453_v5  ;;  %1480 = vtanh.f32 %v746_v3  ;;  %v738_v9 = vadd.f32 %v1637_v36, %v737_v6 }
 0x11c   : > { %v866_v10 = vadd.f32 %v1637_v36, %v865_v7  ;;  %v1457_v11 = vpop.eup %1456  ;;  %996 = vst [vmem:[%s1657_s29 + $0x1a0] sm:$0xff] %v1455_v8  ;;  %1482 = vtanh.f32 %v874_v4  ;;  %v1267_v12 = vpop.f32.mrf.mxu0 }
 0x11d   : > { %v1299_v13 = vpop.f32.mrf.mxu1  ;;  %v1459_v14 = vpop.eup %1458  ;;  %967 = vst [vmem:[%s1657_s29 + $0xb8] sm:$0xff] %v1457_v11  ;;  %1484 = vtanh.f32 %v738_v9  ;;  %v749_v15 = vadd.f32 %v1267_v12, %v1637_v36 }
 0x11e   : > { %v877_v16 = vadd.f32 %v1299_v13, %v1637_v36  ;;  %v1461_v17 = vpop.eup %1460  ;;  %999 = vst [vmem:[%s1657_s29 + $0x1b8] sm:$0xff] %v1459_v14  ;;  %1486 = vtanh.f32 %v866_v10  ;;  %v740_v18 = vpop.f32.mrf.mxu0 }
 0x11f   : > { %v868_v19 = vpop.f32.mrf.mxu1  ;;  %v1463_v20 = vpop.eup %1462  ;;  %965 = vst [vmem:[%s1657_s29 + $0xa8] sm:$0xff] %v1461_v17  ;;  %1488 = vtanh.f32 %v749_v15  ;;  %v741_v21 = vadd.f32 %v1637_v36, %v740_v18 }
 0x120   : > { %v869_v22 = vadd.f32 %v1637_v36, %v868_v19  ;;  %v1465_v23 = vpop.eup %1464  ;;  %997 = vst [vmem:[%s1657_s29 + $0x1a8] sm:$0xff] %v1463_v20  ;;  %1490 = vtanh.f32 %v877_v16 }
 0x121   : > { %v1467_v24 = vpop.eup %1466  ;;  %970 = vst [vmem:[%s1657_s29 + $0xd0] sm:$0xff] %v1465_v23  ;;  %1492 = vtanh.f32 %v741_v21 }
 0x122   : > { %v1469_v25 = vpop.eup %1468  ;;  %1002 = vst [vmem:[%s1657_s29 + $0x1d0] sm:$0xff] %v1467_v24  ;;  %1494 = vtanh.f32 %v869_v22 }
 0x123   : > { %v1471_v26 = vpop.eup %1470  ;;  %968 = vst [vmem:[%s1657_s29 + $0xc0] sm:$0xff] %v1469_v25 }
 0x124   : > { %v1473_v27 = vpop.eup %1472  ;;  %1000 = vst [vmem:[%s1657_s29 + $0x1c0] sm:$0xff] %v1471_v26 }
 0x125   : > { %v1475_v36 = vpop.eup %1474  ;;  %971 = vst [vmem:[%s1657_s29 + $0xd8] sm:$0xff] %v1473_v27 }
 0x126   : > { %v1477_v28 = vpop.eup %1476  ;;  %1003 = vst [vmem:[%s1657_s29 + $0x1d8] sm:$0xff] %v1475_v36 }
 0x127   : > { %v1479_v29 = vpop.eup %1478  ;;  %969 = vst [vmem:[%s1657_s29 + $0xc8] sm:$0xff] %v1477_v28 }
 0x128   : > { %v1481_v30 = vpop.eup %1480  ;;  %1001 = vst [vmem:[%s1657_s29 + $0x1c8] sm:$0xff] %v1479_v29 }
 0x129   : > { %v1483_v31 = vpop.eup %1482  ;;  %974 = vst [vmem:[%s1657_s29 + $0xf0] sm:$0xff] %v1481_v30 }
 0x12a   : > { %v1485_v32 = vpop.eup %1484  ;;  %1006 = vst [vmem:[%s1657_s29 + $0x1f0] sm:$0xff] %v1483_v31 }
 0x12b   : > { %v1487_v33 = vpop.eup %1486  ;;  %972 = vst [vmem:[%s1657_s29 + $0xe0] sm:$0xff] %v1485_v32 }
 0x12c   : > { %v1489_v34 = vpop.eup %1488  ;;  %1004 = vst [vmem:[%s1657_s29 + $0x1e0] sm:$0xff] %v1487_v33 }
 0x12d   : > { %v1491_v35 = vpop.eup %1490  ;;  %975 = vst [vmem:[%s1657_s29 + $0xf8] sm:$0xff] %v1489_v34 }
 0x12e   : > { %v1493_v37 = vpop.eup %1492  ;;  %1007 = vst [vmem:[%s1657_s29 + $0x1f8] sm:$0xff] %v1491_v35 }
 0x12f   : > { %v1495_v38 = vpop.eup %1494  ;;  %973 = vst [vmem:[%s1657_s29 + $0xe8] sm:$0xff] %v1493_v37 }
 0x130   : > { %1005 = vst [vmem:[%s1657_s29 + $0x1e8] sm:$0xff] %v1495_v38 }
 0x131 PF: > { %s13_s14 = sadd.s32 1, %s1518_s14   ;;  %s1786_s12 = smov %s1514_s13 }
 0x132   : > { %p10_p5 = scmp.ge.s32.totalorder %s13_s14, 6   ;;  %s1787_s13 = smov %s1789_s15 }
 0x134   :  { %12 = sbr.rel (!%p10_p5) target bundleno = 2 (0x2), region = 65 }

</bundles_post_ra>
